<compile_context>
chip_gen: v6e
topology: v6e:2x2x1
jax: 0.10.0
libtpu: 0.0.40
codegen_flags: <defaults>
</compile_context>

<pallas_src>
import functools

import jax
import jax.numpy as jnp
from jax.experimental import pallas as pl
from jax.experimental.pallas import tpu as pltpu

EPS = 1e-5  # nn.InstanceNorm2d default


# --------------------------------------------------------------------------
# Fused per-sample kernel: conv3x3(reflect-pad) -> IN -> 1x1+ReLU -> 1x1+ReLU [-> +res]
#
# Coordinate scheme: the input sample is reflect-padded to (C, H+2, W+2), flattened
# to (C, Hp*Wp) and zero-padded on the lane axis to Ppad.  For a 3x3 tap (kh, kw)
# the conv contribution at output pixel (h, w) is  W_tap @ xp[:, (h+kh)*Wp + (w+kw)],
# i.e. a pure flat shift by  off = kh*Wp + kw  of the padded-flat column index
# p = h*Wp + w.  We therefore accumulate  sum_t  W_t @ xp_flat[:, off_t : off_t+L]
# with L = H*Wp; columns with (p mod Wp) >= W are junk and are (a) masked out of the
# InstanceNorm statistics and (b) discarded by the wrapper.
# --------------------------------------------------------------------------
def _make_half_kernel(tap_offsets, win_len, inv_count, res_off, add_residual):
    def _compute(xp_ref, wt_ref, wa_ref, zb_ref, wb_ref, bb_ref, mask_ref, res_ref):
        xv = xp_ref[...]                                        # (C, Ppad) f32
        # ---- 3x3 conv: in-kernel KH*KW reduction, bf16 MXU, f32 accumulate ----
        acc = None
        for t, off in enumerate(tap_offsets):
            xw = xv[:, off:off + win_len].astype(jnp.bfloat16)  # (C, L)
            part = jnp.dot(wt_ref[t], xw, preferred_element_type=jnp.float32)
            acc = part if acc is None else acc + part           # (C, L) f32
        # conv bias intentionally omitted: exactly cancelled by InstanceNorm below.

        # ---- InstanceNorm (affine=False, biased var, eps=1e-5) over the valid
        #      H*W pixels only (lane-axis reductions). ----
        mask = mask_ref[...]                                    # (1, L) 0/1
        mean = jnp.sum(acc * mask, axis=1, keepdims=True) * inv_count
        cen = (acc - mean) * mask
        var = jnp.sum(cen * cen, axis=1, keepdims=True) * inv_count
        o1 = (acc - mean) * jax.lax.rsqrt(var + EPS)

        # ---- blk: 1x1 conv (z-concat folded into per-sample bias) + ReLU,
        #           then 1x1 conv + ReLU. ----
        h = jnp.dot(wa_ref[...], o1.astype(jnp.bfloat16),
                    preferred_element_type=jnp.float32) + zb_ref[...]
        h = jnp.maximum(h, 0.0)
        o2 = jnp.dot(wb_ref[...], h.astype(jnp.bfloat16),
                     preferred_element_type=jnp.float32) + bb_ref[...]
        o2 = jnp.maximum(o2, 0.0)

        if res_ref is not None:                                 # fused skip connection
            rv = res_ref[...]                                   # padded-flat original x
            o2 = o2 + rv[:, res_off:res_off + win_len]
        return o2

    if add_residual:
        def kernel(xp_ref, res_ref, wt_ref, wa_ref, zb_ref, wb_ref, bb_ref,
                   mask_ref, o_ref):
            o_ref[...] = _compute(xp_ref, wt_ref, wa_ref, zb_ref, wb_ref, bb_ref,
                                  mask_ref, res_ref)
    else:
        def kernel(xp_ref, wt_ref, wa_ref, zb_ref, wb_ref, bb_ref, mask_ref, o_ref):
            o_ref[...] = _compute(xp_ref, wt_ref, wa_ref, zb_ref, wb_ref, bb_ref,
                                  mask_ref, None)
    return kernel


# --------------------------------------------------------------------------
# Wrapper glue (layout plumbing only: reflect pad, flatten, weight repacking)
# --------------------------------------------------------------------------
def _round_up(a, m):
    return (a + m - 1) // m * m


def _reflect_pad_flatten(x, ppad):
    """(N,C,H,W) -> reflect pad by 1 -> (N, C, Hp*Wp) -> zero-pad lanes to ppad."""
    xp = jnp.pad(x, ((0, 0), (0, 0), (1, 1), (1, 1)), mode="reflect")
    n, c, hp, wp = xp.shape
    xpf = xp.reshape(n, c, hp * wp)
    return jnp.pad(xpf, ((0, 0), (0, 0), (0, ppad - hp * wp)))


def misins_half(x_img, z, w3, blk_w1, blk_b1, blk_w2, blk_b2, res_flat=None):
    """One half of MisINSResBlock: blk(cat([IN(conv3x3(pad(x))), z])) [+ residual].

    Returns (out_flat, xp_flat) where out_flat is (N, C, H*(W+2)) in padded-flat
    coordinates and xp_flat is the padded/flattened input (reused as the residual
    source by the second half).
    """
    n, c, h, w = x_img.shape
    hp, wp = h + 2, w + 2
    L = h * wp                              # flat accumulation window
    ppad = _round_up(hp * wp + 2, 128)      # covers max tap offset, lane-dense
    xp_flat = _reflect_pad_flatten(x_img, ppad)

    ce = blk_w1.shape[0]                    # dim + dim_extra
    # z_expand + concat folded into a per-sample bias of blk's first 1x1 conv:
    #   conv1x1(cat([o, z_exp])) = W[:, :C] @ o + (W[:, C:] @ z + b)
    zbias = (z @ blk_w1[:, c:].T + blk_b1)[:, :, None]          # (N, Ce, 1) f32

    wt = jnp.transpose(w3, (2, 3, 0, 1)).reshape(9, c, c).astype(jnp.bfloat16)
    wa = blk_w1[:, :c].astype(jnp.bfloat16)                     # (Ce, C)
    wb = blk_w2.astype(jnp.bfloat16)                            # (C, Ce)
    bb = blk_b2[:, None].astype(jnp.float32)                    # (C, 1)

    cols = jnp.arange(L, dtype=jnp.int32)
    mask = ((cols % wp) < w).astype(jnp.float32)[None, :]       # (1, L) valid pixels

    tap_offsets = tuple(kh * wp + kw for kh in range(3) for kw in range(3))
    kernel = _make_half_kernel(tap_offsets, L, 1.0 / (h * w), wp + 1,
                               add_residual=res_flat is not None)

    sample_spec = pl.BlockSpec((None, c, ppad), lambda i: (i, 0, 0))
    in_specs = [sample_spec]
    args = [xp_flat]
    if res_flat is not None:
        in_specs.append(sample_spec)
        args.append(res_flat)
    in_specs += [
        pl.BlockSpec((9, c, c), lambda i: (0, 0, 0)),
        pl.BlockSpec((ce, c), lambda i: (0, 0)),
        pl.BlockSpec((None, ce, 1), lambda i: (i, 0, 0)),
        pl.BlockSpec((c, ce), lambda i: (0, 0)),
        pl.BlockSpec((c, 1), lambda i: (0, 0)),
        pl.BlockSpec((1, L), lambda i: (0, 0)),
    ]
    args += [wt, wa, zbias, wb, bb, mask]

    out_flat = pl.pallas_call(
        kernel,
        out_shape=jax.ShapeDtypeStruct((n, c, L), jnp.float32),
        grid=(n,),
        in_specs=in_specs,
        out_specs=pl.BlockSpec((None, c, L), lambda i: (i, 0, 0)),
        compiler_params=pltpu.CompilerParams(dimension_semantics=("parallel",)),
    )(*args)
    return out_flat, xp_flat


def misins_res_block_forward(params, x, z):
    n, c, h, w = x.shape
    wp = w + 2
    # half 1:  o2 = blk1(cat([IN(conv1(x)), z_expand]))
    o2_flat, xp_flat = misins_half(
        x, z, params["conv1_w"], params["blk1_c1_w"], params["blk1_c1_b"],
        params["blk1_c2_w"], params["blk1_c2_b"])
    o2 = o2_flat.reshape(n, c, h, wp)[:, :, :, :w]
    # half 2:  out = blk2(cat([IN(conv2(o2)), z_expand])) + x
    out_flat, _ = misins_half(
        o2, z, params["conv2_w"], params["blk2_c1_w"], params["blk2_c1_b"],
        params["blk2_c2_w"], params["blk2_c2_b"], res_flat=xp_flat)
    return out_flat.reshape(n, c, h, wp)[:, :, :, :w]


# --------------------------------------------------------------------------
# Parameters (PyTorch layouts; 1x1 convs stored squeezed to (Cout, Cin))
# --------------------------------------------------------------------------
def init_params(key, dim, dim_extra):
    ce = dim + dim_extra
    ks = jax.random.split(key, 12)
    g = lambda k, shape: jax.random.normal(k, shape, jnp.float32) * 0.02
    return {
        "conv1_w": g(ks[0], (dim, dim, 3, 3)),
        "conv1_b": g(ks[1], (dim,)),   # present in module; cancelled by InstanceNorm
        "conv2_w": g(ks[2], (dim, dim, 3, 3)),
        "conv2_b": g(ks[3], (dim,)),   # present in module; cancelled by InstanceNorm
        "blk1_c1_w": g(ks[4], (ce, ce)), "blk1_c1_b": g(ks[5], (ce,)),
        "blk1_c2_w": g(ks[6], (dim, ce)), "blk1_c2_b": g(ks[7], (dim,)),
        "blk2_c1_w": g(ks[8], (ce, ce)), "blk2_c1_b": g(ks[9], (ce,)),
        "blk2_c2_w": g(ks[10], (dim, ce)), "blk2_c2_b": g(ks[11], (dim,)),
    }


# --------------------------------------------------------------------------
# Plain-JAX reference (mirrors the PyTorch module) for a correctness check
# --------------------------------------------------------------------------
def _reference_forward(params, x, z):
    def conv3x3(inp, wgt, b):
        xp = jnp.pad(inp, ((0, 0), (0, 0), (1, 1), (1, 1)), mode="reflect")
        y = jax.lax.conv_general_dilated(
            xp, wgt, window_strides=(1, 1), padding="VALID",
            dimension_numbers=("NCHW", "OIHW", "NCHW"))
        return y + b[None, :, None, None]

    def inorm(t):
        m = jnp.mean(t, axis=(2, 3), keepdims=True)
        v = jnp.mean((t - m) ** 2, axis=(2, 3), keepdims=True)
        return (t - m) * jax.lax.rsqrt(v + EPS)

    def conv1x1(t, wgt, b):
        return jnp.einsum("oc,nchw->nohw", wgt, t) + b[None, :, None, None]

    n, _, h, w = x.shape
    z_exp = jnp.broadcast_to(z[:, :, None, None], (n, z.shape[1], h, w))

    o1 = inorm(conv3x3(x, params["conv1_w"], params["conv1_b"]))
    t = jnp.maximum(conv1x1(jnp.concatenate([o1, z_exp], axis=1),
                            params["blk1_c1_w"], params["blk1_c1_b"]), 0.0)
    o2 = jnp.maximum(conv1x1(t, params["blk1_c2_w"], params["blk1_c2_b"]), 0.0)

    o3 = inorm(conv3x3(o2, params["conv2_w"], params["conv2_b"]))
    t = jnp.maximum(conv1x1(jnp.concatenate([o3, z_exp], axis=1),
                            params["blk2_c1_w"], params["blk2_c1_b"]), 0.0)
    o4 = jnp.maximum(conv1x1(t, params["blk2_c2_w"], params["blk2_c2_b"]), 0.0)
    return o4 + x


# --------------------------------------------------------------------------
# Main
# --------------------------------------------------------------------------
if __name__ == "__main__":
    dim, dim_extra = 32, 8
    N, H, W = 2, 16, 16

    key = jax.random.PRNGKey(0)
    kx, kz, kp = jax.random.split(key, 3)
    x = jax.random.normal(kx, (N, dim, H, W), jnp.float32)
    z = jax.random.normal(kz, (N, dim_extra), jnp.float32)
    params = init_params(kp, dim, dim_extra)

    fwd = jax.jit(misins_res_block_forward)
    out = fwd(params, x, z)
    jax.block_until_ready(out)

    assert out.shape == (N, dim, H, W), out.shape
    assert out.dtype == jnp.float32, out.dtype

    ref = _reference_forward(params, x, z)
    max_err = float(jnp.max(jnp.abs(out - ref)))
    assert jnp.allclose(out, ref, atol=5e-2, rtol=5e-2), max_err

    print("KERNEL_OK")
</pallas_src>

<mosaic_0001>
module attributes {stable_mosaic.version = 11 : i64} {
  func.func @kernel(%arg0: i32, %arg1: memref<1x32x384xf32, #tpu.memory_space<vmem>>, %arg2: memref<1x32x384xf32, #tpu.memory_space<vmem>>, %arg3: memref<9x32x32xbf16, #tpu.memory_space<vmem>>, %arg4: memref<40x32xbf16, #tpu.memory_space<vmem>>, %arg5: memref<1x40x1xf32, #tpu.memory_space<vmem>>, %arg6: memref<32x40xbf16, #tpu.memory_space<vmem>>, %arg7: memref<32x1xf32, #tpu.memory_space<vmem>>, %arg8: memref<1x288xf32, #tpu.memory_space<vmem>>, %arg9: memref<1x32x288xf32, #tpu.memory_space<vmem>>) attributes {dimension_semantics = [#tpu.dimension_semantics<parallel>], iteration_bounds = array<i64: 2>, scalar_prefetch = 0 : i64, scratch_operands = 0 : i64, tpu.core_type = #tpu.core_type<tc>, window_params = [{transform_indices = @transform_0, window_bounds = array<i64: 1, 32, 384>}, {transform_indices = @transform_1, window_bounds = array<i64: 1, 32, 384>}, {pipeline_mode = #tpu.pipeline_mode<synchronous>, transform_indices = @transform_2, window_bounds = array<i64: 9, 32, 32>}, {pipeline_mode = #tpu.pipeline_mode<synchronous>, transform_indices = @transform_3, window_bounds = array<i64: 40, 32>}, {transform_indices = @transform_4, window_bounds = array<i64: 1, 40, 1>}, {pipeline_mode = #tpu.pipeline_mode<synchronous>, transform_indices = @transform_5, window_bounds = array<i64: 32, 40>}, {pipeline_mode = #tpu.pipeline_mode<synchronous>, transform_indices = @transform_6, window_bounds = array<i64: 32, 1>}, {pipeline_mode = #tpu.pipeline_mode<synchronous>, transform_indices = @transform_7, window_bounds = array<i64: 1, 288>}, {transform_indices = @transform_8, window_bounds = array<i64: 1, 32, 288>}]} {
    %c0 = arith.constant 0 : index
    %c0_0 = arith.constant 0 : index
    %c0_1 = arith.constant 0 : index
    %0 = vector.load %arg1[%c0, %c0_0, %c0_1] : memref<1x32x384xf32, #tpu.memory_space<vmem>>, vector<1x32x384xf32>
    %1 = vector.shape_cast %0 : vector<1x32x384xf32> to vector<32x384xf32>
    %2 = vector.extract_strided_slice %1 {offsets = [0, 0], sizes = [32, 288], strides = [1, 1]} : vector<32x384xf32> to vector<32x288xf32>
    %3 = arith.truncf %2 : vector<32x288xf32> to vector<32x288xbf16>
    %c0_2 = arith.constant 0 : index
    %c0_3 = arith.constant 0 : index
    %c0_4 = arith.constant 0 : index
    %4 = vector.load %arg3[%c0_2, %c0_3, %c0_4] : memref<9x32x32xbf16, #tpu.memory_space<vmem>>, vector<1x32x32xbf16>
    %5 = vector.shape_cast %4 : vector<1x32x32xbf16> to vector<32x32xbf16>
    %cst = arith.constant dense<0.000000e+00> : vector<32x288xf32>
    %6 = tpu.matmul %5, %3, %cst {dimension_numbers = #tpu.dot_dimension_numbers<[1], [0], [0], [1], [0, 0, 1, 1], [], []>} : vector<32x32xbf16>, vector<32x288xbf16>, vector<32x288xf32> -> vector<32x288xf32>
    %7 = vector.extract_strided_slice %1 {offsets = [0, 1], sizes = [32, 288], strides = [1, 1]} : vector<32x384xf32> to vector<32x288xf32>
    %8 = arith.truncf %7 : vector<32x288xf32> to vector<32x288xbf16>
    %c1 = arith.constant 1 : index
    %c0_5 = arith.constant 0 : index
    %c0_6 = arith.constant 0 : index
    %9 = vector.load %arg3[%c1, %c0_5, %c0_6] : memref<9x32x32xbf16, #tpu.memory_space<vmem>>, vector<1x32x32xbf16>
    %10 = vector.shape_cast %9 : vector<1x32x32xbf16> to vector<32x32xbf16>
    %cst_7 = arith.constant dense<0.000000e+00> : vector<32x288xf32>
    %11 = tpu.matmul %10, %8, %cst_7 {dimension_numbers = #tpu.dot_dimension_numbers<[1], [0], [0], [1], [0, 0, 1, 1], [], []>} : vector<32x32xbf16>, vector<32x288xbf16>, vector<32x288xf32> -> vector<32x288xf32>
    %12 = arith.addf %6, %11 : vector<32x288xf32>
    %13 = vector.extract_strided_slice %1 {offsets = [0, 2], sizes = [32, 288], strides = [1, 1]} : vector<32x384xf32> to vector<32x288xf32>
    %14 = arith.truncf %13 : vector<32x288xf32> to vector<32x288xbf16>
    %c2 = arith.constant 2 : index
    %c0_8 = arith.constant 0 : index
    %c0_9 = arith.constant 0 : index
    %15 = vector.load %arg3[%c2, %c0_8, %c0_9] : memref<9x32x32xbf16, #tpu.memory_space<vmem>>, vector<1x32x32xbf16>
    %16 = vector.shape_cast %15 : vector<1x32x32xbf16> to vector<32x32xbf16>
    %cst_10 = arith.constant dense<0.000000e+00> : vector<32x288xf32>
    %17 = tpu.matmul %16, %14, %cst_10 {dimension_numbers = #tpu.dot_dimension_numbers<[1], [0], [0], [1], [0, 0, 1, 1], [], []>} : vector<32x32xbf16>, vector<32x288xbf16>, vector<32x288xf32> -> vector<32x288xf32>
    %18 = arith.addf %12, %17 : vector<32x288xf32>
    %19 = vector.extract_strided_slice %1 {offsets = [0, 18], sizes = [32, 288], strides = [1, 1]} : vector<32x384xf32> to vector<32x288xf32>
    %20 = arith.truncf %19 : vector<32x288xf32> to vector<32x288xbf16>
    %c3 = arith.constant 3 : index
    %c0_11 = arith.constant 0 : index
    %c0_12 = arith.constant 0 : index
    %21 = vector.load %arg3[%c3, %c0_11, %c0_12] : memref<9x32x32xbf16, #tpu.memory_space<vmem>>, vector<1x32x32xbf16>
    %22 = vector.shape_cast %21 : vector<1x32x32xbf16> to vector<32x32xbf16>
    %cst_13 = arith.constant dense<0.000000e+00> : vector<32x288xf32>
    %23 = tpu.matmul %22, %20, %cst_13 {dimension_numbers = #tpu.dot_dimension_numbers<[1], [0], [0], [1], [0, 0, 1, 1], [], []>} : vector<32x32xbf16>, vector<32x288xbf16>, vector<32x288xf32> -> vector<32x288xf32>
    %24 = arith.addf %18, %23 : vector<32x288xf32>
    %25 = vector.extract_strided_slice %1 {offsets = [0, 19], sizes = [32, 288], strides = [1, 1]} : vector<32x384xf32> to vector<32x288xf32>
    %26 = arith.truncf %25 : vector<32x288xf32> to vector<32x288xbf16>
    %c4 = arith.constant 4 : index
    %c0_14 = arith.constant 0 : index
    %c0_15 = arith.constant 0 : index
    %27 = vector.load %arg3[%c4, %c0_14, %c0_15] : memref<9x32x32xbf16, #tpu.memory_space<vmem>>, vector<1x32x32xbf16>
    %28 = vector.shape_cast %27 : vector<1x32x32xbf16> to vector<32x32xbf16>
    %cst_16 = arith.constant dense<0.000000e+00> : vector<32x288xf32>
    %29 = tpu.matmul %28, %26, %cst_16 {dimension_numbers = #tpu.dot_dimension_numbers<[1], [0], [0], [1], [0, 0, 1, 1], [], []>} : vector<32x32xbf16>, vector<32x288xbf16>, vector<32x288xf32> -> vector<32x288xf32>
    %30 = arith.addf %24, %29 : vector<32x288xf32>
    %31 = vector.extract_strided_slice %1 {offsets = [0, 20], sizes = [32, 288], strides = [1, 1]} : vector<32x384xf32> to vector<32x288xf32>
    %32 = arith.truncf %31 : vector<32x288xf32> to vector<32x288xbf16>
    %c5 = arith.constant 5 : index
    %c0_17 = arith.constant 0 : index
    %c0_18 = arith.constant 0 : index
    %33 = vector.load %arg3[%c5, %c0_17, %c0_18] : memref<9x32x32xbf16, #tpu.memory_space<vmem>>, vector<1x32x32xbf16>
    %34 = vector.shape_cast %33 : vector<1x32x32xbf16> to vector<32x32xbf16>
    %cst_19 = arith.constant dense<0.000000e+00> : vector<32x288xf32>
    %35 = tpu.matmul %34, %32, %cst_19 {dimension_numbers = #tpu.dot_dimension_numbers<[1], [0], [0], [1], [0, 0, 1, 1], [], []>} : vector<32x32xbf16>, vector<32x288xbf16>, vector<32x288xf32> -> vector<32x288xf32>
    %36 = arith.addf %30, %35 : vector<32x288xf32>
    %37 = vector.extract_strided_slice %1 {offsets = [0, 36], sizes = [32, 288], strides = [1, 1]} : vector<32x384xf32> to vector<32x288xf32>
    %38 = arith.truncf %37 : vector<32x288xf32> to vector<32x288xbf16>
    %c6 = arith.constant 6 : index
    %c0_20 = arith.constant 0 : index
    %c0_21 = arith.constant 0 : index
    %39 = vector.load %arg3[%c6, %c0_20, %c0_21] : memref<9x32x32xbf16, #tpu.memory_space<vmem>>, vector<1x32x32xbf16>
    %40 = vector.shape_cast %39 : vector<1x32x32xbf16> to vector<32x32xbf16>
    %cst_22 = arith.constant dense<0.000000e+00> : vector<32x288xf32>
    %41 = tpu.matmul %40, %38, %cst_22 {dimension_numbers = #tpu.dot_dimension_numbers<[1], [0], [0], [1], [0, 0, 1, 1], [], []>} : vector<32x32xbf16>, vector<32x288xbf16>, vector<32x288xf32> -> vector<32x288xf32>
    %42 = arith.addf %36, %41 : vector<32x288xf32>
    %43 = vector.extract_strided_slice %1 {offsets = [0, 37], sizes = [32, 288], strides = [1, 1]} : vector<32x384xf32> to vector<32x288xf32>
    %44 = arith.truncf %43 : vector<32x288xf32> to vector<32x288xbf16>
    %c7 = arith.constant 7 : index
    %c0_23 = arith.constant 0 : index
    %c0_24 = arith.constant 0 : index
    %45 = vector.load %arg3[%c7, %c0_23, %c0_24] : memref<9x32x32xbf16, #tpu.memory_space<vmem>>, vector<1x32x32xbf16>
    %46 = vector.shape_cast %45 : vector<1x32x32xbf16> to vector<32x32xbf16>
    %cst_25 = arith.constant dense<0.000000e+00> : vector<32x288xf32>
    %47 = tpu.matmul %46, %44, %cst_25 {dimension_numbers = #tpu.dot_dimension_numbers<[1], [0], [0], [1], [0, 0, 1, 1], [], []>} : vector<32x32xbf16>, vector<32x288xbf16>, vector<32x288xf32> -> vector<32x288xf32>
    %48 = arith.addf %42, %47 : vector<32x288xf32>
    %49 = vector.extract_strided_slice %1 {offsets = [0, 38], sizes = [32, 288], strides = [1, 1]} : vector<32x384xf32> to vector<32x288xf32>
    %50 = arith.truncf %49 : vector<32x288xf32> to vector<32x288xbf16>
    %c8 = arith.constant 8 : index
    %c0_26 = arith.constant 0 : index
    %c0_27 = arith.constant 0 : index
    %51 = vector.load %arg3[%c8, %c0_26, %c0_27] : memref<9x32x32xbf16, #tpu.memory_space<vmem>>, vector<1x32x32xbf16>
    %52 = vector.shape_cast %51 : vector<1x32x32xbf16> to vector<32x32xbf16>
    %cst_28 = arith.constant dense<0.000000e+00> : vector<32x288xf32>
    %53 = tpu.matmul %52, %50, %cst_28 {dimension_numbers = #tpu.dot_dimension_numbers<[1], [0], [0], [1], [0, 0, 1, 1], [], []>} : vector<32x32xbf16>, vector<32x288xbf16>, vector<32x288xf32> -> vector<32x288xf32>
    %54 = arith.addf %48, %53 : vector<32x288xf32>
    %c0_29 = arith.constant 0 : index
    %c0_30 = arith.constant 0 : index
    %55 = vector.load %arg8[%c0_29, %c0_30] : memref<1x288xf32, #tpu.memory_space<vmem>>, vector<1x288xf32>
    %56 = vector.broadcast %55 : vector<1x288xf32> to vector<32x288xf32>
    %57 = arith.mulf %54, %56 : vector<32x288xf32>
    %cst_31 = arith.constant dense<0.000000e+00> : vector<32xf32>
    %58 = vector.multi_reduction <add>, %57, %cst_31 [1] : vector<32x288xf32> to vector<32xf32>
    %59 = vector.shape_cast %58 : vector<32xf32> to vector<32x1xf32>
    %cst_32 = arith.constant 3.906250e-03 : f32
    %60 = vector.broadcast %cst_32 : f32 to vector<32x1xf32>
    %61 = arith.mulf %59, %60 : vector<32x1xf32>
    %62 = vector.broadcast %61 : vector<32x1xf32> to vector<32x288xf32>
    %63 = arith.subf %54, %62 : vector<32x288xf32>
    %64 = vector.broadcast %55 : vector<1x288xf32> to vector<32x288xf32>
    %65 = arith.mulf %63, %64 : vector<32x288xf32>
    %66 = arith.mulf %65, %65 : vector<32x288xf32>
    %cst_33 = arith.constant dense<0.000000e+00> : vector<32xf32>
    %67 = vector.multi_reduction <add>, %66, %cst_33 [1] : vector<32x288xf32> to vector<32xf32>
    %68 = vector.shape_cast %67 : vector<32xf32> to vector<32x1xf32>
    %cst_34 = arith.constant 3.906250e-03 : f32
    %69 = vector.broadcast %cst_34 : f32 to vector<32x1xf32>
    %70 = arith.mulf %68, %69 : vector<32x1xf32>
    %71 = vector.broadcast %61 : vector<32x1xf32> to vector<32x288xf32>
    %72 = arith.subf %54, %71 : vector<32x288xf32>
    %cst_35 = arith.constant 9.99999974E-6 : f32
    %73 = vector.broadcast %cst_35 : f32 to vector<32x1xf32>
    %74 = arith.addf %70, %73 : vector<32x1xf32>
    %75 = math.rsqrt %74 : vector<32x1xf32>
    %76 = vector.broadcast %75 : vector<32x1xf32> to vector<32x288xf32>
    %77 = arith.mulf %72, %76 : vector<32x288xf32>
    %c0_36 = arith.constant 0 : index
    %c0_37 = arith.constant 0 : index
    %78 = vector.load %arg4[%c0_36, %c0_37] : memref<40x32xbf16, #tpu.memory_space<vmem>>, vector<40x32xbf16>
    %79 = arith.truncf %77 : vector<32x288xf32> to vector<32x288xbf16>
    %cst_38 = arith.constant dense<0.000000e+00> : vector<40x288xf32>
    %80 = tpu.matmul %78, %79, %cst_38 {dimension_numbers = #tpu.dot_dimension_numbers<[1], [0], [0], [1], [0, 0, 1, 1], [], []>} : vector<40x32xbf16>, vector<32x288xbf16>, vector<40x288xf32> -> vector<40x288xf32>
    %c0_39 = arith.constant 0 : index
    %c0_40 = arith.constant 0 : index
    %c0_41 = arith.constant 0 : index
    %81 = vector.load %arg5[%c0_39, %c0_40, %c0_41] : memref<1x40x1xf32, #tpu.memory_space<vmem>>, vector<1x40x1xf32>
    %82 = vector.shape_cast %81 : vector<1x40x1xf32> to vector<40x1xf32>
    %83 = vector.broadcast %82 : vector<40x1xf32> to vector<40x288xf32>
    %84 = arith.addf %80, %83 : vector<40x288xf32>
    %cst_42 = arith.constant 0.000000e+00 : f32
    %85 = vector.broadcast %cst_42 : f32 to vector<40x288xf32>
    %86 = arith.maximumf %84, %85 : vector<40x288xf32>
    %c0_43 = arith.constant 0 : index
    %c0_44 = arith.constant 0 : index
    %87 = vector.load %arg6[%c0_43, %c0_44] : memref<32x40xbf16, #tpu.memory_space<vmem>>, vector<32x40xbf16>
    %88 = arith.truncf %86 : vector<40x288xf32> to vector<40x288xbf16>
    %cst_45 = arith.constant dense<0.000000e+00> : vector<32x288xf32>
    %89 = tpu.matmul %87, %88, %cst_45 {dimension_numbers = #tpu.dot_dimension_numbers<[1], [0], [0], [1], [0, 0, 1, 1], [], []>} : vector<32x40xbf16>, vector<40x288xbf16>, vector<32x288xf32> -> vector<32x288xf32>
    %c0_46 = arith.constant 0 : index
    %c0_47 = arith.constant 0 : index
    %90 = vector.load %arg7[%c0_46, %c0_47] : memref<32x1xf32, #tpu.memory_space<vmem>>, vector<32x1xf32>
    %91 = vector.broadcast %90 : vector<32x1xf32> to vector<32x288xf32>
    %92 = arith.addf %89, %91 : vector<32x288xf32>
    %cst_48 = arith.constant 0.000000e+00 : f32
    %93 = vector.broadcast %cst_48 : f32 to vector<32x288xf32>
    %94 = arith.maximumf %92, %93 : vector<32x288xf32>
    %c0_49 = arith.constant 0 : index
    %c0_50 = arith.constant 0 : index
    %c0_51 = arith.constant 0 : index
    %95 = vector.load %arg2[%c0_49, %c0_50, %c0_51] : memref<1x32x384xf32, #tpu.memory_space<vmem>>, vector<1x32x384xf32>
    %96 = vector.shape_cast %95 : vector<1x32x384xf32> to vector<32x384xf32>
    %97 = vector.extract_strided_slice %96 {offsets = [0, 19], sizes = [32, 288], strides = [1, 1]} : vector<32x384xf32> to vector<32x288xf32>
    %98 = arith.addf %94, %97 : vector<32x288xf32>
    %c0_52 = arith.constant 0 : index
    %c0_53 = arith.constant 0 : index
    %c0_54 = arith.constant 0 : index
    %99 = vector.load %arg9[%c0_52, %c0_53, %c0_54] : memref<1x32x288xf32, #tpu.memory_space<vmem>>, vector<1x32x288xf32>
    %100 = vector.shape_cast %99 : vector<1x32x288xf32> to vector<32x288xf32>
    %101 = vector.shape_cast %98 : vector<32x288xf32> to vector<1x32x288xf32>
    tpu.vector_store %arg9[%c0_52, %c0_53, %c0_54], %101 {strides = array<i32>} : memref<1x32x288xf32, #tpu.memory_space<vmem>>, vector<1x32x288xf32>,
    return
  }
  func.func @transform_0(%arg0: i32) -> (i32, i32, i32) {
    %c0_i32 = arith.constant 0 : i32
    %c0_i32_0 = arith.constant 0 : i32
    %c0_i32_1 = arith.constant 0 : i32
    return %arg0, %c0_i32, %c0_i32_0 : i32, i32, i32
  }
  func.func @transform_1(%arg0: i32) -> (i32, i32, i32) {
    %c0_i32 = arith.constant 0 : i32
    %c0_i32_0 = arith.constant 0 : i32
    %c0_i32_1 = arith.constant 0 : i32
    return %arg0, %c0_i32, %c0_i32_0 : i32, i32, i32
  }
  func.func @transform_2(%arg0: i32) -> (i32, i32, i32) {
    %c0_i32 = arith.constant 0 : i32
    %c0_i32_0 = arith.constant 0 : i32
    %c0_i32_1 = arith.constant 0 : i32
    %c0_i32_2 = arith.constant 0 : i32
    return %c0_i32, %c0_i32_0, %c0_i32_1 : i32, i32, i32
  }
  func.func @transform_3(%arg0: i32) -> (i32, i32) {
    %c0_i32 = arith.constant 0 : i32
    %c0_i32_0 = arith.constant 0 : i32
    %c0_i32_1 = arith.constant 0 : i32
    return %c0_i32, %c0_i32_0 : i32, i32
  }
  func.func @transform_4(%arg0: i32) -> (i32, i32, i32) {
    %c0_i32 = arith.constant 0 : i32
    %c0_i32_0 = arith.constant 0 : i32
    %c0_i32_1 = arith.constant 0 : i32
    return %arg0, %c0_i32, %c0_i32_0 : i32, i32, i32
  }
  func.func @transform_5(%arg0: i32) -> (i32, i32) {
    %c0_i32 = arith.constant 0 : i32
    %c0_i32_0 = arith.constant 0 : i32
    %c0_i32_1 = arith.constant 0 : i32
    return %c0_i32, %c0_i32_0 : i32, i32
  }
  func.func @transform_6(%arg0: i32) -> (i32, i32) {
    %c0_i32 = arith.constant 0 : i32
    %c0_i32_0 = arith.constant 0 : i32
    %c0_i32_1 = arith.constant 0 : i32
    return %c0_i32, %c0_i32_0 : i32, i32
  }
  func.func @transform_7(%arg0: i32) -> (i32, i32) {
    %c0_i32 = arith.constant 0 : i32
    %c0_i32_0 = arith.constant 0 : i32
    %c0_i32_1 = arith.constant 0 : i32
    return %c0_i32, %c0_i32_0 : i32, i32
  }
  func.func @transform_8(%arg0: i32) -> (i32, i32, i32) {
    %c0_i32 = arith.constant 0 : i32
    %c0_i32_0 = arith.constant 0 : i32
    %c0_i32_1 = arith.constant 0 : i32
    return %arg0, %c0_i32, %c0_i32_0 : i32, i32, i32
  }
}

module attributes {stable_mosaic.version = 11 : i64} {
  func.func @kernel(%arg0: i32, %arg1: memref<1x32x384xf32, #tpu.memory_space<vmem>>, %arg2: memref<9x32x32xbf16, #tpu.memory_space<vmem>>, %arg3: memref<40x32xbf16, #tpu.memory_space<vmem>>, %arg4: memref<1x40x1xf32, #tpu.memory_space<vmem>>, %arg5: memref<32x40xbf16, #tpu.memory_space<vmem>>, %arg6: memref<32x1xf32, #tpu.memory_space<vmem>>, %arg7: memref<1x288xf32, #tpu.memory_space<vmem>>, %arg8: memref<1x32x288xf32, #tpu.memory_space<vmem>>) attributes {dimension_semantics = [#tpu.dimension_semantics<parallel>], iteration_bounds = array<i64: 2>, scalar_prefetch = 0 : i64, scratch_operands = 0 : i64, tpu.core_type = #tpu.core_type<tc>, window_params = [{transform_indices = @transform_0, window_bounds = array<i64: 1, 32, 384>}, {pipeline_mode = #tpu.pipeline_mode<synchronous>, transform_indices = @transform_1, window_bounds = array<i64: 9, 32, 32>}, {pipeline_mode = #tpu.pipeline_mode<synchronous>, transform_indices = @transform_2, window_bounds = array<i64: 40, 32>}, {transform_indices = @transform_3, window_bounds = array<i64: 1, 40, 1>}, {pipeline_mode = #tpu.pipeline_mode<synchronous>, transform_indices = @transform_4, window_bounds = array<i64: 32, 40>}, {pipeline_mode = #tpu.pipeline_mode<synchronous>, transform_indices = @transform_5, window_bounds = array<i64: 32, 1>}, {pipeline_mode = #tpu.pipeline_mode<synchronous>, transform_indices = @transform_6, window_bounds = array<i64: 1, 288>}, {transform_indices = @transform_7, window_bounds = array<i64: 1, 32, 288>}]} {
    %c0 = arith.constant 0 : index
    %c0_0 = arith.constant 0 : index
    %c0_1 = arith.constant 0 : index
    %0 = vector.load %arg1[%c0, %c0_0, %c0_1] : memref<1x32x384xf32, #tpu.memory_space<vmem>>, vector<1x32x384xf32>
    %1 = vector.shape_cast %0 : vector<1x32x384xf32> to vector<32x384xf32>
    %2 = vector.extract_strided_slice %1 {offsets = [0, 0], sizes = [32, 288], strides = [1, 1]} : vector<32x384xf32> to vector<32x288xf32>
    %3 = arith.truncf %2 : vector<32x288xf32> to vector<32x288xbf16>
    %c0_2 = arith.constant 0 : index
    %c0_3 = arith.constant 0 : index
    %c0_4 = arith.constant 0 : index
    %4 = vector.load %arg2[%c0_2, %c0_3, %c0_4] : memref<9x32x32xbf16, #tpu.memory_space<vmem>>, vector<1x32x32xbf16>
    %5 = vector.shape_cast %4 : vector<1x32x32xbf16> to vector<32x32xbf16>
    %cst = arith.constant dense<0.000000e+00> : vector<32x288xf32>
    %6 = tpu.matmul %5, %3, %cst {dimension_numbers = #tpu.dot_dimension_numbers<[1], [0], [0], [1], [0, 0, 1, 1], [], []>} : vector<32x32xbf16>, vector<32x288xbf16>, vector<32x288xf32> -> vector<32x288xf32>
    %7 = vector.extract_strided_slice %1 {offsets = [0, 1], sizes = [32, 288], strides = [1, 1]} : vector<32x384xf32> to vector<32x288xf32>
    %8 = arith.truncf %7 : vector<32x288xf32> to vector<32x288xbf16>
    %c1 = arith.constant 1 : index
    %c0_5 = arith.constant 0 : index
    %c0_6 = arith.constant 0 : index
    %9 = vector.load %arg2[%c1, %c0_5, %c0_6] : memref<9x32x32xbf16, #tpu.memory_space<vmem>>, vector<1x32x32xbf16>
    %10 = vector.shape_cast %9 : vector<1x32x32xbf16> to vector<32x32xbf16>
    %cst_7 = arith.constant dense<0.000000e+00> : vector<32x288xf32>
    %11 = tpu.matmul %10, %8, %cst_7 {dimension_numbers = #tpu.dot_dimension_numbers<[1], [0], [0], [1], [0, 0, 1, 1], [], []>} : vector<32x32xbf16>, vector<32x288xbf16>, vector<32x288xf32> -> vector<32x288xf32>
    %12 = arith.addf %6, %11 : vector<32x288xf32>
    %13 = vector.extract_strided_slice %1 {offsets = [0, 2], sizes = [32, 288], strides = [1, 1]} : vector<32x384xf32> to vector<32x288xf32>
    %14 = arith.truncf %13 : vector<32x288xf32> to vector<32x288xbf16>
    %c2 = arith.constant 2 : index
    %c0_8 = arith.constant 0 : index
    %c0_9 = arith.constant 0 : index
    %15 = vector.load %arg2[%c2, %c0_8, %c0_9] : memref<9x32x32xbf16, #tpu.memory_space<vmem>>, vector<1x32x32xbf16>
    %16 = vector.shape_cast %15 : vector<1x32x32xbf16> to vector<32x32xbf16>
    %cst_10 = arith.constant dense<0.000000e+00> : vector<32x288xf32>
    %17 = tpu.matmul %16, %14, %cst_10 {dimension_numbers = #tpu.dot_dimension_numbers<[1], [0], [0], [1], [0, 0, 1, 1], [], []>} : vector<32x32xbf16>, vector<32x288xbf16>, vector<32x288xf32> -> vector<32x288xf32>
    %18 = arith.addf %12, %17 : vector<32x288xf32>
    %19 = vector.extract_strided_slice %1 {offsets = [0, 18], sizes = [32, 288], strides = [1, 1]} : vector<32x384xf32> to vector<32x288xf32>
    %20 = arith.truncf %19 : vector<32x288xf32> to vector<32x288xbf16>
    %c3 = arith.constant 3 : index
    %c0_11 = arith.constant 0 : index
    %c0_12 = arith.constant 0 : index
    %21 = vector.load %arg2[%c3, %c0_11, %c0_12] : memref<9x32x32xbf16, #tpu.memory_space<vmem>>, vector<1x32x32xbf16>
    %22 = vector.shape_cast %21 : vector<1x32x32xbf16> to vector<32x32xbf16>
    %cst_13 = arith.constant dense<0.000000e+00> : vector<32x288xf32>
    %23 = tpu.matmul %22, %20, %cst_13 {dimension_numbers = #tpu.dot_dimension_numbers<[1], [0], [0], [1], [0, 0, 1, 1], [], []>} : vector<32x32xbf16>, vector<32x288xbf16>, vector<32x288xf32> -> vector<32x288xf32>
    %24 = arith.addf %18, %23 : vector<32x288xf32>
    %25 = vector.extract_strided_slice %1 {offsets = [0, 19], sizes = [32, 288], strides = [1, 1]} : vector<32x384xf32> to vector<32x288xf32>
    %26 = arith.truncf %25 : vector<32x288xf32> to vector<32x288xbf16>
    %c4 = arith.constant 4 : index
    %c0_14 = arith.constant 0 : index
    %c0_15 = arith.constant 0 : index
    %27 = vector.load %arg2[%c4, %c0_14, %c0_15] : memref<9x32x32xbf16, #tpu.memory_space<vmem>>, vector<1x32x32xbf16>
    %28 = vector.shape_cast %27 : vector<1x32x32xbf16> to vector<32x32xbf16>
    %cst_16 = arith.constant dense<0.000000e+00> : vector<32x288xf32>
    %29 = tpu.matmul %28, %26, %cst_16 {dimension_numbers = #tpu.dot_dimension_numbers<[1], [0], [0], [1], [0, 0, 1, 1], [], []>} : vector<32x32xbf16>, vector<32x288xbf16>, vector<32x288xf32> -> vector<32x288xf32>
    %30 = arith.addf %24, %29 : vector<32x288xf32>
    %31 = vector.extract_strided_slice %1 {offsets = [0, 20], sizes = [32, 288], strides = [1, 1]} : vector<32x384xf32> to vector<32x288xf32>
    %32 = arith.truncf %31 : vector<32x288xf32> to vector<32x288xbf16>
    %c5 = arith.constant 5 : index
    %c0_17 = arith.constant 0 : index
    %c0_18 = arith.constant 0 : index
    %33 = vector.load %arg2[%c5, %c0_17, %c0_18] : memref<9x32x32xbf16, #tpu.memory_space<vmem>>, vector<1x32x32xbf16>
    %34 = vector.shape_cast %33 : vector<1x32x32xbf16> to vector<32x32xbf16>
    %cst_19 = arith.constant dense<0.000000e+00> : vector<32x288xf32>
    %35 = tpu.matmul %34, %32, %cst_19 {dimension_numbers = #tpu.dot_dimension_numbers<[1], [0], [0], [1], [0, 0, 1, 1], [], []>} : vector<32x32xbf16>, vector<32x288xbf16>, vector<32x288xf32> -> vector<32x288xf32>
    %36 = arith.addf %30, %35 : vector<32x288xf32>
    %37 = vector.extract_strided_slice %1 {offsets = [0, 36], sizes = [32, 288], strides = [1, 1]} : vector<32x384xf32> to vector<32x288xf32>
    %38 = arith.truncf %37 : vector<32x288xf32> to vector<32x288xbf16>
    %c6 = arith.constant 6 : index
    %c0_20 = arith.constant 0 : index
    %c0_21 = arith.constant 0 : index
    %39 = vector.load %arg2[%c6, %c0_20, %c0_21] : memref<9x32x32xbf16, #tpu.memory_space<vmem>>, vector<1x32x32xbf16>
    %40 = vector.shape_cast %39 : vector<1x32x32xbf16> to vector<32x32xbf16>
    %cst_22 = arith.constant dense<0.000000e+00> : vector<32x288xf32>
    %41 = tpu.matmul %40, %38, %cst_22 {dimension_numbers = #tpu.dot_dimension_numbers<[1], [0], [0], [1], [0, 0, 1, 1], [], []>} : vector<32x32xbf16>, vector<32x288xbf16>, vector<32x288xf32> -> vector<32x288xf32>
    %42 = arith.addf %36, %41 : vector<32x288xf32>
    %43 = vector.extract_strided_slice %1 {offsets = [0, 37], sizes = [32, 288], strides = [1, 1]} : vector<32x384xf32> to vector<32x288xf32>
    %44 = arith.truncf %43 : vector<32x288xf32> to vector<32x288xbf16>
    %c7 = arith.constant 7 : index
    %c0_23 = arith.constant 0 : index
    %c0_24 = arith.constant 0 : index
    %45 = vector.load %arg2[%c7, %c0_23, %c0_24] : memref<9x32x32xbf16, #tpu.memory_space<vmem>>, vector<1x32x32xbf16>
    %46 = vector.shape_cast %45 : vector<1x32x32xbf16> to vector<32x32xbf16>
    %cst_25 = arith.constant dense<0.000000e+00> : vector<32x288xf32>
    %47 = tpu.matmul %46, %44, %cst_25 {dimension_numbers = #tpu.dot_dimension_numbers<[1], [0], [0], [1], [0, 0, 1, 1], [], []>} : vector<32x32xbf16>, vector<32x288xbf16>, vector<32x288xf32> -> vector<32x288xf32>
    %48 = arith.addf %42, %47 : vector<32x288xf32>
    %49 = vector.extract_strided_slice %1 {offsets = [0, 38], sizes = [32, 288], strides = [1, 1]} : vector<32x384xf32> to vector<32x288xf32>
    %50 = arith.truncf %49 : vector<32x288xf32> to vector<32x288xbf16>
    %c8 = arith.constant 8 : index
    %c0_26 = arith.constant 0 : index
    %c0_27 = arith.constant 0 : index
    %51 = vector.load %arg2[%c8, %c0_26, %c0_27] : memref<9x32x32xbf16, #tpu.memory_space<vmem>>, vector<1x32x32xbf16>
    %52 = vector.shape_cast %51 : vector<1x32x32xbf16> to vector<32x32xbf16>
    %cst_28 = arith.constant dense<0.000000e+00> : vector<32x288xf32>
    %53 = tpu.matmul %52, %50, %cst_28 {dimension_numbers = #tpu.dot_dimension_numbers<[1], [0], [0], [1], [0, 0, 1, 1], [], []>} : vector<32x32xbf16>, vector<32x288xbf16>, vector<32x288xf32> -> vector<32x288xf32>
    %54 = arith.addf %48, %53 : vector<32x288xf32>
    %c0_29 = arith.constant 0 : index
    %c0_30 = arith.constant 0 : index
    %55 = vector.load %arg7[%c0_29, %c0_30] : memref<1x288xf32, #tpu.memory_space<vmem>>, vector<1x288xf32>
    %56 = vector.broadcast %55 : vector<1x288xf32> to vector<32x288xf32>
    %57 = arith.mulf %54, %56 : vector<32x288xf32>
    %cst_31 = arith.constant dense<0.000000e+00> : vector<32xf32>
    %58 = vector.multi_reduction <add>, %57, %cst_31 [1] : vector<32x288xf32> to vector<32xf32>
    %59 = vector.shape_cast %58 : vector<32xf32> to vector<32x1xf32>
    %cst_32 = arith.constant 3.906250e-03 : f32
    %60 = vector.broadcast %cst_32 : f32 to vector<32x1xf32>
    %61 = arith.mulf %59, %60 : vector<32x1xf32>
    %62 = vector.broadcast %61 : vector<32x1xf32> to vector<32x288xf32>
    %63 = arith.subf %54, %62 : vector<32x288xf32>
    %64 = vector.broadcast %55 : vector<1x288xf32> to vector<32x288xf32>
    %65 = arith.mulf %63, %64 : vector<32x288xf32>
    %66 = arith.mulf %65, %65 : vector<32x288xf32>
    %cst_33 = arith.constant dense<0.000000e+00> : vector<32xf32>
    %67 = vector.multi_reduction <add>, %66, %cst_33 [1] : vector<32x288xf32> to vector<32xf32>
    %68 = vector.shape_cast %67 : vector<32xf32> to vector<32x1xf32>
    %cst_34 = arith.constant 3.906250e-03 : f32
    %69 = vector.broadcast %cst_34 : f32 to vector<32x1xf32>
    %70 = arith.mulf %68, %69 : vector<32x1xf32>
    %71 = vector.broadcast %61 : vector<32x1xf32> to vector<32x288xf32>
    %72 = arith.subf %54, %71 : vector<32x288xf32>
    %cst_35 = arith.constant 9.99999974E-6 : f32
    %73 = vector.broadcast %cst_35 : f32 to vector<32x1xf32>
    %74 = arith.addf %70, %73 : vector<32x1xf32>
    %75 = math.rsqrt %74 : vector<32x1xf32>
    %76 = vector.broadcast %75 : vector<32x1xf32> to vector<32x288xf32>
    %77 = arith.mulf %72, %76 : vector<32x288xf32>
    %c0_36 = arith.constant 0 : index
    %c0_37 = arith.constant 0 : index
    %78 = vector.load %arg3[%c0_36, %c0_37] : memref<40x32xbf16, #tpu.memory_space<vmem>>, vector<40x32xbf16>
    %79 = arith.truncf %77 : vector<32x288xf32> to vector<32x288xbf16>
    %cst_38 = arith.constant dense<0.000000e+00> : vector<40x288xf32>
    %80 = tpu.matmul %78, %79, %cst_38 {dimension_numbers = #tpu.dot_dimension_numbers<[1], [0], [0], [1], [0, 0, 1, 1], [], []>} : vector<40x32xbf16>, vector<32x288xbf16>, vector<40x288xf32> -> vector<40x288xf32>
    %c0_39 = arith.constant 0 : index
    %c0_40 = arith.constant 0 : index
    %c0_41 = arith.constant 0 : index
    %81 = vector.load %arg4[%c0_39, %c0_40, %c0_41] : memref<1x40x1xf32, #tpu.memory_space<vmem>>, vector<1x40x1xf32>
    %82 = vector.shape_cast %81 : vector<1x40x1xf32> to vector<40x1xf32>
    %83 = vector.broadcast %82 : vector<40x1xf32> to vector<40x288xf32>
    %84 = arith.addf %80, %83 : vector<40x288xf32>
    %cst_42 = arith.constant 0.000000e+00 : f32
    %85 = vector.broadcast %cst_42 : f32 to vector<40x288xf32>
    %86 = arith.maximumf %84, %85 : vector<40x288xf32>
    %c0_43 = arith.constant 0 : index
    %c0_44 = arith.constant 0 : index
    %87 = vector.load %arg5[%c0_43, %c0_44] : memref<32x40xbf16, #tpu.memory_space<vmem>>, vector<32x40xbf16>
    %88 = arith.truncf %86 : vector<40x288xf32> to vector<40x288xbf16>
    %cst_45 = arith.constant dense<0.000000e+00> : vector<32x288xf32>
    %89 = tpu.matmul %87, %88, %cst_45 {dimension_numbers = #tpu.dot_dimension_numbers<[1], [0], [0], [1], [0, 0, 1, 1], [], []>} : vector<32x40xbf16>, vector<40x288xbf16>, vector<32x288xf32> -> vector<32x288xf32>
    %c0_46 = arith.constant 0 : index
    %c0_47 = arith.constant 0 : index
    %90 = vector.load %arg6[%c0_46, %c0_47] : memref<32x1xf32, #tpu.memory_space<vmem>>, vector<32x1xf32>
    %91 = vector.broadcast %90 : vector<32x1xf32> to vector<32x288xf32>
    %92 = arith.addf %89, %91 : vector<32x288xf32>
    %cst_48 = arith.constant 0.000000e+00 : f32
    %93 = vector.broadcast %cst_48 : f32 to vector<32x288xf32>
    %94 = arith.maximumf %92, %93 : vector<32x288xf32>
    %c0_49 = arith.constant 0 : index
    %c0_50 = arith.constant 0 : index
    %c0_51 = arith.constant 0 : index
    %95 = vector.load %arg8[%c0_49, %c0_50, %c0_51] : memref<1x32x288xf32, #tpu.memory_space<vmem>>, vector<1x32x288xf32>
    %96 = vector.shape_cast %95 : vector<1x32x288xf32> to vector<32x288xf32>
    %97 = vector.shape_cast %94 : vector<32x288xf32> to vector<1x32x288xf32>
    tpu.vector_store %arg8[%c0_49, %c0_50, %c0_51], %97 {strides = array<i32>} : memref<1x32x288xf32, #tpu.memory_space<vmem>>, vector<1x32x288xf32>,
    return
  }
  func.func @transform_0(%arg0: i32) -> (i32, i32, i32) {
    %c0_i32 = arith.constant 0 : i32
    %c0_i32_0 = arith.constant 0 : i32
    %c0_i32_1 = arith.constant 0 : i32
    return %arg0, %c0_i32, %c0_i32_0 : i32, i32, i32
  }
  func.func @transform_1(%arg0: i32) -> (i32, i32, i32) {
    %c0_i32 = arith.constant 0 : i32
    %c0_i32_0 = arith.constant 0 : i32
    %c0_i32_1 = arith.constant 0 : i32
    %c0_i32_2 = arith.constant 0 : i32
    return %c0_i32, %c0_i32_0, %c0_i32_1 : i32, i32, i32
  }
  func.func @transform_2(%arg0: i32) -> (i32, i32) {
    %c0_i32 = arith.constant 0 : i32
    %c0_i32_0 = arith.constant 0 : i32
    %c0_i32_1 = arith.constant 0 : i32
    return %c0_i32, %c0_i32_0 : i32, i32
  }
  func.func @transform_3(%arg0: i32) -> (i32, i32, i32) {
    %c0_i32 = arith.constant 0 : i32
    %c0_i32_0 = arith.constant 0 : i32
    %c0_i32_1 = arith.constant 0 : i32
    return %arg0, %c0_i32, %c0_i32_0 : i32, i32, i32
  }
  func.func @transform_4(%arg0: i32) -> (i32, i32) {
    %c0_i32 = arith.constant 0 : i32
    %c0_i32_0 = arith.constant 0 : i32
    %c0_i32_1 = arith.constant 0 : i32
    return %c0_i32, %c0_i32_0 : i32, i32
  }
  func.func @transform_5(%arg0: i32) -> (i32, i32) {
    %c0_i32 = arith.constant 0 : i32
    %c0_i32_0 = arith.constant 0 : i32
    %c0_i32_1 = arith.constant 0 : i32
    return %c0_i32, %c0_i32_0 : i32, i32
  }
  func.func @transform_6(%arg0: i32) -> (i32, i32) {
    %c0_i32 = arith.constant 0 : i32
    %c0_i32_0 = arith.constant 0 : i32
    %c0_i32_1 = arith.constant 0 : i32
    return %c0_i32, %c0_i32_0 : i32, i32
  }
  func.func @transform_7(%arg0: i32) -> (i32, i32, i32) {
    %c0_i32 = arith.constant 0 : i32
    %c0_i32_0 = arith.constant 0 : i32
    %c0_i32_1 = arith.constant 0 : i32
    return %arg0, %c0_i32, %c0_i32_0 : i32, i32, i32
  }
}

</mosaic_0001>

<bundles_post_ra>
// kernel: misins_res_block_forward.3
= control target key start
LH: loop header
LB: loop body
LE: loop exit
PB: predicated region body
PF: predicated region fallthrough
CT: control target
= control target key end

     0   :  { %s2800_s27 = smov 0   ;;  %s3502_s0 = inlined_call_operand.vmem [shape: f32[2,32,384], index: 0, kind: input, shape index: {}]   ;;  %s3503_s1 = inlined_call_operand.vmem [shape: f32[2,32,384], index: 1, kind: input, shape index: {}]   ;;  %s3504_s2 = inlined_call_operand.vmem [shape: bf16[9,32,32], index: 2, kind: input, shape index: {}]   ;;  %s3505_s3 = inlined_call_operand.vmem [shape: bf16[40,32], index: 3, kind: input, shape index: {}]   ;;  %s3506_s4 = inlined_call_operand.vmem [shape: f32[2,40,1], index: 4, kind: input, shape index: {}]   ;;  %s3507_s5 = inlined_call_operand.vmem [shape: bf16[32,40], index: 5, kind: input, shape index: {}]   ;;  %s3508_s6 = inlined_call_operand.vmem [shape: f32[32,1], index: 6, kind: input, shape index: {}]   ;;  %s3509_s7 = inlined_call_operand.vmem [shape: f32[1,288], index: 7, kind: input, shape index: {}]   ;;  %s3510_s8 = inlined_call_operand.vmem [shape: f32[2,32,288], index: 8, kind: output, shape index: {}]  }
   0x1 LB: > { %s2424_s28 = sadd.s32 4294967295, %s2742_s27   ;;  %p2428_p0 = scmp.ge.s32.totalorder %s2742_s27, 1  ;;  %s2742_s27 = sphi %s2800_s27, %s18_s27  }
   0x2   : > { %p282_p1 = scmp.lt.s32.totalorder %s2742_s27, 3 }
   0x4   : > { %p283_p2 = pnand %p2428_p0, %p282_p1 }
   0x6   : > { %286 = sbr.rel (%p283_p2) target bundleno = 1221 (0x4c5), region = 52 }
   0xb   : > { %p326_p3 = scmp.lt.s32.totalorder %s2424_s28, 1  ;;  %v3511_v7 = vmov 0   ;;  %s2745_s11 = smov 127   ;;  %vm413_vm0 = vcmask 261120   ;;  %v2833_v17 = vld [vmem:[%s3504_s2 + $0x10] sm:$0xff]   ;;  %vm402_vm1 = vcmask 1039360  }
   0xc   : > { %452 = vmatprep.mubr.bf16.mxu0 %v3511_v7  ;;  %2703 = vset.pattern.permute.xlu1 %v3511_v7  ;;  %s2746_s14 = smov 126   ;;  %s2747_s15 = smov 110   ;;  %v2706_v29 = vld [vmem:[%s3504_s2 + $0x18] sm:$0xff]   ;;  %vm667_vm2 = vcmask 1031168   ;;  %v2707_v34 = vld [vmem:[%s3504_s2] sm:$0xff]   ;;  %vm825_vm3 = vcmask 900096  }
   0xd   : > { %s3563_s28 = smov (!%p326_p3, %s2424_s28), 1  ;;  %2704 = vset.pattern.permute.xlu0 %v3511_v7  ;;  %2587 = vmatprep.mubr.msk.bf16.mxu1 %vm413_vm0, %v2833_v17  ;;  %s2748_s16 = smov 109   ;;  %v2708_v40 = vld [vmem:[%s3504_s2 + $0x8] sm:$0xff]   ;;  %v2709_v42 = vld [vmem:[%s3504_s2 + $0x20] sm:$0xff]   ;;  %vm983_vm4 = vcmask 891904   ;;  %v2711_v58 = vld [vmem:[%s3504_s2 + $0x30] sm:$0xff]  }
   0xe   : > { %s2811_s29 = smul.u32 96, %s3563_s28  ;;  %s2749_s17 = smov 108   ;;  %v2710_v49 = vld [vmem:[%s3504_s2 + $0x28] sm:$0xff]   ;;  %vm1141_vm5 = vcmask 883712   ;;  %vm1299_vm6 = vcmask 752640   ;;  %vm1457_vm7 = vcmask 744448  }
   0xf   : > { %s2750_s18 = smov 92   ;;  %s2751_s19 = smov 91   ;;  %vm1615_vm8 = vcmask 736256   ;;  %vm2754_vm9 = vmmov 0   ;;  %vm2121_vm10 = vcmask 326656   ;;  %vm2128_vm11 = vcmask 1043456  }
  0x10   : > { %s330_s10 = scalar_lea.vmem %s3502_s0, %s2811_s29  ;;  %s2752_s20 = smov 90  }
  0x11   : > { %v354_v0 = vld [vmem:[%s330_s10 + $0x38] sm:$0xff]  ;;  %v357_v1 = vld [vmem:[%s330_s10 + $0x50] sm:$0xff]  ;;  %v356_v4 = vld [vmem:[%s330_s10 + $0x48] sm:$0xff]  ;;  %s2683_s21 = smul.u32 40, %s3563_s28  ;;  %s3469_s30 = scalar_lea.vmem %s3510_s8, %s2811_s29 }
  0x12   : > { %v353_v2 = vld [vmem:[%s330_s10 + $0x30] sm:$0xff]  ;;  %v2817_v3 = vpack.c.bf16 %v357_v1, %v354_v0  ;;  %v355_v5 = vld [vmem:[%s330_s10 + $0x40] sm:$0xff]  ;;  %v358_v6 = vld [vmem:[%s330_s10 + $0x58] sm:$0xff] }
  0x13   : > { %v2821_v8 = vpack.c.bf16 %v356_v4, %v353_v2  ;;  %v348_v9 = vld [vmem:[%s330_s10 + $0x8] sm:$0xff]  ;;  %v351_v10 = vld [vmem:[%s330_s10 + $0x20] sm:$0xff]  ;;  %v2825_v11 = vpack.c.bf16 %v358_v6, %v355_v5  ;;  %v349_v12 = vld [vmem:[%s330_s10 + $0x10] sm:$0xff]  ;;  %s340_s24 = scalar_lea.vmem %s3506_s4, %s2683_s21 }
  0x14   : > { %398 = vrot.lane.b32.xlu0 %v2817_v3, %s2745_s11  ;;  %v352_v13 = vld [vmem:[%s330_s10 + $0x28] sm:$0xff]  ;;  %v347_v14 = vld [vmem:[%s330_s10] sm:$0xff]  ;;  %v2828_v15 = vpack.c.bf16 %v351_v10, %v348_v9  ;;  %v350_v16 = vld [vmem:[%s330_s10 + $0x18] sm:$0xff] }
  0x15   : > { %396 = vrot.lane.b32.xlu1 %v2821_v8, %s2745_s11  ;;  %v2838_v18 = vpack.c.bf16 %v352_v13, %v349_v12  ;;  %v2841_v19 = vpack.c.bf16 %v350_v16, %v347_v14  ;;  %v2712_v0 = vld [vmem:[%s3504_s2 + $0x38] sm:$0xff]   ;;  %v2713_v2 = vld [vmem:[%s3504_s2 + $0x40] sm:$0xff]   ;;  %v2714_v10 = vld [vmem:[%s3504_s2 + $0x48] sm:$0xff]  }
  0x18   : > { %400 = vrot.lane.b32.xlu0 %v2825_v11, %s2745_s11 }
  0x19   : > { %392 = vrot.lane.b32.xlu1 %v2828_v15, %s2745_s11 }
  0x1c   : > { %394 = vrot.lane.b32.xlu0 %v2838_v18, %s2745_s11 }
  0x1d   : > { %390 = vrot.lane.b32.xlu1 %v2841_v19, %s2745_s11 }
  0x20   : > { %663 = vrot.lane.b32.xlu0 %v2817_v3, %s2746_s14 }
  0x21   : > { %665 = vrot.lane.b32.xlu1 %v2825_v11, %s2746_s14 }
  0x24   : > { %661 = vrot.lane.b32.xlu0 %v2821_v8, %s2746_s14 }
  0x25   : > { %657 = vrot.lane.b32.xlu1 %v2828_v15, %s2746_s14 }
  0x28   : > { %659 = vrot.lane.b32.xlu0 %v2838_v18, %s2746_s14 }
  0x29   : > { %655 = vrot.lane.b32.xlu1 %v2841_v19, %s2746_s14 }
  0x2c   : > { %823 = vrot.lane.b32.xlu0 %v2825_v11, %s2747_s15 }
  0x2d   : > { %821 = vrot.lane.b32.xlu1 %v2817_v3, %s2747_s15 }
  0x30   : > { %819 = vrot.lane.b32.xlu0 %v2821_v8, %s2747_s15 }
  0x31   : > { %817 = vrot.lane.b32.xlu1 %v2838_v18, %s2747_s15 }
  0x34   : > { %815 = vrot.lane.b32.xlu0 %v2828_v15, %s2747_s15 }
  0x35   : > { %813 = vrot.lane.b32.xlu1 %v2841_v19, %s2747_s15 }
  0x38   : > { %979 = vrot.lane.b32.xlu0 %v2817_v3, %s2748_s16 }
  0x39   : > { %981 = vrot.lane.b32.xlu1 %v2825_v11, %s2748_s16 }
  0x3c   : > { %977 = vrot.lane.b32.xlu0 %v2821_v8, %s2748_s16 }
  0x3d   : > { %973 = vrot.lane.b32.xlu1 %v2828_v15, %s2748_s16 }
  0x40   : > { %975 = vrot.lane.b32.xlu0 %v2838_v18, %s2748_s16 }
  0x41   : > { %971 = vrot.lane.b32.xlu1 %v2841_v19, %s2748_s16 }
  0x44   : > { %1139 = vrot.lane.b32.xlu0 %v2825_v11, %s2749_s17 }
  0x45   : > { %1137 = vrot.lane.b32.xlu1 %v2817_v3, %s2749_s17 }
  0x48   : > { %1135 = vrot.lane.b32.xlu0 %v2821_v8, %s2749_s17 }
  0x49   : > { %1133 = vrot.lane.b32.xlu1 %v2838_v18, %s2749_s17 }
  0x4c   : > { %1131 = vrot.lane.b32.xlu0 %v2828_v15, %s2749_s17 }
  0x4d   : > { %1129 = vrot.lane.b32.xlu1 %v2841_v19, %s2749_s17 }
  0x50   : > { %1295 = vrot.lane.b32.xlu0 %v2817_v3, %s2750_s18 }
  0x51   : > { %1297 = vrot.lane.b32.xlu1 %v2825_v11, %s2750_s18 }
  0x54   : > { %1293 = vrot.lane.b32.xlu0 %v2821_v8, %s2750_s18 }
  0x55   : > { %1289 = vrot.lane.b32.xlu1 %v2828_v15, %s2750_s18 }
  0x58   : > { %1291 = vrot.lane.b32.xlu0 %v2838_v18, %s2750_s18 }
  0x59   : > { %1287 = vrot.lane.b32.xlu1 %v2841_v19, %s2750_s18 }
  0x5c   : > { %1455 = vrot.lane.b32.xlu0 %v2825_v11, %s2751_s19 }
  0x5d   : > { %1453 = vrot.lane.b32.xlu1 %v2817_v3, %s2751_s19 }
  0x60   : > { %1451 = vrot.lane.b32.xlu0 %v2821_v8, %s2751_s19 }
  0x61   : > { %1449 = vrot.lane.b32.xlu1 %v2838_v18, %s2751_s19 }
  0x64   : > { %1447 = vrot.lane.b32.xlu0 %v2828_v15, %s2751_s19 }
  0x65   : > { %1445 = vrot.lane.b32.xlu1 %v2841_v19, %s2751_s19 }
  0x68   : > { %1611 = vrot.lane.b32.xlu0 %v2817_v3, %s2752_s20 }
  0x69   : > { %1613 = vrot.lane.b32.xlu1 %v2825_v11, %s2752_s20 }
  0x6c   : > { %1609 = vrot.lane.b32.xlu0 %v2821_v8, %s2752_s20 }
  0x6d   : > { %1605 = vrot.lane.b32.xlu1 %v2828_v15, %s2752_s20 }
  0x70   : > { %1607 = vrot.lane.b32.xlu0 %v2838_v18, %s2752_s20 }
  0x71   : > { %1603 = vrot.lane.b32.xlu1 %v2841_v19, %s2752_s20 }
  0x86   : > { %v399_v20 = vpop.permute.xlu0 %398 }
  0x87   : > { %v397_v21 = vpop.permute.xlu1 %396 }
  0x88   : > { %v405_v25 = vsel %vm402_vm1, %v397_v21, %v399_v20 }
  0x8a   : > { %v401_v22 = vpop.permute.xlu0 %400 }
  0x8b   : > { %v393_v23 = vpop.permute.xlu1 %392  ;;  %2583 = vmatprep.subr.bf16.mxu1 %v401_v22  ;;  %v406_v24 = vsel %vm402_vm1, %v399_v20, %v401_v22 }
  0x8c   : > { %432 = vmatprep.subr.bf16.mxu0 %v406_v24  ;;  %2584 = vmatpush3.bf16.msra.mxu1 %v401_v22 }
  0x8d   : > { %433 = vmatpush1.bf16.msra.mxu0 %v405_v25  ;;  %v2716_v25 = vld [vmem:[%s3504_s2 + $0x58] sm:$0xff]  }
  0x8e   : > { %v395_v26 = vpop.permute.xlu0 %394 }
  0x8f   : > { %v391_v27 = vpop.permute.xlu1 %390  ;;  %2585 = vmatprep.subr.bf16.mxu1 %v395_v26  ;;  %v404_v28 = vsel %vm402_vm1, %v393_v23, %v395_v26 }
  0x90   : > { %434 = vmatprep.subr.bf16.mxu0 %v404_v28  ;;  %2586 = vmatpush3.bf16.msra.mxu1 %v395_v26  ;;  %v403_v30 = vsel %vm402_vm1, %v391_v27, %v393_v23  ;;  %v2717_v27 = vld [vmem:[%s3504_s2 + $0x60] sm:$0xff]  }
  0x91   : > { %435 = vmatpush1.bf16.msra.mxu0 %v403_v30  ;;  %550 = vmatprep.subr.bf16.mxu1 %v2817_v3 }
  0x92   : > { %v664_v31 = vpop.permute.xlu0 %663  ;;  %2591 = vmatprep.subr.bf16.mxu0 %v2825_v11 }
  0x93   : > { %2588 = vmatmul.mubr.msk.bf16.vlgmr.msra.gmra.mxu1 %vm413_vm0, %v2706_v29  ;;  %v666_v32 = vpop.permute.xlu1 %665 }
  0x94   : > { %2439 = vmatmul.mubr.msk.bf16.vlgmr.msra.gmra.mxu0 %vm413_vm0, %v2833_v17  ;;  %551 = vmatpush1.bf16.msra.mxu1 %v2821_v8  ;;  %v671_v36 = vsel %vm667_vm2, %v664_v31, %v666_v32 }
  0x95   : > { %552 = vmatprep.subr.bf16.mxu1 %v2828_v15  ;;  %570 = vmatprep.mubr.bf16.mxu1 %v3511_v7 }
  0x96   : > { %462 = vmatprep.mubr.bf16.mxu0 %v3511_v7  ;;  %2592 = vmatpush3.bf16.msra.mxu0 %v2825_v11  ;;  %v662_v33 = vpop.permute.xlu0 %661 }
  0x97   : > { %2593 = vmatprep.subr.bf16.mxu0 %v2838_v18  ;;  %v658_v35 = vpop.permute.xlu1 %657  ;;  %v670_v47 = vsel %vm667_vm2, %v662_v33, %v664_v31 }
  0x98   : > { %553 = vmatpush1.bf16.msra.mxu1 %v2841_v19  ;;  %v2715_v19 = vld [vmem:[%s3504_s2 + $0x50] sm:$0xff]  }
  0x99   : > { %2599 = vmatprep.subr.bf16.mxu1 %v666_v32 }
  0x9a   : > { %2594 = vmatpush3.bf16.msra.mxu0 %v2838_v18  ;;  %v660_v37 = vpop.permute.xlu0 %659 }
  0x9b   : > { %2445 = vmatmul.mubr.msk.bf16.vlgmr.msra.gmra.mxu1 %vm413_vm0, %v2707_v34  ;;  %696 = vmatprep.subr.bf16.mxu0 %v671_v36  ;;  %v656_v38 = vpop.permute.xlu1 %655  ;;  %v669_v45 = vsel %vm667_vm2, %v658_v35, %v660_v37 }
  0x9c   : > { %2440 = vmatmul.mubr.msk.bf16.gmra.mxu0 %vm413_vm0, %v2706_v29  ;;  %2600 = vmatpush3.bf16.msra.mxu1 %v666_v32  ;;  %v668_v51 = vsel %vm667_vm2, %v656_v38, %v658_v35 }
  0x9d   : > { %580 = vmatprep.mubr.bf16.mxu1 %v3511_v7  ;;  %2595 = vmatprep.mubr.msk.bf16.mxu0 %vm413_vm0, %v2707_v34  ;;  %v2718_v34 = vld [vmem:[%s3504_s2 + $0x68] sm:$0xff]  }
  0x9e   : > { %v824_v39 = vpop.permute.xlu0 %823  ;;  %2601 = vmatprep.subr.bf16.mxu1 %v660_v37 }
  0x9f   : > { %v822_v41 = vpop.permute.xlu1 %821 }
  0xa0   : > { %2602 = vmatpush3.bf16.msra.mxu1 %v660_v37  ;;  %v829_v43 = vsel %vm825_vm3, %v822_v41, %v824_v39 }
  0xa1   : > { %854 = vmatprep.subr.bf16.mxu1 %v829_v43 }
  0xa2   : > { %v820_v44 = vpop.permute.xlu0 %819 }
  0xa3   : > { %2446 = vmatmul.mubr.msk.bf16.gmra.mxu1 %vm413_vm0, %v2708_v40  ;;  %v818_v46 = vpop.permute.xlu1 %817  ;;  %v828_v52 = vsel %vm825_vm3, %v820_v44, %v822_v41 }
  0xa4   : > { %2596 = vmatmul.mubr.msk.bf16.vlgmr.msra.gmra.mxu0 %vm413_vm0, %v2708_v40  ;;  %2603 = vmatprep.mubr.msk.bf16.mxu1 %vm413_vm0, %v2709_v42 }
  0xa5   : > { %697 = vmatpush1.bf16.msra.mxu0 %v670_v47  ;;  %716 = vmatprep.mubr.bf16.mxu0 %v3511_v7  ;;  %v2720_v47 = vld [vmem:[%s3504_s2 + $0x78] sm:$0xff]  }
  0xa6   : > { %698 = vmatprep.subr.bf16.mxu0 %v669_v45  ;;  %v816_v48 = vpop.permute.xlu0 %815 }
  0xa7   : > { %v814_v50 = vpop.permute.xlu1 %813  ;;  %v827_v53 = vsel %vm825_vm3, %v816_v48, %v818_v46 }
  0xa8   : > { %v826_v56 = vsel %vm825_vm3, %v814_v50, %v816_v48  ;;  %v2721_v48 = vld [vmem:[%s3504_s2 + $0x80] sm:$0xff]  }
  0xa9   : > { %699 = vmatpush1.bf16.msra.mxu0 %v668_v51 }
  0xaa   : > { %2607 = vmatprep.subr.bf16.mxu0 %v824_v39  ;;  %v980_v54 = vpop.permute.xlu0 %979 }
  0xab   : > { %2604 = vmatmul.mubr.msk.bf16.vlgmr.msra.gmra.mxu1 %vm413_vm0, %v2710_v49  ;;  %v982_v55 = vpop.permute.xlu1 %981 }
  0xac   : > { %2455 = vmatmul.mubr.msk.bf16.vlgmr.msra.gmra.mxu0 %vm413_vm0, %v2709_v42  ;;  %855 = vmatpush1.bf16.msra.mxu1 %v828_v52  ;;  %v987_v60 = vsel %vm983_vm4, %v980_v54, %v982_v55  ;;  %v2719_v42 = vld [vmem:[%s3504_s2 + $0x70] sm:$0xff]   ;;  %v2722_v52 = vld [vmem:[%s3504_s2 + $0x88] sm:$0xff]  }
  0xad   : > { %2608 = vmatpush3.bf16.msra.mxu0 %v824_v39  ;;  %856 = vmatprep.subr.bf16.mxu1 %v827_v53 }
  0xae   : > { %2609 = vmatprep.subr.bf16.mxu0 %v818_v46  ;;  %874 = vmatprep.mubr.bf16.mxu1 %v3511_v7  ;;  %v978_v57 = vpop.permute.xlu0 %977 }
  0xaf   : > { %726 = vmatprep.mubr.bf16.mxu0 %v3511_v7  ;;  %v974_v59 = vpop.permute.xlu1 %973  ;;  %v986_v8 = vsel %vm983_vm4, %v978_v57, %v980_v54 }
  0xb0   : > { %857 = vmatpush1.bf16.msra.mxu1 %v826_v56 }
  0xb1   : > { %2610 = vmatpush3.bf16.msra.mxu0 %v818_v46  ;;  %2615 = vmatprep.subr.bf16.mxu1 %v982_v55 }
  0xb2   : > { %1012 = vmatprep.subr.bf16.mxu0 %v987_v60  ;;  %v976_v61 = vpop.permute.xlu0 %975 }
  0xb3   : > { %2465 = vmatmul.mubr.msk.bf16.vlgmr.msra.gmra.mxu1 %vm413_vm0, %v2711_v58  ;;  %v972_v62 = vpop.permute.xlu1 %971  ;;  %v985_v5 = vsel %vm983_vm4, %v974_v59, %v976_v61 }
  0xb4   : > { %2456 = vmatmul.mubr.msk.bf16.gmra.mxu0 %vm413_vm0, %v2710_v49  ;;  %2616 = vmatpush3.bf16.msra.mxu1 %v982_v55  ;;  %v984_v12 = vsel %vm983_vm4, %v972_v62, %v974_v59 }
  0xb5   : > { %884 = vmatprep.mubr.bf16.mxu1 %v3511_v7  ;;  %2611 = vmatprep.mubr.msk.bf16.mxu0 %vm413_vm0, %v2711_v58 }
  0xb6   : > { %v1140_v63 = vpop.permute.xlu0 %1139  ;;  %2617 = vmatprep.subr.bf16.mxu1 %v976_v61 }
  0xb7   : > { %v1138_v1 = vpop.permute.xlu1 %1137 }
  0xb8   : > { %2618 = vmatpush3.bf16.msra.mxu1 %v976_v61  ;;  %v1145_v3 = vsel %vm1141_vm5, %v1138_v1, %v1140_v63 }
  0xb9   : > { %1170 = vmatprep.subr.bf16.mxu1 %v1145_v3 }
  0xba   : > { %v1136_v4 = vpop.permute.xlu0 %1135 }
  0xbb   : > { %2466 = vmatmul.mubr.msk.bf16.gmra.mxu1 %vm413_vm0, %v2712_v0  ;;  %v1134_v6 = vpop.permute.xlu1 %1133  ;;  %v1144_v13 = vsel %vm1141_vm5, %v1136_v4, %v1138_v1 }
  0xbc   : > { %2612 = vmatmul.mubr.msk.bf16.vlgmr.msra.gmra.mxu0 %vm413_vm0, %v2712_v0  ;;  %2619 = vmatprep.mubr.msk.bf16.mxu1 %vm413_vm0, %v2713_v2 }
  0xbd   : > { %1013 = vmatpush1.bf16.msra.mxu0 %v986_v8  ;;  %1032 = vmatprep.mubr.bf16.mxu0 %v3511_v7 }
  0xbe   : > { %1014 = vmatprep.subr.bf16.mxu0 %v985_v5  ;;  %v1132_v9 = vpop.permute.xlu0 %1131 }
  0xbf   : > { %v1130_v11 = vpop.permute.xlu1 %1129  ;;  %v1143_v14 = vsel %vm1141_vm5, %v1132_v9, %v1134_v6 }
  0xc0   : > { %v1142_v17 = vsel %vm1141_vm5, %v1130_v11, %v1132_v9 }
  0xc1   : > { %1015 = vmatpush1.bf16.msra.mxu0 %v984_v12 }
  0xc2   : > { %2623 = vmatprep.subr.bf16.mxu0 %v1140_v63  ;;  %v1296_v15 = vpop.permute.xlu0 %1295 }
  0xc3   : > { %2620 = vmatmul.mubr.msk.bf16.vlgmr.msra.gmra.mxu1 %vm413_vm0, %v2714_v10  ;;  %v1298_v16 = vpop.permute.xlu1 %1297 }
  0xc4   : > { %2475 = vmatmul.mubr.msk.bf16.vlgmr.msra.gmra.mxu0 %vm413_vm0, %v2713_v2  ;;  %1171 = vmatpush1.bf16.msra.mxu1 %v1144_v13  ;;  %v1303_v21 = vsel %vm1299_vm6, %v1296_v15, %v1298_v16 }
  0xc5   : > { %2624 = vmatpush3.bf16.msra.mxu0 %v1140_v63  ;;  %1172 = vmatprep.subr.bf16.mxu1 %v1143_v14 }
  0xc6   : > { %2625 = vmatprep.subr.bf16.mxu0 %v1134_v6  ;;  %1190 = vmatprep.mubr.bf16.mxu1 %v3511_v7  ;;  %v1294_v18 = vpop.permute.xlu0 %1293 }
  0xc7   : > { %1042 = vmatprep.mubr.bf16.mxu0 %v3511_v7  ;;  %v1290_v20 = vpop.permute.xlu1 %1289  ;;  %v1302_v32 = vsel %vm1299_vm6, %v1294_v18, %v1296_v15 }
  0xc8   : > { %1173 = vmatpush1.bf16.msra.mxu1 %v1142_v17 }
  0xc9   : > { %2626 = vmatpush3.bf16.msra.mxu0 %v1134_v6  ;;  %2631 = vmatprep.subr.bf16.mxu1 %v1298_v16 }
  0xca   : > { %1328 = vmatprep.subr.bf16.mxu0 %v1303_v21  ;;  %v1292_v22 = vpop.permute.xlu0 %1291 }
  0xcb   : > { %2485 = vmatmul.mubr.msk.bf16.vlgmr.msra.gmra.mxu1 %vm413_vm0, %v2715_v19  ;;  %v1288_v23 = vpop.permute.xlu1 %1287  ;;  %v1301_v30 = vsel %vm1299_vm6, %v1290_v20, %v1292_v22 }
  0xcc   : > { %2476 = vmatmul.mubr.msk.bf16.gmra.mxu0 %vm413_vm0, %v2714_v10  ;;  %2632 = vmatpush3.bf16.msra.mxu1 %v1298_v16  ;;  %v1300_v35 = vsel %vm1299_vm6, %v1288_v23, %v1290_v20 }
  0xcd   : > { %1200 = vmatprep.mubr.bf16.mxu1 %v3511_v7  ;;  %2627 = vmatprep.mubr.msk.bf16.mxu0 %vm413_vm0, %v2715_v19 }
  0xce   : > { %v1456_v24 = vpop.permute.xlu0 %1455  ;;  %2633 = vmatprep.subr.bf16.mxu1 %v1292_v22 }
  0xcf   : > { %v1454_v26 = vpop.permute.xlu1 %1453 }
  0xd0   : > { %2634 = vmatpush3.bf16.msra.mxu1 %v1292_v22  ;;  %v1461_v28 = vsel %vm1457_vm7, %v1454_v26, %v1456_v24 }
  0xd1   : > { %1486 = vmatprep.subr.bf16.mxu1 %v1461_v28 }
  0xd2   : > { %v1452_v29 = vpop.permute.xlu0 %1451 }
  0xd3   : > { %2486 = vmatmul.mubr.msk.bf16.gmra.mxu1 %vm413_vm0, %v2716_v25  ;;  %v1450_v31 = vpop.permute.xlu1 %1449  ;;  %v1460_v37 = vsel %vm1457_vm7, %v1452_v29, %v1454_v26 }
  0xd4   : > { %2628 = vmatmul.mubr.msk.bf16.vlgmr.msra.gmra.mxu0 %vm413_vm0, %v2716_v25  ;;  %2635 = vmatprep.mubr.msk.bf16.mxu1 %vm413_vm0, %v2717_v27 }
  0xd5   : > { %1329 = vmatpush1.bf16.msra.mxu0 %v1302_v32  ;;  %1348 = vmatprep.mubr.bf16.mxu0 %v3511_v7 }
  0xd6   : > { %1330 = vmatprep.subr.bf16.mxu0 %v1301_v30  ;;  %v1448_v33 = vpop.permute.xlu0 %1447 }
  0xd7   : > { %v1446_v36 = vpop.permute.xlu1 %1445  ;;  %v1459_v38 = vsel %vm1457_vm7, %v1448_v33, %v1450_v31 }
  0xd8   : > { %v1458_v40 = vsel %vm1457_vm7, %v1446_v36, %v1448_v33 }
  0xd9   : > { %1331 = vmatpush1.bf16.msra.mxu0 %v1300_v35 }
  0xda   : > { %2639 = vmatprep.subr.bf16.mxu0 %v1456_v24  ;;  %v1612_v39 = vpop.permute.xlu0 %1611 }
  0xdb   : > { %2636 = vmatmul.mubr.msk.bf16.vlgmr.msra.gmra.mxu1 %vm413_vm0, %v2718_v34  ;;  %v1614_v41 = vpop.permute.xlu1 %1613 }
  0xdc   : > { %2495 = vmatmul.mubr.msk.bf16.vlgmr.msra.gmra.mxu0 %vm413_vm0, %v2717_v27  ;;  %1487 = vmatpush1.bf16.msra.mxu1 %v1460_v37  ;;  %v1619_v44 = vsel %vm1615_vm8, %v1612_v39, %v1614_v41 }
  0xdd   : > { %2640 = vmatpush3.bf16.msra.mxu0 %v1456_v24  ;;  %1488 = vmatprep.subr.bf16.mxu1 %v1459_v38 }
  0xde   : > { %2641 = vmatprep.subr.bf16.mxu0 %v1450_v31  ;;  %1506 = vmatprep.mubr.bf16.mxu1 %v3511_v7  ;;  %v1610_v43 = vpop.permute.xlu0 %1609 }
  0xdf   : > { %1358 = vmatprep.mubr.bf16.mxu0 %v3511_v7  ;;  %v1606_v46 = vpop.permute.xlu1 %1605  ;;  %v1618_v50 = vsel %vm1615_vm8, %v1610_v43, %v1612_v39 }
  0xe0   : > { %1489 = vmatpush1.bf16.msra.mxu1 %v1458_v40 }
  0xe1   : > { %2642 = vmatpush3.bf16.msra.mxu0 %v1450_v31  ;;  %2647 = vmatprep.subr.bf16.mxu1 %v1614_v41 }
  0xe2   : > { %1644 = vmatprep.subr.bf16.mxu0 %v1619_v44  ;;  %v1608_v45 = vpop.permute.xlu0 %1607 }
  0xe3   : > { %2505 = vmatmul.mubr.msk.bf16.vlgmr.msra.gmra.mxu1 %vm413_vm0, %v2719_v42  ;;  %v1617_v49 = vsel %vm1615_vm8, %v1606_v46, %v1608_v45  ;;  %v1604_v51 = vpop.permute.xlu1 %1603 }
  0xe4   : > { %2496 = vmatmul.mubr.msk.bf16.gmra.mxu0 %vm413_vm0, %v2718_v34  ;;  %2648 = vmatpush3.bf16.msra.mxu1 %v1614_v41  ;;  %v1616_v53 = vsel %vm1615_vm8, %v1604_v51, %v1606_v46 }
  0xe5   : > { %1516 = vmatprep.mubr.bf16.mxu1 %v3511_v7  ;;  %2643 = vmatprep.mubr.msk.bf16.mxu0 %vm413_vm0, %v2719_v42 }
  0xe6   : > { %2649 = vmatprep.subr.bf16.mxu1 %v1608_v45 }
  0xe8   : > { %2650 = vmatpush3.bf16.msra.mxu1 %v1608_v45 }
  0xeb   : > { %2506 = vmatmul.mubr.msk.bf16.gmra.mxu1 %vm413_vm0, %v2720_v47 }
  0xec   : > { %2644 = vmatmul.mubr.msk.bf16.vlgmr.msra.gmra.mxu0 %vm413_vm0, %v2720_v47  ;;  %2651 = vmatprep.mubr.msk.bf16.mxu1 %vm413_vm0, %v2721_v48 }
  0xed   : > { %1645 = vmatpush1.bf16.msra.mxu0 %v1618_v50  ;;  %1664 = vmatprep.mubr.bf16.mxu0 %v3511_v7 }
  0xee   : > { %1646 = vmatprep.subr.bf16.mxu0 %v1617_v49 }
  0xf1   : > { %1647 = vmatpush1.bf16.msra.mxu0 %v1616_v53 }
  0xf3   : > { %2652 = vmatmul.mubr.msk.bf16.vlgmr.msra.gmra.mxu1 %vm413_vm0, %v2722_v52 }
  0xf4   : > { %2515 = vmatmul.mubr.msk.bf16.vlgmr.msra.gmra.mxu0 %vm413_vm0, %v2721_v48  ;;  %1974 = vmatprep.mubr.bf16.mxu1 %v3511_v7 }
  0xf5   : > { %1674 = vmatprep.mubr.bf16.mxu0 %v3511_v7 }
  0xfc   : > { %2516 = vmatmul.mubr.msk.bf16.gmra.mxu0 %vm413_vm0, %v2722_v52 }
 0x153   : > { %v2589_v54 = vpop.f32.mrf.mxu1 }
 0x154   : > { %v454_v55 = vpop.f32.mrf.mxu0 }
 0x155   : > { %v507_v56 = vpop.f32.mrf.mxu1 }
 0x156   : > { %v456_v57 = vpop.f32.mrf.mxu0 }
 0x157   : > { %v2590_v58 = vpop.f32.mrf.mxu1 }
 0x158   : > { %v458_v59 = vpop.f32.mrf.mxu0 }
 0x159   : > { %v510_v60 = vpop.f32.mrf.mxu1 }
 0x15a   : > { %v460_v61 = vpop.f32.mrf.mxu0 }
 0x15b   : > { %v572_v62 = vpop.f32.mrf.mxu1 }
 0x15c   : > { %v573_v63 = vadd.f32 %v572_v62, %v454_v55  ;;  %v464_v0 = vpop.f32.mrf.mxu0 }
 0x15d   : > { %v574_v1 = vpop.f32.mrf.mxu1 }
 0x15e   : > { %v575_v2 = vadd.f32 %v574_v1, %v456_v57  ;;  %v3038_v3 = vpop.f32.mrf.mxu0 }
 0x15f   : > { %v576_v4 = vpop.f32.mrf.mxu1 }
 0x160   : > { %v577_v5 = vadd.f32 %v576_v4, %v458_v59  ;;  %v468_v6 = vpop.f32.mrf.mxu0 }
 0x161   : > { %v578_v8 = vpop.f32.mrf.mxu1 }
 0x162   : > { %v579_v9 = vadd.f32 %v578_v8, %v460_v61  ;;  %v3040_v10 = vpop.f32.mrf.mxu0 }
 0x163   : > { %v582_v11 = vpop.f32.mrf.mxu1 }
 0x164   : > { %v3042_v12 = vadd.f32 %v582_v11, %v464_v0  ;;  %v2597_v13 = vpop.f32.mrf.mxu0 }
 0x165   : > { %v3044_v14 = vadd.f32 %v2597_v13, %v2589_v54  ;;  %v3046_v15 = vpop.f32.mrf.mxu1 }
 0x166   : > { %v625_v16 = vpop.f32.mrf.mxu0 }
 0x167   : > { %v3048_v17 = vadd.f32 %v625_v16, %v507_v56  ;;  %v586_v18 = vpop.f32.mrf.mxu1 }
 0x168   : > { %v3050_v19 = vadd.f32 %v586_v18, %v468_v6  ;;  %v2598_v20 = vpop.f32.mrf.mxu0 }
 0x169   : > { %v3052_v21 = vadd.f32 %v2598_v20, %v2590_v58  ;;  %v3054_v22 = vpop.f32.mrf.mxu1 }
 0x16a   : > { %v628_v23 = vpop.f32.mrf.mxu0 }
 0x16b   : > { %v3056_v24 = vadd.f32 %v628_v23, %v510_v60  ;;  %v3058_v25 = vpop.f32.mrf.mxu1 }
 0x16c   : > { %v718_v26 = vpop.f32.mrf.mxu0 }
 0x16d   : > { %v3060_v27 = vadd.f32 %v718_v26, %v573_v63  ;;  %v3062_v28 = vpop.f32.mrf.mxu1 }
 0x16e   : > { %v720_v29 = vpop.f32.mrf.mxu0 }
 0x16f   : > { %v3064_v30 = vadd.f32 %v720_v29, %v575_v2  ;;  %v3066_v31 = vpop.f32.mrf.mxu1 }
 0x170   : > { %v722_v32 = vpop.f32.mrf.mxu0 }
 0x171   : > { %v3068_v33 = vadd.f32 %v722_v32, %v577_v5  ;;  %v3070_v34 = vpop.f32.mrf.mxu1 }
 0x172   : > { %v724_v35 = vpop.f32.mrf.mxu0 }
 0x173   : > { %v3072_v36 = vadd.f32 %v724_v35, %v579_v9  ;;  %v3074_v37 = vpop.f32.mrf.mxu1 }
 0x174   : > { %v3076_v38 = vpop.f32.mrf.mxu0 }
 0x175   : > { %v3078_v39 = vpop.f32.mrf.mxu1 }
 0x176   : > { %v3080_v40 = vpop.f32.mrf.mxu0 }
 0x177   : > { %v3082_v41 = vpop.f32.mrf.mxu1 }
 0x178   : > { %v3084_v42 = vpop.f32.mrf.mxu0 }
 0x179   : > { %v3086_v43 = vpop.f32.mrf.mxu1 }
 0x17a   : > { %v3088_v44 = vpop.f32.mrf.mxu0 }
 0x17b   : > { %v3090_v45 = vpop.f32.mrf.mxu1 }
 0x17c   : > { %v3092_v46 = vpop.f32.mrf.mxu0 }
 0x17d   : > { %v3094_v47 = vpop.f32.mrf.mxu1 }
 0x17e   : > { %v3096_v48 = vpop.f32.mrf.mxu0 }
 0x17f   : > { %v3098_v49 = vpop.f32.mrf.mxu1 }
 0x180   : > { %v3100_v50 = vpop.f32.mrf.mxu0 }
 0x181   : > { %v3102_v51 = vpop.f32.mrf.mxu1 }
 0x182   : > { %v3104_v52 = vpop.f32.mrf.mxu0 }
 0x183   : > { %v3106_v53 = vpop.f32.mrf.mxu1 }
 0x184   : > { %v3108_v54 = vpop.f32.mrf.mxu0 }
 0x185   : > { %v3110_v55 = vpop.f32.mrf.mxu1 }
 0x186   : > { %v3112_v56 = vpop.f32.mrf.mxu0 }
 0x187   : > { %v3114_v57 = vpop.f32.mrf.mxu1 }
 0x188   : > { %v3116_v58 = vpop.f32.mrf.mxu0 }
 0x189   : > { %v3118_v59 = vpop.f32.mrf.mxu1 }
 0x18a   : > { %v3120_v60 = vpop.f32.mrf.mxu0 }
 0x18b   : > { %v3122_v61 = vpop.f32.mrf.mxu1 }
 0x18c   : > { %v3124_v62 = vpop.f32.mrf.mxu0 }
 0x18d   : > { %v3126_v63 = vpop.f32.mrf.mxu1 }
 0x18e   : > { %v3128_v0 = vpop.f32.mrf.mxu0 }
 0x18f   : > { %v3130_v1 = vpop.f32.mrf.mxu1 }
 0x190   : > { %v3132_v2 = vpop.f32.mrf.mxu0 }
 0x191   : > { %v3134_v4 = vpop.f32.mrf.mxu1 }
 0x192   : > { %v3136_v5 = vpop.f32.mrf.mxu0 }
 0x193   : > { %3513 = vst [vmem:[#allocation2_spill] sm:$0xff] %v3136_v5  ;;  %v3138_v6 = vpop.f32.mrf.mxu1 }
 0x194   : > { %3514 = vst [vmem:[#allocation3_spill] sm:$0xff] %v3138_v6  ;;  %v3140_v8 = vpop.f32.mrf.mxu0 }
 0x195   : > { %v3142_v9 = vpop.f32.mrf.mxu1 }
 0x196   : > { %3515 = vst [vmem:[#allocation4_spill] sm:$0xff] %v3142_v9  ;;  %v3144_v11 = vpop.f32.mrf.mxu0 }
 0x197   : > { %3516 = vst [vmem:[#allocation5_spill] sm:$0xff] %v3144_v11  ;;  %v3146_v13 = vpop.f32.mrf.mxu1  ;;  %v1748_v11 = vlaneseq }
 0x198   : > { %3517 = vst [vmem:[#allocation6_spill] sm:$0xff] %v3146_v13  ;;  %v3148_v16 = vpop.f32.mrf.mxu0 }
 0x199   : > { %3518 = vst [vmem:[#allocation7_spill] sm:$0xff] %v3148_v16  ;;  %v3150_v18 = vpop.f32.mrf.mxu1 }
 0x19a   : > { %3519 = vst [vmem:[#allocation8_spill] sm:$0xff] %v3150_v18  ;;  %v3152_v20 = vpop.f32.mrf.mxu0 }
 0x19b   : > { %3520 = vst [vmem:[#allocation9_spill] sm:$0xff] %v3152_v20  ;;  %v3154_v23 = vpop.f32.mrf.mxu1 }
 0x19c   : > { %3521 = vst [vmem:[#allocation10_spill] sm:$0xff] %v3154_v23  ;;  %v3156_v26 = vpop.f32.mrf.mxu0  ;;  %v1749_v23 = vshrl.u32 %v1748_v11, 7 }
 0x19d   : > { %3522 = vst [vmem:[#allocation11_spill] sm:$0xff] %v3156_v26  ;;  %v3158_v29 = vpop.f32.mrf.mxu1 }
 0x19e   : > { %3523 = vst [vmem:[#allocation12_spill] sm:$0xff] %v3158_v29  ;;  %v3160_v32 = vpop.f32.mrf.mxu0 }
 0x19f   : > { %3524 = vst [vmem:[#allocation13_spill] sm:$0xff] %v3160_v32  ;;  %v3162_v35 = vpop.f32.mrf.mxu1 }
 0x1a0   : > { %3525 = vst [vmem:[#allocation14_spill] sm:$0xff] %v3162_v35  ;;  %v3164_v7 = vpop.f32.mrf.mxu0  ;;  %v1758_v35 = vsub.s32 2, %v1749_v23 }
 0x1a1   : > { %3526 = vst [vmem:[#allocation15_spill] sm:$0xff] %v3164_v7  ;;  %v3166_v13 = vpop.f32.mrf.mxu1 }
 0x1a2   : > { %3527 = vst [vmem:[#allocation16_spill] sm:$0xff] %v3166_v13  ;;  %v3168_v16 = vpop.f32.mrf.mxu0  ;;  %v1750_v13 = vsub.s32 0, %v1749_v23 }
 0x1a3   : > { %3528 = vst [vmem:[#allocation17_spill] sm:$0xff] %v3168_v16  ;;  %v3170_v18 = vpop.f32.mrf.mxu1  ;;  %v1746_v16 = vld [vmem:[%s3509_s7] sm:$0x7] }
 0x1a4   : > { %3529 = vst [vmem:[#allocation18_spill] sm:$0xff] %v3170_v18  ;;  %v3172_v20 = vpop.f32.mrf.mxu0  ;;  %v1754_v18 = vsub.s32 1, %v1749_v23  ;;  %v794_v23 = vadd.f32 %v3058_v25, %v3044_v14  ;;  %v945_v14 = vadd.f32 %v3078_v39, %v3064_v30 }
 0x1a5   : > { %3530 = vst [vmem:[#allocation19_spill] sm:$0xff] %v3172_v20  ;;  %v3174_v9 = vpop.f32.mrf.mxu1  ;;  %v3201_v20 = vrot.slane %v1746_v16, %v1750_v13  ;;  %v3539_v13 = vld [vmem:[#allocation4_spill] sm:$0xff] }
 0x1a6   : > { %3531 = vst [vmem:[#allocation20_spill] sm:$0xff] %v3174_v9  ;;  %v3176_v26 = vpop.f32.mrf.mxu0  ;;  %v3203_v5 = vrot.slane %v1746_v16, %v1754_v18  ;;  %v952_v30 = vadd.f32 %v3092_v46, %v794_v23  ;;  %v3541_v18 = vld [vmem:[#allocation6_spill] sm:$0xff] }
 0x1a7   : > { %3532 = vst [vmem:[#allocation21_spill] sm:$0xff] %v3176_v26  ;;  %v3178_v29 = vpop.f32.mrf.mxu1  ;;  %v3193_v26 = vrot.slane %v1746_v16, %v1758_v35  ;;  %v797_v35 = vadd.f32 %v3066_v31, %v3052_v21  ;;  %v947_v21 = vadd.f32 %v3082_v41, %v3068_v33  ;;  %v3540_v16 = vld [vmem:[#allocation5_spill] sm:$0xff] }
 0x1a8   : > { %3533 = vst [vmem:[#allocation22_spill] sm:$0xff] %v3178_v29  ;;  %v3180_v32 = vpop.f32.mrf.mxu0  ;;  %v585_v29 = vadd.f32 %v3046_v15, %v3038_v3  ;;  %v791_v3 = vadd.f32 %v3070_v34, %v3056_v24  ;;  %v795_v24 = vadd.f32 %v3084_v42, %v3050_v19 }
 0x1a9   : > { %3534 = vst [vmem:[#allocation23_spill] sm:$0xff] %v3180_v32  ;;  %v3182_v7 = vpop.f32.mrf.mxu1  ;;  %v955_v19 = vadd.f32 %v3100_v50, %v797_v35 }
 0x1aa   : > { %3535 = vst [vmem:[#allocation24_spill] sm:$0xff] %v3182_v7  ;;  %v3187_v6 = vpop.f32.mrf.mxu0  ;;  %v589_v7 = vadd.f32 %v3054_v22, %v3040_v10  ;;  %v944_v10 = vadd.f32 %v3074_v37, %v3060_v27  ;;  %v792_v22 = vadd.f32 %v3076_v38, %v3042_v12  ;;  %v793_v25 = vadd.f32 %v3080_v40, %v585_v29  ;;  %v3542_v29 = vld [vmem:[#allocation7_spill] sm:$0xff] }
 0x1ab   : > { %3536 = vst [vmem:[#allocation25_spill] sm:$0xff] %v3187_v6  ;;  %v3189_v11 = vpop.f32.mrf.mxu1  ;;  %v788_v6 = vadd.f32 %v3062_v28, %v3048_v17  ;;  %v948_v28 = vadd.f32 %v3086_v43, %v3072_v36  ;;  %v953_v33 = vadd.f32 %v3098_v49, %v795_v24  ;;  %v1110_v40 = vadd.f32 %v3106_v53, %v952_v30 }
 0x1ac   : > { %v3191_v9 = vpop.f32.mrf.mxu0  ;;  %v796_v27 = vadd.f32 %v3088_v44, %v589_v7  ;;  %v950_v12 = vadd.f32 %v3090_v45, %v792_v22  ;;  %v951_v34 = vadd.f32 %v3094_v47, %v793_v25  ;;  %v949_v7 = vadd.f32 %v3104_v52, %v791_v3  ;;  %v3546_v22 = vld [vmem:[#allocation9_spill] sm:$0xff]  ;;  %v3547_v25 = vld [vmem:[#allocation11_spill] sm:$0xff] }
 0x1ad   : > { %v3199_v32 = vpop.f32.mrf.mxu1  ;;  %v946_v37 = vadd.f32 %v3096_v48, %v788_v6  ;;  %v1102_v41 = vadd.f32 %v3108_v54, %v944_v10  ;;  %v1103_v43 = vadd.f32 %v3112_v56, %v945_v14  ;;  %v1113_v44 = vadd.f32 %v3114_v57, %v955_v19  ;;  %v3538_v6 = vld [vmem:[#allocation3_spill] sm:$0xff]  ;;  %v3545_v10 = vld [vmem:[#allocation8_spill] sm:$0xff] }
 0x1ae   : > { %v3213_v15 = vpop.f32.mrf.mxu0  ;;  %v954_v36 = vadd.f32 %v3102_v51, %v796_v27  ;;  %v1105_v45 = vadd.f32 %v3116_v58, %v947_v21  ;;  %v1107_v46 = vadd.f32 %v3118_v59, %v949_v7  ;;  %v1106_v47 = vadd.f32 %v3120_v60, %v948_v28  ;;  %v3537_v59 = vld [vmem:[#allocation2_spill] sm:$0xff]  ;;  %v3548_v24 = vld [vmem:[#allocation19_spill] sm:$0xff] }
 0x1af   : > { %v3222_v17 = vpop.f32.mrf.mxu1  ;;  %v1104_v42 = vadd.f32 %v3110_v55, %v946_v37  ;;  %v1260_v49 = vadd.f32 %v3122_v61, %v1102_v41  ;;  %v1108_v50 = vadd.f32 %v3124_v62, %v950_v12  ;;  %v1261_v51 = vadd.f32 %v3126_v63, %v1103_v43  ;;  %v3549_v12 = vld [vmem:[#allocation12_spill] sm:$0xff] }
 0x1b0   : > { %v3231_v31 = vpop.f32.mrf.mxu0  ;;  %v1109_v52 = vadd.f32 %v3128_v0, %v951_v34  ;;  %v1263_v54 = vadd.f32 %v3130_v1, %v1105_v45  ;;  %v1111_v55 = vadd.f32 %v3132_v2, %v953_v33  ;;  %v1264_v56 = vadd.f32 %v3134_v4, %v1106_v47  ;;  %v3543_v1 = vld [vmem:[#allocation10_spill] sm:$0xff]  ;;  %v3544_v2 = vld [vmem:[#allocation13_spill] sm:$0xff]  ;;  %v3551_v33 = vld [vmem:[#allocation20_spill] sm:$0xff] }
 0x1b1   : > { %v3237_v38 = vpop.f32.mrf.mxu1  ;;  %v1268_v57 = vadd.f32 %v3140_v8, %v1110_v40  ;;  %v1112_v60 = vadd.f32 %v3537_v59, %v954_v36  ;;  %v1266_v61 = vadd.f32 %v3538_v6, %v1108_v50  ;;  %v1262_v63 = vadd.f32 %v3540_v16, %v1104_v42  ;;  %v3550_v34 = vld [vmem:[#allocation14_spill] sm:$0xff]  ;;  %v3552_v40 = vld [vmem:[#allocation15_spill] sm:$0xff]  ;;  %v3553_v42 = vld [vmem:[#allocation16_spill] sm:$0xff] }
 0x1b2   : > { %v3243_v39 = vpop.f32.mrf.mxu0  ;;  %v1267_v62 = vadd.f32 %v3539_v13, %v1109_v52  ;;  %v1269_v0 = vadd.f32 %v3541_v18, %v1111_v55  ;;  %v1271_v23 = vadd.f32 %v3542_v29, %v1113_v44  ;;  %v1419_v3 = vadd.f32 %v3544_v2, %v1261_v51  ;;  %v3554_v44 = vld [vmem:[#allocation21_spill] sm:$0xff]  ;;  %v3556_v50 = vld [vmem:[#allocation18_spill] sm:$0xff]  ;;  %v3557_v59 = vld [vmem:[#allocation23_spill] sm:$0xff] }
 0x1b3   : > { %v2653_v53 = vpop.f32.mrf.mxu1  ;;  %v1426_v35 = vadd.f32 %v3543_v1, %v1268_v57  ;;  %v1270_v8 = vadd.f32 %v3545_v10, %v1112_v60  ;;  %v1265_v14 = vadd.f32 %v3546_v22, %v1107_v46  ;;  %v1418_v21 = vadd.f32 %v3547_v25, %v1260_v49  ;;  %v3555_v47 = vld [vmem:[#allocation17_spill] sm:$0xff]  ;;  %v3558_v13 = vld [vmem:[#allocation22_spill] sm:$0xff] }
 0x1b4   : > { %v1666_v48 = vpop.f32.mrf.mxu0  ;;  %v1424_v28 = vadd.f32 %v3548_v24, %v1266_v61  ;;  %v1420_v30 = vadd.f32 %v3549_v12, %v1262_v63  ;;  %v1429_v37 = vadd.f32 %v3550_v34, %v1271_v23  ;;  %v1577_v19 = vadd.f32 %v3551_v33, %v1419_v3  ;;  %v3559_v16 = vld [vmem:[#allocation25_spill] sm:$0xff] }
 0x1b5   : > { %v1719_v27 = vpop.f32.mrf.mxu1  ;;  %v1584_v36 = vadd.f32 %v3191_v9, %v1426_v35  ;;  %v1421_v41 = vadd.f32 %v3552_v40, %v1263_v54  ;;  %v1423_v43 = vadd.f32 %v3553_v42, %v1265_v14  ;;  %v1425_v45 = vadd.f32 %v3554_v44, %v1267_v62 }
 0x1b6   : > { %v1668_v58 = vpop.f32.mrf.mxu0  ;;  %v1582_v46 = vadd.f32 %v3189_v11, %v1424_v28  ;;  %v1422_v49 = vadd.f32 %v3555_v47, %v1264_v56  ;;  %v1576_v51 = vadd.f32 %v3556_v50, %v1418_v21  ;;  %v1427_v60 = vadd.f32 %v3557_v59, %v1269_v0 }
 0x1b7   : > { %v1742_v52 = vadd.f32 %v2653_v53, %v1584_v36  ;;  %v3283_v55 = vadd.f32 %v1668_v58, %v1577_v19  ;;  %v1583_v9 = vadd.f32 %v3199_v32, %v1425_v45  ;;  %v1578_v54 = vadd.f32 %v3213_v15, %v1420_v30  ;;  %v2654_v6 = vpop.f32.mrf.mxu1  ;;  %v3560_v53 = vld [vmem:[#allocation24_spill] sm:$0xff] }
 0x1b8   : > { %v1670_v4 = vpop.f32.mrf.mxu0  ;;  %v1579_v62 = vadd.f32 %v3558_v13, %v1421_v41  ;;  %v1428_v11 = vadd.f32 %v3559_v16, %v1270_v8  ;;  %v1587_v56 = vadd.f32 %v3231_v31, %v1429_v37  ;;  %v1734_v63 = vadd.f32 %v1666_v48, %v1576_v51 }
 0x1b9   : > { %v1580_v58 = vadd.f32 %v3560_v53, %v1422_v49  ;;  %v1585_v29 = vadd.f32 %v3222_v17, %v1427_v60  ;;  %v1736_v23 = vadd.f32 %v1719_v27, %v1578_v54  ;;  %v1771_v15 = vmul.f32 %v3193_v26, %v1742_v52  ;;  %v1722_v3 = vpop.f32.mrf.mxu1 }
 0x1ba   : > { %v1672_v7 = vpop.f32.mrf.mxu0  ;;  %v1586_v32 = vadd.f32 %v3237_v38, %v1428_v11  ;;  %v1764_v1 = vmul.f32 %v3203_v5, %v3283_v55  ;;  %v1745_v35 = vadd.f32 %v2654_v6, %v1587_v56  ;;  %v1581_v17 = vadd.f32 %v3243_v39, %v1423_v43 }
 0x1bb   : > { %v3297_v10 = vadd.f32 %v1672_v7, %v1580_v58  ;;  %v1763_v22 = vmul.f32 %v3201_v20, %v1734_v63  ;;  %v1765_v14 = vmul.f32 %v3193_v26, %v1736_v23  ;;  %v1737_v25 = vadd.f32 %v1670_v4, %v1579_v62 }
 0x1bc   : > { %v1676_v57 = vpop.f32.mrf.mxu0  ;;  %v1774_v28 = vmul.f32 %v3193_v26, %v1745_v35  ;;  %v1739_v27 = vadd.f32 %v1722_v3, %v1581_v17  ;;  %v1786_v12 = vsel %vm413_vm0, %v1771_v15, 0.0 }
 0x1bd   : > { %v1740_v61 = vadd.f32 %v1676_v57, %v1582_v46  ;;  %v1775_v30 = vadd.f32 %v1764_v1, %v1763_v22  ;;  %v1767_v34 = vmul.f32 %v3203_v5, %v3297_v10  ;;  %v1766_v19 = vmul.f32 %v3201_v20, %v1737_v25 }
 0x1be   : > { %v1678_v18 = vpop.f32.mrf.mxu0  ;;  %v1768_v36 = vmul.f32 %v3193_v26, %v1739_v27  ;;  %v1791_v7 = vsel %vm413_vm0, %v1774_v28, 0.0  ;;  %v1776_v40 = vsel %vm413_vm0, %v1765_v14, 0.0 }
 0x1bf   : > { %v1741_v0 = vadd.f32 %v1678_v18, %v1583_v9  ;;  %v1769_v31 = vmul.f32 %v3201_v20, %v1740_v61  ;;  %v1777_v42 = vadd.f32 %v1776_v40, %v1775_v30  ;;  %v1780_v43 = vadd.f32 %v1767_v34, %v1766_v19  ;;  %v1892_v40 = vld [vmem:[%s340_s24 + $0x10] sm:$0xff] }
 0x1c0   : > { %v1680_v2 = vpop.f32.mrf.mxu0  ;;  %v1781_v44 = vsel %vm413_vm0, %v1768_v36, 0.0 }
 0x1c1   : > { %v1770_v48 = vmul.f32 %v3203_v5, %v1741_v0  ;;  %v1743_v8 = vadd.f32 %v1680_v2, %v1585_v29  ;;  %v1782_v45 = vadd.f32 %v1781_v44, %v1780_v43  ;;  %v1891_v43 = vld [vmem:[%s340_s24 + $0x8] sm:$0xff]  ;;  %v2087_v44 = vld [vmem:[%s3508_s6] sm:$0xff] }
 0x1c2   : > { %v1682_v38 = vpop.f32.mrf.mxu0 }
 0x1c3   : > { %v1744_v21 = vadd.f32 %v1682_v38, %v1586_v32  ;;  %v1785_v24 = vadd.f32 %v1770_v48, %v1769_v31  ;;  %v1772_v37 = vmul.f32 %v3201_v20, %v1743_v8 }
 0x1c5   : > { %v1773_v39 = vmul.f32 %v3203_v5, %v1744_v21  ;;  %v1787_v33 = vadd.f32 %v1786_v12, %v1785_v24 }
 0x1c7   : > { %1788 = vadd.xlane.f32.xlu0 %v1787_v33  ;;  %v1790_v4 = vadd.f32 %v1773_v39, %v1772_v37 }
 0x1c9   : > { %v1792_v41 = vadd.f32 %v1791_v7, %v1790_v4 }
 0x1cb   : > { %1793 = vadd.xlane.f32.xlu1 %v1792_v41  ;;  %1778 = vadd.xlane.f32.xlu0 %v1777_v42  ;;  %v1893_v41 = vld [vmem:[%s340_s24 + $0x18] sm:$0xff]  ;;  %v1890_v42 = vld [vmem:[%s340_s24] sm:$0xff] }
 0x1cf   : > { %1783 = vadd.xlane.f32.xlu0 %v1782_v45  ;;  %v2088_v45 = vld [vmem:[%s3508_s6 + $0x8] sm:$0xff] }
 0x250   : > { %v1789_v46 = vpop.xlane.xlu0 %1788 }
 0x251   : > { %v1797_v47 = vmul.f32 0.00390625, %v1789_v46  ;;  %v2089_v46 = vld [vmem:[%s3508_s6 + $0x10] sm:$0xff] }
 0x253   : > { %v3315_v49 = vsub.f32 %v1740_v61, %v1797_v47  ;;  %v3317_v50 = vsub.f32 %v1741_v0, %v1797_v47  ;;  %v3319_v51 = vsub.f32 %v1742_v52, %v1797_v47  ;;  %v2090_v47 = vld [vmem:[%s3508_s6 + $0x18] sm:$0xff] }
 0x254   : > { %v1794_v57 = vpop.xlane.xlu1 %1793  ;;  %v1779_v59 = vpop.xlane.xlu0 %1778 }
 0x255   : > { %v1798_v60 = vmul.f32 0.00390625, %v1794_v57  ;;  %v1795_v9 = vmul.f32 0.00390625, %v1779_v59  ;;  %v1817_v54 = vmul.f32 %v3315_v49, %v3201_v20  ;;  %v1818_v6 = vmul.f32 %v3317_v50, %v3203_v5 }
 0x256   : > { %v1819_v13 = vmul.f32 %v3319_v51, %v3193_v26 }
 0x257   : > { %v3327_v62 = vsub.f32 %v1743_v8, %v1798_v60  ;;  %v3329_v61 = vsub.f32 %v1744_v21, %v1798_v60  ;;  %v3331_v16 = vsub.f32 %v1745_v35, %v1798_v60  ;;  %v3333_v52 = vsub.f32 %v1734_v63, %v1795_v9 }
 0x258   : > { %v3336_v11 = vsub.f32 %v3283_v55, %v1795_v9  ;;  %v3338_v56 = vsub.f32 %v1736_v23, %v1795_v9  ;;  %v1784_v18 = vpop.xlane.xlu0 %1783  ;;  %v1829_v53 = vmul.f32 %v1817_v54, %v1817_v54  ;;  %v1830_v58 = vmul.f32 %v1818_v6, %v1818_v6 }
 0x259   : > { %v1796_v29 = vmul.f32 0.00390625, %v1784_v18  ;;  %v1831_v0 = vmul.f32 %v1819_v13, %v1819_v13  ;;  %v1820_v32 = vmul.f32 %v3327_v62, %v3201_v20  ;;  %v1821_v15 = vmul.f32 %v3329_v61, %v3203_v5 }
 0x25a   : > { %v1845_v1 = vadd.f32 %v1830_v58, %v1829_v53  ;;  %v1822_v63 = vmul.f32 %v3331_v16, %v3193_v26  ;;  %v1811_v55 = vmul.f32 %v3333_v52, %v3201_v20  ;;  %v1812_v23 = vmul.f32 %v3336_v11, %v3203_v5 }
 0x25b   : > { %v3350_v35 = vsub.f32 %v1737_v25, %v1796_v29  ;;  %v3353_v2 = vsub.f32 %v3297_v10, %v1796_v29  ;;  %v3355_v3 = vsub.f32 %v1739_v27, %v1796_v29  ;;  %v1846_v31 = vsel %vm413_vm0, %v1831_v0, 0.0 }
 0x25c   : > { %v1847_v48 = vadd.f32 %v1846_v31, %v1845_v1  ;;  %v1832_v8 = vmul.f32 %v1820_v32, %v1820_v32  ;;  %v1833_v17 = vmul.f32 %v1821_v15, %v1821_v15  ;;  %v1834_v22 = vmul.f32 %v1822_v63, %v1822_v63 }
 0x25d   : > { %v1813_v38 = vmul.f32 %v3338_v56, %v3193_v26  ;;  %v1823_v14 = vmul.f32 %v1811_v55, %v1811_v55  ;;  %v1824_v21 = vmul.f32 %v1812_v23, %v1812_v23  ;;  %v1814_v25 = vmul.f32 %v3350_v35, %v3201_v20 }
 0x25e   : > { %1848 = vadd.xlane.f32.xlu1 %v1847_v48  ;;  %v1850_v24 = vadd.f32 %v1833_v17, %v1832_v8  ;;  %v1851_v10 = vsel %vm413_vm0, %v1834_v22, 0.0  ;;  %v1815_v28 = vmul.f32 %v3353_v2, %v3203_v5  ;;  %v1816_v27 = vmul.f32 %v3355_v3, %v3193_v26  ;;  %v1894_v26 = vld [vmem:[%s340_s24 + $0x20] sm:$0xff]  ;;  %s335_s24 = scalar_lea.vmem %s3503_s1, %s2811_s29 }
 0x25f   : > { %v1825_v12 = vmul.f32 %v1813_v38, %v1813_v38  ;;  %v1835_v30 = vadd.f32 %v1824_v21, %v1823_v14  ;;  %v1826_v34 = vmul.f32 %v1814_v25, %v1814_v25  ;;  %v2753_v5 = vmov 0.0  }
 0x260   : > { %v1852_v37 = vadd.f32 %v1851_v10, %v1850_v24  ;;  %v1827_v39 = vmul.f32 %v1815_v28, %v1815_v28  ;;  %v1828_v33 = vmul.f32 %v1816_v27, %v1816_v27  ;;  %2655 = vmatprep.subr.bf16.mxu0 %v2753_v5  ;;  %2659 = vmatprep.mubr.msk.bf16.mxu0 %vm2754_vm9, %v2753_v5  ;;  %v2253_v10 = vld [vmem:[%s335_s24 + $0x8] sm:$0xff]  ;;  %v2254_v28 = vld [vmem:[%s335_s24 + $0x10] sm:$0xff]  ;;  %v2255_v27 = vld [vmem:[%s335_s24 + $0x18] sm:$0xff] }
 0x261   : > { %v1836_v19 = vsel %vm413_vm0, %v1825_v12, 0.0  ;;  %v2256_v12 = vld [vmem:[%s335_s24 + $0x20] sm:$0xff] }
 0x262   : > { %1853 = vadd.xlane.f32.xlu0 %v1852_v37  ;;  %v1837_v20 = vadd.f32 %v1836_v19, %v1835_v30  ;;  %v1840_v4 = vadd.f32 %v1827_v39, %v1826_v34  ;;  %v1841_v36 = vsel %vm413_vm0, %v1828_v33, 0.0  ;;  %v2257_v30 = vld [vmem:[%s335_s24 + $0x28] sm:$0xff]  ;;  %v2258_v34 = vld [vmem:[%s335_s24 + $0x30] sm:$0xff]  ;;  %v2259_v37 = vld [vmem:[%s335_s24 + $0x38] sm:$0xff] }
 0x263   : > { %v2260_v39 = vld [vmem:[%s335_s24 + $0x40] sm:$0xff]  ;;  %v2261_v33 = vld [vmem:[%s335_s24 + $0x48] sm:$0xff]  ;;  %v2263_v19 = vld [vmem:[%s335_s24 + $0x58] sm:$0xff] }
 0x264   : > { %1838 = vadd.xlane.f32.xlu1 %v1837_v20  ;;  %v1842_v7 = vadd.f32 %v1841_v36, %v1840_v4  ;;  %v2262_v20 = vld [vmem:[%s335_s24 + $0x50] sm:$0xff] }
 0x266   : > { %1843 = vadd.xlane.f32.xlu0 %v1842_v7 }
 0x275   : > { %1917 = vperm.xlu1 %2703, %v1894_v26  }
 0x279   : > { %1912 = vperm.xlu1 %2703, %v1893_v41  }
 0x27c   : > { %1907 = vperm.xlu0 %2704, %v1892_v40  }
 0x27d   : > { %1897 = vperm.xlu1 %2703, %v1890_v42  }
 0x280   : > { %2278 = vrot.lane.b32.xlu0 %v2253_v10, %s2748_s16 }
 0x281   : > { %1902 = vperm.xlu1 %2703, %v1891_v43  }
 0x284   : > { %2282 = vrot.lane.b32.xlu0 %v2255_v27, %s2748_s16 }
 0x285   : > { %2093 = vperm.xlu1 %2703, %v2087_v44  }
 0x288   : > { %2286 = vrot.lane.b32.xlu0 %v2257_v30, %s2748_s16 }
 0x289   : > { %2098 = vperm.xlu1 %2703, %v2088_v45  }
 0x28c   : > { %2290 = vrot.lane.b32.xlu0 %v2259_v37, %s2748_s16 }
 0x28d   : > { %2103 = vperm.xlu1 %2703, %v2089_v46  }
 0x290   : > { %2294 = vrot.lane.b32.xlu0 %v2261_v33, %s2748_s16 }
 0x291   : > { %2108 = vperm.xlu1 %2703, %v2090_v47  }
 0x294   : > { %2298 = vrot.lane.b32.xlu0 %v2263_v19, %s2748_s16 }
 0x2e7   : > { %v1849_v57 = vpop.xlane.xlu1 %1848 }
 0x2e8   : > { %v1857_v59 = vmul.f32 0.00390625, %v1849_v57 }
 0x2ea   : > { %v1861_v60 = vadd.f32 1e-05, %v1857_v59 }
 0x2eb   : > { %v1854_v9 = vpop.xlane.xlu0 %1853 }
 0x2ec   : > { %v1858_v54 = vmul.f32 0.00390625, %v1854_v9  ;;  %2728 = vrsqrt.f32 %v1861_v60 }
 0x2ed   : > { %v1839_v6 = vpop.xlane.xlu1 %1838 }
 0x2ee   : > { %v1855_v13 = vmul.f32 0.00390625, %v1839_v6  ;;  %v1862_v18 = vadd.f32 1e-05, %v1858_v54 }
 0x2ef   : > { %v1844_v53 = vpop.xlane.xlu0 %1843 }
 0x2f0   : > { %v1859_v58 = vadd.f32 1e-05, %v1855_v13  ;;  %2730 = vrsqrt.f32 %v1862_v18  ;;  %v1856_v29 = vmul.f32 0.00390625, %v1844_v53 }
 0x2f1   : > { %v1918_v4 = vpop.permute.xlu1 %1917 }
 0x2f2   : > { %2732 = vrsqrt.f32 %v1859_v58  ;;  %v1860_v0 = vadd.f32 1e-05, %v1856_v29 }
 0x2f4   : > { %2734 = vrsqrt.f32 %v1860_v0 }
 0x2f5   : > { %v1913_v42 = vpop.permute.xlu1 %1912 }
 0x2f7   : > { %v1908_v54 = vpop.permute.xlu0 %1907 }
 0x2f9   : > { %v2729_v32 = vpop.eup %2728  ;;  %v1898_v59 = vpop.permute.xlu1 %1897 }
 0x2fa   : > { %v1874_v1 = vmul.f32 %v2729_v32, %v3317_v50  ;;  %v1875_v63 = vmul.f32 %v2729_v32, %v3319_v51  ;;  %v1873_v31 = vmul.f32 %v2729_v32, %v3315_v49 }
 0x2fd   : > { %v2731_v15 = vpop.eup %2730 }
 0x2fe   : > { %v1877_v55 = vmul.f32 %v2731_v15, %v3329_v61  ;;  %v1878_v23 = vmul.f32 %v2731_v15, %v3331_v16  ;;  %v1876_v48 = vmul.f32 %v2731_v15, %v3327_v62  ;;  %v1903_v15 = vpop.permute.xlu1 %1902 }
 0x2ff   : > { %v2733_v8 = vpop.eup %2732 }
 0x300   : > { %v1888_v17 = vpack.c.bf16 %v1877_v55, %v1874_v1  ;;  %v1889_v22 = vpack.c.bf16 %v1878_v23, %v1875_v63  ;;  %v1887_v38 = vpack.c.bf16 %v1876_v48, %v1873_v31  ;;  %v1868_v21 = vmul.f32 %v2733_v8, %v3336_v11  ;;  %v2723_v11 = vld [vmem:[%s3505_s3] sm:$0xff]  }
 0x301   : > { %v2735_v14 = vpop.eup %2734  ;;  %v1869_v25 = vmul.f32 %v2733_v8, %v3338_v56  ;;  %v1867_v50 = vmul.f32 %v2733_v8, %v3333_v52  ;;  %v3561_v52 = vmov 0   ;;  %v2724_v56 = vld [vmem:[%s3505_s3 + $0x8] sm:$0xff]  }
 0x302   : > { %1954 = vmatprep.subr.bf16.mxu1 %v1888_v17  ;;  %2656 = vmatpush3.bf16.msra.mxu0 %v1889_v22  ;;  %v1871_v51 = vmul.f32 %v2735_v14, %v3353_v2  ;;  %v1872_v61 = vmul.f32 %v2735_v14, %v3355_v3  ;;  %v1870_v49 = vmul.f32 %v2735_v14, %v3350_v35  ;;  %v2725_v35 = vld [vmem:[%s3505_s3 + $0x10] ss:$0 sps:$4 sm:$0xff]   ;;  %v3426_v2 = vld [vmem:[%s3507_s5] sm:$0xff]  }
 0x303   : > { %1955 = vmatpush1.bf16.msra.mxu1 %v1887_v38  ;;  %2657 = vmatprep.subr.bf16.mxu0 %v2753_v5  ;;  %v2252_v3 = vld [vmem:[%s335_s24] sm:$0xff] }
 0x304   : > { %v1885_v62 = vpack.c.bf16 %v1871_v51, %v1868_v21  ;;  %v1886_v16 = vpack.c.bf16 %v1872_v61, %v1869_v25  ;;  %v1884_v24 = vpack.c.bf16 %v1870_v49, %v1867_v50  ;;  %2276 = vrot.lane.b32.xlu1 %v2252_v3, %s2748_s16 }
 0x306   : > { %1956 = vmatprep.subr.bf16.mxu1 %v1885_v62  ;;  %2658 = vmatpush3.bf16.msra.mxu0 %v1886_v16 }
 0x307   : > { %1957 = vmatpush1.bf16.msra.mxu1 %v1884_v24 }
 0x308   : > { %2280 = vrot.lane.b32.xlu1 %v2254_v28, %s2748_s16 }
 0x309   : > { %2660 = vmatmul.mubr.msk.bf16.vlgmr.msra.gmra.mxu0 %vm413_vm0, %v2723_v11 }
 0x30a   : > { %2522 = vmatmul.mubr.msk.bf16.vlgmr.msra.gmra.mxu1 %vm413_vm0, %v2723_v11  ;;  %2663 = vmatprep.mubr.msk.bf16.mxu0 %vm2754_vm9, %v2753_v5 }
 0x30b   : > { %1984 = vmatprep.mubr.bf16.mxu1 %v3561_v52 }
 0x30c   : > { %2284 = vrot.lane.b32.xlu1 %v2256_v12, %s2748_s16 }
 0x310   : > { %2288 = vrot.lane.b32.xlu1 %v2258_v34, %s2748_s16 }
 0x311   : > { %2664 = vmatmul.mubr.msk.bf16.gmra.mxu0 %vm413_vm0, %v2724_v56 }
 0x312   : > { %2523 = vmatmul.mubr.msk.bf16.gmra.mxu1 %vm413_vm0, %v2724_v56  ;;  %2667 = vmatprep.mubr.msk.bf16.mxu0 %vm2754_vm9, %v2753_v5 }
 0x313   : > { %1994 = vmatprep.mubr.bf16.mxu1 %v3561_v52 }
 0x314   : > { %2292 = vrot.lane.b32.xlu1 %v2260_v39, %s2748_s16 }
 0x318   : > { %2296 = vrot.lane.b32.xlu1 %v2262_v20, %s2748_s16 }
 0x319   : > { %2668 = vmatmul.mubr.msk.bf16.gmra.mxu0 %vm413_vm0, %v2725_v35 }
 0x31a   : > { %2524 = vmatmul.mubr.msk.bf16.gmra.mxu1 %vm413_vm0, %v2725_v35  ;;  %2677 = vmatprep.mubr.msk.bf16.mxu0 %vm2121_vm10, %v3426_v2 }
 0x31b   : > { %2170 = vmatprep.mubr.bf16.mxu1 %v3561_v52 }
 0x3c9   : > { %v2037_v36 = vpop.f32.mrf.mxu0 }
 0x3ca   : > { %v3446_v7 = vpop.f32.mrf.mxu1  ;;  %v2038_v29 = vadd.f32 %v2037_v36, %v1898_v59 }
 0x3cb   : > { %v2661_v5 = vpop.f32.mrf.mxu0  ;;  %v1977_v20 = vadd.f32 %v3446_v7, %v1898_v59  ;;  %v2094_v7 = vpop.permute.xlu1 %2093 }
 0x3cc   : > { %v1978_v26 = vpop.f32.mrf.mxu1  ;;  %v2061_v25 = vmax.f32 %v2038_v29, 0.0 }
 0x3cd   : > { %v2040_v40 = vpop.f32.mrf.mxu0  ;;  %v1979_v27 = vadd.f32 %v1978_v26, %v1898_v59 }
 0x3ce   : > { %v1980_v41 = vpop.f32.mrf.mxu1  ;;  %v2041_v23 = vadd.f32 %v2040_v40, %v1903_v15 }
 0x3cf   : > { %v2662_v43 = vpop.f32.mrf.mxu0  ;;  %v1981_v34 = vadd.f32 %v1980_v41, %v1903_v15  ;;  %v2060_v5 = vmax.f32 %v1979_v27, 0.0 }
 0x3d0   : > { %v1982_v44 = vpop.f32.mrf.mxu1  ;;  %v2064_v56 = vmax.f32 %v2041_v23, 0.0  ;;  %v2727_v43 = vld [vmem:[%s3507_s5 + $0x8] sm:$0xff]  }
 0x3d1   : > { %v2045_v45 = vpop.f32.mrf.mxu0  ;;  %v1983_v49 = vadd.f32 %v1982_v44, %v1903_v15  ;;  %v2062_v26 = vmax.f32 %v1981_v34, 0.0 }
 0x3d2   : > { %v1986_v46 = vpop.f32.mrf.mxu1  ;;  %v2046_v13 = vadd.f32 %v2045_v45, %v1908_v54  ;;  %v2099_v45 = vpop.permute.xlu1 %2098 }
 0x3d3   : > { %v2665_v47 = vpop.f32.mrf.mxu0  ;;  %v1987_v35 = vadd.f32 %v1986_v46, %v1908_v54  ;;  %v2063_v39 = vmax.f32 %v1983_v49, 0.0 }
 0x3d4   : > { %v1988_v57 = vpop.f32.mrf.mxu1  ;;  %v2067_v31 = vmax.f32 %v2046_v13, 0.0 }
 0x3d5   : > { %v2048_v60 = vpop.f32.mrf.mxu0  ;;  %v1989_v22 = vadd.f32 %v1988_v57, %v1908_v54  ;;  %v2065_v36 = vmax.f32 %v1987_v35, 0.0  ;;  %v2079_v41 = vpack.c.bf16 %v2063_v39, %v2060_v5  ;;  %v2279_v57 = vpop.permute.xlu0 %2278 }
 0x3d6   : > { %v1990_v9 = vpop.f32.mrf.mxu1  ;;  %v2049_v18 = vadd.f32 %v2048_v60, %v1913_v42  ;;  %v2104_v46 = vpop.permute.xlu1 %2103 }
 0x3d7   : > { %v2666_v6 = vpop.f32.mrf.mxu0  ;;  %v1991_v50 = vadd.f32 %v1990_v9, %v1913_v42  ;;  %v2066_v12 = vmax.f32 %v1989_v22, 0.0 }
 0x3d8   : > { %v1992_v53 = vpop.f32.mrf.mxu1  ;;  %v2070_v48 = vmax.f32 %v2049_v18, 0.0 }
 0x3d9   : > { %v2053_v58 = vpop.f32.mrf.mxu0  ;;  %v1993_v1 = vadd.f32 %v1992_v53, %v1913_v42  ;;  %v2068_v37 = vmax.f32 %v1991_v50, 0.0  ;;  %v2059_v42 = vmax.f32 %v1977_v20, 0.0  ;;  %v2283_v60 = vpop.permute.xlu0 %2282 }
 0x3da   : > { %v2054_v0 = vadd.f32 %v2053_v58, %v1918_v4  ;;  %v1996_v32 = vpop.f32.mrf.mxu1  ;;  %v2083_v3 = vpack.c.bf16 %v2070_v48, %v2067_v31  ;;  %v3461_v47 = vpop.permute.xlu1 %2108 }
 0x3db   : > { %v1997_v63 = vadd.f32 %v1996_v32, %v1918_v4  ;;  %v2669_v55 = vpop.f32.mrf.mxu0  ;;  %v2069_v62 = vmax.f32 %v1993_v1, 0.0  ;;  %v2081_v40 = vpack.c.bf16 %v2068_v37, %v2065_v36  ;;  %v2078_v44 = vpack.c.bf16 %v2062_v26, %v2059_v42 }
 0x3dc   : > { %v2073_v8 = vmax.f32 %v2054_v0, 0.0  ;;  %v1998_v17 = vpop.f32.mrf.mxu1 }
 0x3dd   : > { %v2071_v38 = vmax.f32 %v1997_v63, 0.0  ;;  %v1999_v14 = vadd.f32 %v1998_v17, %v1918_v4  ;;  %v2056_v21 = vpop.f32.mrf.mxu0  ;;  %v2082_v33 = vpack.c.bf16 %v2069_v62, %v2066_v12  ;;  %v2080_v4 = vpack.c.bf16 %v2064_v56, %v2061_v25  ;;  %v2287_v54 = vpop.permute.xlu0 %2286 }
 0x3de   : > { %v2086_v51 = vpack.c.bf16 %v2073_v8, %v2073_v8  ;;  %v2000_v61 = vpop.f32.mrf.mxu1  ;;  %v2277_v59 = vpop.permute.xlu1 %2276 }
 0x3df   : > { %v2084_v16 = vpack.c.bf16 %v2071_v38, %v2071_v38  ;;  %v2072_v24 = vmax.f32 %v1999_v14, 0.0  ;;  %v2670_v11 = vpop.f32.mrf.mxu0  ;;  %v2301_v14 = vsel %vm983_vm4, %v2277_v59, %v2279_v57 }
 0x3e0   : > { %v2001_v10 = vpop.f32.mrf.mxu1  ;;  %2681 = vmatprep.subr.msk.bf16.mxu0 %vm2128_vm11, %v2086_v51  ;;  %v2136_v28 = vsel %vm2128_vm11, %v2086_v51, 0 }
 0x3e1   : > { %v2085_v30 = vpack.c.bf16 %v2072_v24, %v2072_v24  ;;  %2672 = vmatpush3.bf16.msra.mxu0 %v2136_v28  ;;  %v2130_v19 = vsel %vm2128_vm11, %v2084_v16, 0  ;;  %v2291_v13 = vpop.permute.xlu0 %2290 }
 0x3e2   : > { %2673 = vmatprep.subr.bf16.mxu0 %v2083_v3  ;;  %v2281_v9 = vpop.permute.xlu1 %2280 }
 0x3e3   : > { %2530 = vmatprep.subr.msk.bf16.mxu1 %vm2128_vm11, %v2085_v30  ;;  %v2302_v16 = vsel %vm983_vm4, %v2279_v57, %v2281_v9 }
 0x3e4   : > { %2149 = vmatpush1.bf16.msra.mxu1 %v2130_v19 }
 0x3e5   : > { %2150 = vmatprep.subr.bf16.mxu1 %v2082_v33  ;;  %2674 = vmatpush3.bf16.msra.mxu0 %v2083_v3 }
 0x3e6   : > { %2675 = vmatprep.subr.bf16.mxu0 %v2080_v4  ;;  %v2285_v6 = vpop.permute.xlu1 %2284 }
 0x3e7   : > { %v2303_v28 = vsel %vm983_vm4, %v2283_v60, %v2285_v6  ;;  %v2304_v39 = vsel %vm983_vm4, %v2285_v6, %v2287_v54 }
 0x3e8   : > { %2151 = vmatpush1.bf16.msra.mxu1 %v2081_v40 }
 0x3e9   : > { %2152 = vmatprep.subr.bf16.mxu1 %v2079_v41  ;;  %2676 = vmatpush3.bf16.msra.mxu0 %v2080_v4 }
 0x3ea   : > { %v2289_v18 = vpop.permute.xlu1 %2288 }
 0x3eb   : > { %v2305_v36 = vsel %vm983_vm4, %v2289_v18, %v2291_v13 }
 0x3ec   : > { %2153 = vmatpush1.bf16.msra.mxu1 %v2078_v44  ;;  %2678 = vmatmul.mubr.msk.bf16.vlgmr.msra.gmra.mxu0 %vm2121_vm10, %v2727_v43 }
 0x3ee   : > { %v2293_v29 = vpop.permute.xlu1 %2292 }
 0x3ef   : > { %2531 = vmatmul.mubr.msk.bf16.vlgmr.msra.gmra.mxu1 %vm2121_vm10, %v3426_v2  ;;  %v3463_v2 = vpop.permute.xlu0 %2294 }
 0x3f0   : > { %2180 = vmatprep.mubr.bf16.mxu1 %v3561_v52 }
 0x3f2   : > { %v2297_v42 = vpop.permute.xlu1 %2296 }
 0x3f3   : > { %v2299_v38 = vpop.permute.xlu0 %2298  ;;  %v2307_v57 = vsel %vm983_vm4, %v3463_v2, %v2297_v42 }
 0x3f4   : > { %v2308_v59 = vsel %vm983_vm4, %v2297_v42, %v2299_v38 }
 0x3f7   : > { %2532 = vmatmul.mubr.msk.bf16.gmra.mxu1 %vm2121_vm10, %v2727_v43  ;;  %v2306_v43 = vsel %vm983_vm4, %v2291_v13, %v2293_v29 }
 0x4ac   : > { %v2679_v53 = vpop.f32.mrf.mxu0 }
 0x4ad   : > { %v2234_v52 = vadd.f32 %v2679_v53, %v2104_v46 }
 0x4ae   : > { %v2225_v58 = vpop.f32.mrf.mxu0 }
 0x4af   : > { %v2248_v0 = vmax.f32 %v2234_v52, 0.0  ;;  %v2226_v32 = vadd.f32 %v2225_v58, %v2094_v7  ;;  %v2172_v15 = vpop.f32.mrf.mxu1 }
 0x4b0   : > { %v2173_v1 = vadd.f32 %v2172_v15, %v2094_v7  ;;  %v2680_v63 = vpop.f32.mrf.mxu0 }
 0x4b1   : > { %v2242_v55 = vmax.f32 %v2226_v32, 0.0  ;;  %v2329_v23 = vadd.f32 %v2293_v29, %v2248_v0  ;;  %v2237_v31 = vadd.f32 %v2680_v63, %v3461_v47  ;;  %v2174_v48 = vpop.f32.mrf.mxu1 }
 0x4b2   : > { %v2240_v8 = vmax.f32 %v2173_v1, 0.0  ;;  %v2175_v17 = vadd.f32 %v2174_v48, %v2094_v7  ;;  %v2228_v22 = vpop.f32.mrf.mxu0 }
 0x4b3   : > { %v2323_v21 = vadd.f32 %v2281_v9, %v2242_v55  ;;  %2341 = vst.msk [vmem:[%s3469_s30 + $0x40] sm:$0xff] %vm413_vm0, %v2329_v23  ;;  %v2251_v25 = vmax.f32 %v2237_v31, 0.0  ;;  %v2229_v50 = vadd.f32 %v2228_v22, %v2099_v45  ;;  %v2176_v51 = vpop.f32.mrf.mxu1 }
 0x4b4   : > { %v2321_v61 = vadd.f32 %v2301_v14, %v2240_v8  ;;  %v2241_v49 = vmax.f32 %v2175_v17, 0.0  ;;  %v2177_v62 = vadd.f32 %v2176_v51, %v2099_v45 }
 0x4b5   : > { %2335 = vst.msk [vmem:[%s3469_s30 + $0x10] sm:$0xff] %vm413_vm0, %v2323_v21  ;;  %v2245_v24 = vmax.f32 %v2229_v50, 0.0  ;;  %v2332_v11 = vadd.f32 %v2299_v38, %v2251_v25  ;;  %v2178_v56 = vpop.f32.mrf.mxu1 }
 0x4b6   : > { %2333 = vst [vmem:[%s3469_s30] sm:$0xff] %v2321_v61  ;;  %v2322_v35 = vadd.f32 %v2302_v16, %v2241_v49  ;;  %v2243_v3 = vmax.f32 %v2177_v62, 0.0  ;;  %v2179_v10 = vadd.f32 %v2178_v56, %v2099_v45 }
 0x4b7   : > { %v2326_v27 = vadd.f32 %v2287_v54, %v2245_v24  ;;  %2344 = vst.msk [vmem:[%s3469_s30 + $0x58] sm:$0xff] %vm413_vm0, %v2332_v11  ;;  %v2182_v12 = vpop.f32.mrf.mxu1 }
 0x4b8   : > { %2334 = vst [vmem:[%s3469_s30 + $0x8] sm:$0xff] %v2322_v35  ;;  %v2324_v30 = vadd.f32 %v2303_v28, %v2243_v3  ;;  %v2244_v34 = vmax.f32 %v2179_v10, 0.0  ;;  %v2183_v37 = vadd.f32 %v2182_v12, %v2104_v46 }
 0x4b9   : > { %2338 = vst.msk [vmem:[%s3469_s30 + $0x28] sm:$0xff] %vm413_vm0, %v2326_v27  ;;  %v2184_v33 = vpop.f32.mrf.mxu1 }
 0x4ba   : > { %2336 = vst [vmem:[%s3469_s30 + $0x18] sm:$0xff] %v2324_v30  ;;  %v2325_v19 = vadd.f32 %v2304_v39, %v2244_v34  ;;  %v2246_v20 = vmax.f32 %v2183_v37, 0.0  ;;  %v2185_v4 = vadd.f32 %v2184_v33, %v2104_v46 }
 0x4bb   : > { %v2186_v5 = vpop.f32.mrf.mxu1 }
 0x4bc   : > { %2337 = vst [vmem:[%s3469_s30 + $0x20] sm:$0xff] %v2325_v19  ;;  %v2327_v26 = vadd.f32 %v2305_v36, %v2246_v20  ;;  %v2247_v40 = vmax.f32 %v2185_v4, 0.0  ;;  %v2187_v41 = vadd.f32 %v2186_v5, %v3461_v47 }
 0x4bd   : > { %v2188_v44 = vpop.f32.mrf.mxu1 }
 0x4be   : > { %2339 = vst [vmem:[%s3469_s30 + $0x30] sm:$0xff] %v2327_v26  ;;  %v2328_v7 = vadd.f32 %v2306_v43, %v2247_v40  ;;  %v2249_v45 = vmax.f32 %v2187_v41, 0.0  ;;  %v2189_v46 = vadd.f32 %v2188_v44, %v3461_v47 }
 0x4c0   : > { %2340 = vst [vmem:[%s3469_s30 + $0x38] sm:$0xff] %v2328_v7  ;;  %v2250_v60 = vmax.f32 %v2189_v46, 0.0  ;;  %v2330_v9 = vadd.f32 %v2307_v57, %v2249_v45 }
 0x4c2   : > { %v2331_v54 = vadd.f32 %v2308_v59, %v2250_v60  ;;  %2342 = vst [vmem:[%s3469_s30 + $0x48] sm:$0xff] %v2330_v9 }
 0x4c4   : > { %2343 = vst [vmem:[%s3469_s30 + $0x50] sm:$0xff] %v2331_v54 }
 0x4c5 PF: > { %s18_s27 = sadd.s32 1, %s2742_s27  }
 0x4c6   : > { %p15_p4 = scmp.ge.s32.totalorder %s18_s27, 4  }
 0x4c8   :  { %17 = sbr.rel (!%p15_p4) target bundleno = 1 (0x1), region = 96 }

// kernel: misins_res_block_forward.2
= control target key start
LH: loop header
LB: loop body
LE: loop exit
PB: predicated region body
PF: predicated region fallthrough
CT: control target
= control target key end

     0   :  { %s2654_s24 = smov 0   ;;  %s3318_s0 = inlined_call_operand.vmem [shape: f32[2,32,384], index: 0, kind: input, shape index: {}]   ;;  %s3319_s1 = inlined_call_operand.vmem [shape: bf16[9,32,32], index: 1, kind: input, shape index: {}]   ;;  %s3320_s2 = inlined_call_operand.vmem [shape: bf16[40,32], index: 2, kind: input, shape index: {}]   ;;  %s3321_s3 = inlined_call_operand.vmem [shape: f32[2,40,1], index: 3, kind: input, shape index: {}]   ;;  %s3322_s4 = inlined_call_operand.vmem [shape: bf16[32,40], index: 4, kind: input, shape index: {}]   ;;  %s3323_s5 = inlined_call_operand.vmem [shape: f32[32,1], index: 5, kind: input, shape index: {}]   ;;  %s3324_s6 = inlined_call_operand.vmem [shape: f32[1,288], index: 6, kind: input, shape index: {}]   ;;  %s3325_s7 = inlined_call_operand.vmem [shape: f32[2,32,288], index: 7, kind: output, shape index: {}]  }
   0x1 LB: > { %s2284_s25 = sadd.s32 4294967295, %s2601_s24   ;;  %p2288_p0 = scmp.ge.s32.totalorder %s2601_s24, 1  ;;  %s2601_s24 = sphi %s2654_s24, %s17_s24  }
   0x2   : > { %p247_p1 = scmp.lt.s32.totalorder %s2601_s24, 3 }
   0x4   : > { %p248_p2 = pnand %p2288_p0, %p247_p1 }
   0x6   : > { %251 = sbr.rel (%p248_p2) target bundleno = 1219 (0x4c3), region = 48 }
   0xb   : > { %p284_p3 = scmp.lt.s32.totalorder %s2284_s25, 1  ;;  %v3326_v7 = vmov 0   ;;  %s2604_s30 = smov 127   ;;  %vm366_vm0 = vcmask 261120   ;;  %v2686_v17 = vld [vmem:[%s3319_s1 + $0x10] sm:$0xff]   ;;  %vm355_vm1 = vcmask 1039360  }
   0xc   : > { %405 = vmatprep.mubr.bf16.mxu0 %v3326_v7  ;;  %2562 = vset.pattern.permute.xlu1 %v3326_v7  ;;  %s2605_s10 = smov 126   ;;  %s2606_s11 = smov 110   ;;  %v2565_v29 = vld [vmem:[%s3319_s1 + $0x18] sm:$0xff]   ;;  %vm620_vm2 = vcmask 1031168   ;;  %v2566_v34 = vld [vmem:[%s3319_s1] sm:$0xff]   ;;  %vm778_vm3 = vcmask 900096  }
   0xd   : > { %s3378_s25 = smov (!%p284_p3, %s2284_s25), 1  ;;  %2563 = vset.pattern.permute.xlu0 %v3326_v7  ;;  %2446 = vmatprep.mubr.msk.bf16.mxu1 %vm366_vm0, %v2686_v17  ;;  %s2607_s12 = smov 109   ;;  %v2567_v40 = vld [vmem:[%s3319_s1 + $0x8] sm:$0xff]   ;;  %v2568_v42 = vld [vmem:[%s3319_s1 + $0x20] sm:$0xff]   ;;  %vm936_vm4 = vcmask 891904   ;;  %v2570_v58 = vld [vmem:[%s3319_s1 + $0x30] sm:$0xff]  }
   0xe   : > { %s2541_s26 = smul.u32 96, %s3378_s25  ;;  %s2608_s13 = smov 108   ;;  %v2569_v49 = vld [vmem:[%s3319_s1 + $0x28] sm:$0xff]   ;;  %vm1094_vm5 = vcmask 883712   ;;  %vm1252_vm6 = vcmask 752640   ;;  %vm1410_vm7 = vcmask 744448  }
   0xf   : > { %s2609_s14 = smov 92   ;;  %s2610_s15 = smov 91   ;;  %vm1568_vm8 = vcmask 736256   ;;  %vm2613_vm9 = vmmov 0   ;;  %vm2074_vm10 = vcmask 326656   ;;  %vm2081_vm11 = vcmask 1043456  }
  0x10   : > { %s288_s29 = scalar_lea.vmem %s3318_s0, %s2541_s26  ;;  %s2611_s16 = smov 90  }
  0x11   : > { %v307_v0 = vld [vmem:[%s288_s29 + $0x38] sm:$0xff]  ;;  %v310_v1 = vld [vmem:[%s288_s29 + $0x50] sm:$0xff]  ;;  %v309_v4 = vld [vmem:[%s288_s29 + $0x48] sm:$0xff]  ;;  %s3297_s17 = scalar_lea.vmem %s3325_s7, %s2541_s26 }
  0x12   : > { %v306_v2 = vld [vmem:[%s288_s29 + $0x30] sm:$0xff]  ;;  %v2670_v3 = vpack.c.bf16 %v310_v1, %v307_v0  ;;  %v308_v5 = vld [vmem:[%s288_s29 + $0x40] sm:$0xff]  ;;  %v311_v6 = vld [vmem:[%s288_s29 + $0x58] sm:$0xff] }
  0x13   : > { %v2674_v8 = vpack.c.bf16 %v309_v4, %v306_v2  ;;  %v301_v9 = vld [vmem:[%s288_s29 + $0x8] sm:$0xff]  ;;  %v304_v10 = vld [vmem:[%s288_s29 + $0x20] sm:$0xff]  ;;  %v2678_v11 = vpack.c.bf16 %v311_v6, %v308_v5  ;;  %v302_v12 = vld [vmem:[%s288_s29 + $0x10] sm:$0xff] }
  0x14   : > { %351 = vrot.lane.b32.xlu0 %v2670_v3, %s2604_s30  ;;  %v305_v13 = vld [vmem:[%s288_s29 + $0x28] sm:$0xff]  ;;  %v300_v14 = vld [vmem:[%s288_s29] sm:$0xff]  ;;  %v2681_v15 = vpack.c.bf16 %v304_v10, %v301_v9  ;;  %v303_v16 = vld [vmem:[%s288_s29 + $0x18] sm:$0xff] }
  0x15   : > { %349 = vrot.lane.b32.xlu1 %v2674_v8, %s2604_s30  ;;  %v2691_v18 = vpack.c.bf16 %v305_v13, %v302_v12  ;;  %v2694_v19 = vpack.c.bf16 %v303_v16, %v300_v14  ;;  %v2571_v0 = vld [vmem:[%s3319_s1 + $0x38] sm:$0xff]   ;;  %v2572_v2 = vld [vmem:[%s3319_s1 + $0x40] sm:$0xff]   ;;  %v2573_v10 = vld [vmem:[%s3319_s1 + $0x48] sm:$0xff]  }
  0x18   : > { %353 = vrot.lane.b32.xlu0 %v2678_v11, %s2604_s30 }
  0x19   : > { %345 = vrot.lane.b32.xlu1 %v2681_v15, %s2604_s30 }
  0x1c   : > { %347 = vrot.lane.b32.xlu0 %v2691_v18, %s2604_s30 }
  0x1d   : > { %343 = vrot.lane.b32.xlu1 %v2694_v19, %s2604_s30 }
  0x20   : > { %616 = vrot.lane.b32.xlu0 %v2670_v3, %s2605_s10 }
  0x21   : > { %618 = vrot.lane.b32.xlu1 %v2678_v11, %s2605_s10 }
  0x24   : > { %614 = vrot.lane.b32.xlu0 %v2674_v8, %s2605_s10 }
  0x25   : > { %610 = vrot.lane.b32.xlu1 %v2681_v15, %s2605_s10 }
  0x28   : > { %612 = vrot.lane.b32.xlu0 %v2691_v18, %s2605_s10 }
  0x29   : > { %608 = vrot.lane.b32.xlu1 %v2694_v19, %s2605_s10 }
  0x2c   : > { %776 = vrot.lane.b32.xlu0 %v2678_v11, %s2606_s11 }
  0x2d   : > { %774 = vrot.lane.b32.xlu1 %v2670_v3, %s2606_s11 }
  0x30   : > { %772 = vrot.lane.b32.xlu0 %v2674_v8, %s2606_s11 }
  0x31   : > { %770 = vrot.lane.b32.xlu1 %v2691_v18, %s2606_s11 }
  0x34   : > { %768 = vrot.lane.b32.xlu0 %v2681_v15, %s2606_s11 }
  0x35   : > { %766 = vrot.lane.b32.xlu1 %v2694_v19, %s2606_s11 }
  0x38   : > { %932 = vrot.lane.b32.xlu0 %v2670_v3, %s2607_s12 }
  0x39   : > { %934 = vrot.lane.b32.xlu1 %v2678_v11, %s2607_s12 }
  0x3c   : > { %930 = vrot.lane.b32.xlu0 %v2674_v8, %s2607_s12 }
  0x3d   : > { %926 = vrot.lane.b32.xlu1 %v2681_v15, %s2607_s12 }
  0x40   : > { %928 = vrot.lane.b32.xlu0 %v2691_v18, %s2607_s12 }
  0x41   : > { %924 = vrot.lane.b32.xlu1 %v2694_v19, %s2607_s12 }
  0x44   : > { %1092 = vrot.lane.b32.xlu0 %v2678_v11, %s2608_s13 }
  0x45   : > { %1090 = vrot.lane.b32.xlu1 %v2670_v3, %s2608_s13 }
  0x48   : > { %1088 = vrot.lane.b32.xlu0 %v2674_v8, %s2608_s13 }
  0x49   : > { %1086 = vrot.lane.b32.xlu1 %v2691_v18, %s2608_s13 }
  0x4c   : > { %1084 = vrot.lane.b32.xlu0 %v2681_v15, %s2608_s13 }
  0x4d   : > { %1082 = vrot.lane.b32.xlu1 %v2694_v19, %s2608_s13  ;;  %s2542_s13 = smul.u32 40, %s3378_s25 }
  0x50   : > { %1248 = vrot.lane.b32.xlu0 %v2670_v3, %s2609_s14 }
  0x51   : > { %1250 = vrot.lane.b32.xlu1 %v2678_v11, %s2609_s14 }
  0x54   : > { %1246 = vrot.lane.b32.xlu0 %v2674_v8, %s2609_s14 }
  0x55   : > { %1242 = vrot.lane.b32.xlu1 %v2681_v15, %s2609_s14 }
  0x58   : > { %1244 = vrot.lane.b32.xlu0 %v2691_v18, %s2609_s14 }
  0x59   : > { %1240 = vrot.lane.b32.xlu1 %v2694_v19, %s2609_s14 }
  0x5c   : > { %1408 = vrot.lane.b32.xlu0 %v2678_v11, %s2610_s15 }
  0x5d   : > { %1406 = vrot.lane.b32.xlu1 %v2670_v3, %s2610_s15 }
  0x60   : > { %1404 = vrot.lane.b32.xlu0 %v2674_v8, %s2610_s15 }
  0x61   : > { %1402 = vrot.lane.b32.xlu1 %v2691_v18, %s2610_s15 }
  0x64   : > { %1400 = vrot.lane.b32.xlu0 %v2681_v15, %s2610_s15 }
  0x65   : > { %1398 = vrot.lane.b32.xlu1 %v2694_v19, %s2610_s15 }
  0x68   : > { %1564 = vrot.lane.b32.xlu0 %v2670_v3, %s2611_s16 }
  0x69   : > { %1566 = vrot.lane.b32.xlu1 %v2678_v11, %s2611_s16 }
  0x6c   : > { %1562 = vrot.lane.b32.xlu0 %v2674_v8, %s2611_s16 }
  0x6d   : > { %1558 = vrot.lane.b32.xlu1 %v2681_v15, %s2611_s16 }
  0x70   : > { %1560 = vrot.lane.b32.xlu0 %v2691_v18, %s2611_s16 }
  0x71   : > { %1556 = vrot.lane.b32.xlu1 %v2694_v19, %s2611_s16  ;;  %s293_s16 = scalar_lea.vmem %s3321_s3, %s2542_s13 }
  0x86   : > { %v352_v20 = vpop.permute.xlu0 %351 }
  0x87   : > { %v350_v21 = vpop.permute.xlu1 %349 }
  0x88   : > { %v358_v25 = vsel %vm355_vm1, %v350_v21, %v352_v20 }
  0x8a   : > { %v354_v22 = vpop.permute.xlu0 %353 }
  0x8b   : > { %v346_v23 = vpop.permute.xlu1 %345  ;;  %2442 = vmatprep.subr.bf16.mxu1 %v354_v22  ;;  %v359_v24 = vsel %vm355_vm1, %v352_v20, %v354_v22 }
  0x8c   : > { %385 = vmatprep.subr.bf16.mxu0 %v359_v24  ;;  %2443 = vmatpush3.bf16.msra.mxu1 %v354_v22 }
  0x8d   : > { %386 = vmatpush1.bf16.msra.mxu0 %v358_v25  ;;  %v2575_v25 = vld [vmem:[%s3319_s1 + $0x58] sm:$0xff]  }
  0x8e   : > { %v348_v26 = vpop.permute.xlu0 %347 }
  0x8f   : > { %v344_v27 = vpop.permute.xlu1 %343  ;;  %2444 = vmatprep.subr.bf16.mxu1 %v348_v26  ;;  %v357_v28 = vsel %vm355_vm1, %v346_v23, %v348_v26 }
  0x90   : > { %387 = vmatprep.subr.bf16.mxu0 %v357_v28  ;;  %2445 = vmatpush3.bf16.msra.mxu1 %v348_v26  ;;  %v356_v30 = vsel %vm355_vm1, %v344_v27, %v346_v23  ;;  %v2576_v27 = vld [vmem:[%s3319_s1 + $0x60] sm:$0xff]  }
  0x91   : > { %388 = vmatpush1.bf16.msra.mxu0 %v356_v30  ;;  %503 = vmatprep.subr.bf16.mxu1 %v2670_v3 }
  0x92   : > { %v617_v31 = vpop.permute.xlu0 %616  ;;  %2450 = vmatprep.subr.bf16.mxu0 %v2678_v11 }
  0x93   : > { %2447 = vmatmul.mubr.msk.bf16.vlgmr.msra.gmra.mxu1 %vm366_vm0, %v2565_v29  ;;  %v619_v32 = vpop.permute.xlu1 %618 }
  0x94   : > { %2298 = vmatmul.mubr.msk.bf16.vlgmr.msra.gmra.mxu0 %vm366_vm0, %v2686_v17  ;;  %504 = vmatpush1.bf16.msra.mxu1 %v2674_v8  ;;  %v624_v36 = vsel %vm620_vm2, %v617_v31, %v619_v32 }
  0x95   : > { %505 = vmatprep.subr.bf16.mxu1 %v2681_v15  ;;  %523 = vmatprep.mubr.bf16.mxu1 %v3326_v7 }
  0x96   : > { %415 = vmatprep.mubr.bf16.mxu0 %v3326_v7  ;;  %2451 = vmatpush3.bf16.msra.mxu0 %v2678_v11  ;;  %v615_v33 = vpop.permute.xlu0 %614 }
  0x97   : > { %2452 = vmatprep.subr.bf16.mxu0 %v2691_v18  ;;  %v611_v35 = vpop.permute.xlu1 %610  ;;  %v623_v47 = vsel %vm620_vm2, %v615_v33, %v617_v31 }
  0x98   : > { %506 = vmatpush1.bf16.msra.mxu1 %v2694_v19  ;;  %v2574_v19 = vld [vmem:[%s3319_s1 + $0x50] sm:$0xff]  }
  0x99   : > { %2458 = vmatprep.subr.bf16.mxu1 %v619_v32 }
  0x9a   : > { %2453 = vmatpush3.bf16.msra.mxu0 %v2691_v18  ;;  %v613_v37 = vpop.permute.xlu0 %612 }
  0x9b   : > { %2304 = vmatmul.mubr.msk.bf16.vlgmr.msra.gmra.mxu1 %vm366_vm0, %v2566_v34  ;;  %649 = vmatprep.subr.bf16.mxu0 %v624_v36  ;;  %v609_v38 = vpop.permute.xlu1 %608  ;;  %v622_v45 = vsel %vm620_vm2, %v611_v35, %v613_v37 }
  0x9c   : > { %2299 = vmatmul.mubr.msk.bf16.gmra.mxu0 %vm366_vm0, %v2565_v29  ;;  %2459 = vmatpush3.bf16.msra.mxu1 %v619_v32  ;;  %v621_v51 = vsel %vm620_vm2, %v609_v38, %v611_v35 }
  0x9d   : > { %533 = vmatprep.mubr.bf16.mxu1 %v3326_v7  ;;  %2454 = vmatprep.mubr.msk.bf16.mxu0 %vm366_vm0, %v2566_v34  ;;  %v2577_v34 = vld [vmem:[%s3319_s1 + $0x68] sm:$0xff]  }
  0x9e   : > { %v777_v39 = vpop.permute.xlu0 %776  ;;  %2460 = vmatprep.subr.bf16.mxu1 %v613_v37 }
  0x9f   : > { %v775_v41 = vpop.permute.xlu1 %774 }
  0xa0   : > { %2461 = vmatpush3.bf16.msra.mxu1 %v613_v37  ;;  %v782_v43 = vsel %vm778_vm3, %v775_v41, %v777_v39 }
  0xa1   : > { %807 = vmatprep.subr.bf16.mxu1 %v782_v43 }
  0xa2   : > { %v773_v44 = vpop.permute.xlu0 %772 }
  0xa3   : > { %2305 = vmatmul.mubr.msk.bf16.gmra.mxu1 %vm366_vm0, %v2567_v40  ;;  %v771_v46 = vpop.permute.xlu1 %770  ;;  %v781_v52 = vsel %vm778_vm3, %v773_v44, %v775_v41 }
  0xa4   : > { %2455 = vmatmul.mubr.msk.bf16.vlgmr.msra.gmra.mxu0 %vm366_vm0, %v2567_v40  ;;  %2462 = vmatprep.mubr.msk.bf16.mxu1 %vm366_vm0, %v2568_v42 }
  0xa5   : > { %650 = vmatpush1.bf16.msra.mxu0 %v623_v47  ;;  %669 = vmatprep.mubr.bf16.mxu0 %v3326_v7  ;;  %v2579_v47 = vld [vmem:[%s3319_s1 + $0x78] sm:$0xff]  }
  0xa6   : > { %651 = vmatprep.subr.bf16.mxu0 %v622_v45  ;;  %v769_v48 = vpop.permute.xlu0 %768 }
  0xa7   : > { %v767_v50 = vpop.permute.xlu1 %766  ;;  %v780_v53 = vsel %vm778_vm3, %v769_v48, %v771_v46 }
  0xa8   : > { %v779_v56 = vsel %vm778_vm3, %v767_v50, %v769_v48  ;;  %v2580_v48 = vld [vmem:[%s3319_s1 + $0x80] sm:$0xff]  }
  0xa9   : > { %652 = vmatpush1.bf16.msra.mxu0 %v621_v51 }
  0xaa   : > { %2466 = vmatprep.subr.bf16.mxu0 %v777_v39  ;;  %v933_v54 = vpop.permute.xlu0 %932 }
  0xab   : > { %2463 = vmatmul.mubr.msk.bf16.vlgmr.msra.gmra.mxu1 %vm366_vm0, %v2569_v49  ;;  %v935_v55 = vpop.permute.xlu1 %934 }
  0xac   : > { %2314 = vmatmul.mubr.msk.bf16.vlgmr.msra.gmra.mxu0 %vm366_vm0, %v2568_v42  ;;  %808 = vmatpush1.bf16.msra.mxu1 %v781_v52  ;;  %v940_v60 = vsel %vm936_vm4, %v933_v54, %v935_v55  ;;  %v2578_v42 = vld [vmem:[%s3319_s1 + $0x70] sm:$0xff]   ;;  %v2581_v52 = vld [vmem:[%s3319_s1 + $0x88] sm:$0xff]  }
  0xad   : > { %2467 = vmatpush3.bf16.msra.mxu0 %v777_v39  ;;  %809 = vmatprep.subr.bf16.mxu1 %v780_v53 }
  0xae   : > { %2468 = vmatprep.subr.bf16.mxu0 %v771_v46  ;;  %827 = vmatprep.mubr.bf16.mxu1 %v3326_v7  ;;  %v931_v57 = vpop.permute.xlu0 %930 }
  0xaf   : > { %679 = vmatprep.mubr.bf16.mxu0 %v3326_v7  ;;  %v927_v59 = vpop.permute.xlu1 %926  ;;  %v939_v8 = vsel %vm936_vm4, %v931_v57, %v933_v54 }
  0xb0   : > { %810 = vmatpush1.bf16.msra.mxu1 %v779_v56 }
  0xb1   : > { %2469 = vmatpush3.bf16.msra.mxu0 %v771_v46  ;;  %2474 = vmatprep.subr.bf16.mxu1 %v935_v55 }
  0xb2   : > { %965 = vmatprep.subr.bf16.mxu0 %v940_v60  ;;  %v929_v61 = vpop.permute.xlu0 %928 }
  0xb3   : > { %2324 = vmatmul.mubr.msk.bf16.vlgmr.msra.gmra.mxu1 %vm366_vm0, %v2570_v58  ;;  %v925_v62 = vpop.permute.xlu1 %924  ;;  %v938_v5 = vsel %vm936_vm4, %v927_v59, %v929_v61 }
  0xb4   : > { %2315 = vmatmul.mubr.msk.bf16.gmra.mxu0 %vm366_vm0, %v2569_v49  ;;  %2475 = vmatpush3.bf16.msra.mxu1 %v935_v55  ;;  %v937_v12 = vsel %vm936_vm4, %v925_v62, %v927_v59 }
  0xb5   : > { %837 = vmatprep.mubr.bf16.mxu1 %v3326_v7  ;;  %2470 = vmatprep.mubr.msk.bf16.mxu0 %vm366_vm0, %v2570_v58 }
  0xb6   : > { %v1093_v63 = vpop.permute.xlu0 %1092  ;;  %2476 = vmatprep.subr.bf16.mxu1 %v929_v61 }
  0xb7   : > { %v1091_v1 = vpop.permute.xlu1 %1090 }
  0xb8   : > { %2477 = vmatpush3.bf16.msra.mxu1 %v929_v61  ;;  %v1098_v3 = vsel %vm1094_vm5, %v1091_v1, %v1093_v63 }
  0xb9   : > { %1123 = vmatprep.subr.bf16.mxu1 %v1098_v3 }
  0xba   : > { %v1089_v4 = vpop.permute.xlu0 %1088 }
  0xbb   : > { %2325 = vmatmul.mubr.msk.bf16.gmra.mxu1 %vm366_vm0, %v2571_v0  ;;  %v1087_v6 = vpop.permute.xlu1 %1086  ;;  %v1097_v13 = vsel %vm1094_vm5, %v1089_v4, %v1091_v1 }
  0xbc   : > { %2471 = vmatmul.mubr.msk.bf16.vlgmr.msra.gmra.mxu0 %vm366_vm0, %v2571_v0  ;;  %2478 = vmatprep.mubr.msk.bf16.mxu1 %vm366_vm0, %v2572_v2 }
  0xbd   : > { %966 = vmatpush1.bf16.msra.mxu0 %v939_v8  ;;  %985 = vmatprep.mubr.bf16.mxu0 %v3326_v7 }
  0xbe   : > { %967 = vmatprep.subr.bf16.mxu0 %v938_v5  ;;  %v1085_v9 = vpop.permute.xlu0 %1084 }
  0xbf   : > { %v1083_v11 = vpop.permute.xlu1 %1082  ;;  %v1096_v14 = vsel %vm1094_vm5, %v1085_v9, %v1087_v6 }
  0xc0   : > { %v1095_v17 = vsel %vm1094_vm5, %v1083_v11, %v1085_v9 }
  0xc1   : > { %968 = vmatpush1.bf16.msra.mxu0 %v937_v12 }
  0xc2   : > { %2482 = vmatprep.subr.bf16.mxu0 %v1093_v63  ;;  %v1249_v15 = vpop.permute.xlu0 %1248 }
  0xc3   : > { %2479 = vmatmul.mubr.msk.bf16.vlgmr.msra.gmra.mxu1 %vm366_vm0, %v2573_v10  ;;  %v1251_v16 = vpop.permute.xlu1 %1250 }
  0xc4   : > { %2334 = vmatmul.mubr.msk.bf16.vlgmr.msra.gmra.mxu0 %vm366_vm0, %v2572_v2  ;;  %1124 = vmatpush1.bf16.msra.mxu1 %v1097_v13  ;;  %v1256_v21 = vsel %vm1252_vm6, %v1249_v15, %v1251_v16 }
  0xc5   : > { %2483 = vmatpush3.bf16.msra.mxu0 %v1093_v63  ;;  %1125 = vmatprep.subr.bf16.mxu1 %v1096_v14 }
  0xc6   : > { %2484 = vmatprep.subr.bf16.mxu0 %v1087_v6  ;;  %1143 = vmatprep.mubr.bf16.mxu1 %v3326_v7  ;;  %v1247_v18 = vpop.permute.xlu0 %1246 }
  0xc7   : > { %995 = vmatprep.mubr.bf16.mxu0 %v3326_v7  ;;  %v1243_v20 = vpop.permute.xlu1 %1242  ;;  %v1255_v32 = vsel %vm1252_vm6, %v1247_v18, %v1249_v15 }
  0xc8   : > { %1126 = vmatpush1.bf16.msra.mxu1 %v1095_v17 }
  0xc9   : > { %2485 = vmatpush3.bf16.msra.mxu0 %v1087_v6  ;;  %2490 = vmatprep.subr.bf16.mxu1 %v1251_v16 }
  0xca   : > { %1281 = vmatprep.subr.bf16.mxu0 %v1256_v21  ;;  %v1245_v22 = vpop.permute.xlu0 %1244 }
  0xcb   : > { %2344 = vmatmul.mubr.msk.bf16.vlgmr.msra.gmra.mxu1 %vm366_vm0, %v2574_v19  ;;  %v1241_v23 = vpop.permute.xlu1 %1240  ;;  %v1254_v30 = vsel %vm1252_vm6, %v1243_v20, %v1245_v22 }
  0xcc   : > { %2335 = vmatmul.mubr.msk.bf16.gmra.mxu0 %vm366_vm0, %v2573_v10  ;;  %2491 = vmatpush3.bf16.msra.mxu1 %v1251_v16  ;;  %v1253_v35 = vsel %vm1252_vm6, %v1241_v23, %v1243_v20 }
  0xcd   : > { %1153 = vmatprep.mubr.bf16.mxu1 %v3326_v7  ;;  %2486 = vmatprep.mubr.msk.bf16.mxu0 %vm366_vm0, %v2574_v19 }
  0xce   : > { %v1409_v24 = vpop.permute.xlu0 %1408  ;;  %2492 = vmatprep.subr.bf16.mxu1 %v1245_v22 }
  0xcf   : > { %v1407_v26 = vpop.permute.xlu1 %1406 }
  0xd0   : > { %2493 = vmatpush3.bf16.msra.mxu1 %v1245_v22  ;;  %v1414_v28 = vsel %vm1410_vm7, %v1407_v26, %v1409_v24 }
  0xd1   : > { %1439 = vmatprep.subr.bf16.mxu1 %v1414_v28 }
  0xd2   : > { %v1405_v29 = vpop.permute.xlu0 %1404 }
  0xd3   : > { %2345 = vmatmul.mubr.msk.bf16.gmra.mxu1 %vm366_vm0, %v2575_v25  ;;  %v1403_v31 = vpop.permute.xlu1 %1402  ;;  %v1413_v37 = vsel %vm1410_vm7, %v1405_v29, %v1407_v26 }
  0xd4   : > { %2487 = vmatmul.mubr.msk.bf16.vlgmr.msra.gmra.mxu0 %vm366_vm0, %v2575_v25  ;;  %2494 = vmatprep.mubr.msk.bf16.mxu1 %vm366_vm0, %v2576_v27 }
  0xd5   : > { %1282 = vmatpush1.bf16.msra.mxu0 %v1255_v32  ;;  %1301 = vmatprep.mubr.bf16.mxu0 %v3326_v7 }
  0xd6   : > { %1283 = vmatprep.subr.bf16.mxu0 %v1254_v30  ;;  %v1401_v33 = vpop.permute.xlu0 %1400 }
  0xd7   : > { %v1399_v36 = vpop.permute.xlu1 %1398  ;;  %v1412_v38 = vsel %vm1410_vm7, %v1401_v33, %v1403_v31 }
  0xd8   : > { %v1411_v40 = vsel %vm1410_vm7, %v1399_v36, %v1401_v33 }
  0xd9   : > { %1284 = vmatpush1.bf16.msra.mxu0 %v1253_v35 }
  0xda   : > { %2498 = vmatprep.subr.bf16.mxu0 %v1409_v24  ;;  %v1565_v39 = vpop.permute.xlu0 %1564 }
  0xdb   : > { %2495 = vmatmul.mubr.msk.bf16.vlgmr.msra.gmra.mxu1 %vm366_vm0, %v2577_v34  ;;  %v1567_v41 = vpop.permute.xlu1 %1566 }
  0xdc   : > { %2354 = vmatmul.mubr.msk.bf16.vlgmr.msra.gmra.mxu0 %vm366_vm0, %v2576_v27  ;;  %1440 = vmatpush1.bf16.msra.mxu1 %v1413_v37  ;;  %v1572_v44 = vsel %vm1568_vm8, %v1565_v39, %v1567_v41 }
  0xdd   : > { %2499 = vmatpush3.bf16.msra.mxu0 %v1409_v24  ;;  %1441 = vmatprep.subr.bf16.mxu1 %v1412_v38 }
  0xde   : > { %2500 = vmatprep.subr.bf16.mxu0 %v1403_v31  ;;  %1459 = vmatprep.mubr.bf16.mxu1 %v3326_v7  ;;  %v1563_v43 = vpop.permute.xlu0 %1562 }
  0xdf   : > { %1311 = vmatprep.mubr.bf16.mxu0 %v3326_v7  ;;  %v1559_v46 = vpop.permute.xlu1 %1558  ;;  %v1571_v50 = vsel %vm1568_vm8, %v1563_v43, %v1565_v39 }
  0xe0   : > { %1442 = vmatpush1.bf16.msra.mxu1 %v1411_v40 }
  0xe1   : > { %2501 = vmatpush3.bf16.msra.mxu0 %v1403_v31  ;;  %2506 = vmatprep.subr.bf16.mxu1 %v1567_v41 }
  0xe2   : > { %1597 = vmatprep.subr.bf16.mxu0 %v1572_v44  ;;  %v1561_v45 = vpop.permute.xlu0 %1560 }
  0xe3   : > { %2364 = vmatmul.mubr.msk.bf16.vlgmr.msra.gmra.mxu1 %vm366_vm0, %v2578_v42  ;;  %v1570_v49 = vsel %vm1568_vm8, %v1559_v46, %v1561_v45  ;;  %v1557_v51 = vpop.permute.xlu1 %1556 }
  0xe4   : > { %2355 = vmatmul.mubr.msk.bf16.gmra.mxu0 %vm366_vm0, %v2577_v34  ;;  %2507 = vmatpush3.bf16.msra.mxu1 %v1567_v41  ;;  %v1569_v53 = vsel %vm1568_vm8, %v1557_v51, %v1559_v46 }
  0xe5   : > { %1469 = vmatprep.mubr.bf16.mxu1 %v3326_v7  ;;  %2502 = vmatprep.mubr.msk.bf16.mxu0 %vm366_vm0, %v2578_v42 }
  0xe6   : > { %2508 = vmatprep.subr.bf16.mxu1 %v1561_v45 }
  0xe8   : > { %2509 = vmatpush3.bf16.msra.mxu1 %v1561_v45 }
  0xeb   : > { %2365 = vmatmul.mubr.msk.bf16.gmra.mxu1 %vm366_vm0, %v2579_v47 }
  0xec   : > { %2503 = vmatmul.mubr.msk.bf16.vlgmr.msra.gmra.mxu0 %vm366_vm0, %v2579_v47  ;;  %2510 = vmatprep.mubr.msk.bf16.mxu1 %vm366_vm0, %v2580_v48 }
  0xed   : > { %1598 = vmatpush1.bf16.msra.mxu0 %v1571_v50  ;;  %1617 = vmatprep.mubr.bf16.mxu0 %v3326_v7 }
  0xee   : > { %1599 = vmatprep.subr.bf16.mxu0 %v1570_v49 }
  0xf1   : > { %1600 = vmatpush1.bf16.msra.mxu0 %v1569_v53 }
  0xf3   : > { %2511 = vmatmul.mubr.msk.bf16.vlgmr.msra.gmra.mxu1 %vm366_vm0, %v2581_v52 }
  0xf4   : > { %2374 = vmatmul.mubr.msk.bf16.vlgmr.msra.gmra.mxu0 %vm366_vm0, %v2580_v48  ;;  %1927 = vmatprep.mubr.bf16.mxu1 %v3326_v7 }
  0xf5   : > { %1627 = vmatprep.mubr.bf16.mxu0 %v3326_v7 }
  0xfc   : > { %2375 = vmatmul.mubr.msk.bf16.gmra.mxu0 %vm366_vm0, %v2581_v52 }
 0x153   : > { %v2448_v54 = vpop.f32.mrf.mxu1 }
 0x154   : > { %v407_v55 = vpop.f32.mrf.mxu0 }
 0x155   : > { %v460_v56 = vpop.f32.mrf.mxu1 }
 0x156   : > { %v409_v57 = vpop.f32.mrf.mxu0 }
 0x157   : > { %v2449_v58 = vpop.f32.mrf.mxu1 }
 0x158   : > { %v411_v59 = vpop.f32.mrf.mxu0 }
 0x159   : > { %v463_v60 = vpop.f32.mrf.mxu1 }
 0x15a   : > { %v413_v61 = vpop.f32.mrf.mxu0 }
 0x15b   : > { %v525_v62 = vpop.f32.mrf.mxu1 }
 0x15c   : > { %v526_v63 = vadd.f32 %v525_v62, %v407_v55  ;;  %v417_v0 = vpop.f32.mrf.mxu0 }
 0x15d   : > { %v527_v1 = vpop.f32.mrf.mxu1 }
 0x15e   : > { %v528_v2 = vadd.f32 %v527_v1, %v409_v57  ;;  %v2885_v3 = vpop.f32.mrf.mxu0 }
 0x15f   : > { %v529_v4 = vpop.f32.mrf.mxu1 }
 0x160   : > { %v530_v5 = vadd.f32 %v529_v4, %v411_v59  ;;  %v421_v6 = vpop.f32.mrf.mxu0 }
 0x161   : > { %v531_v8 = vpop.f32.mrf.mxu1 }
 0x162   : > { %v532_v9 = vadd.f32 %v531_v8, %v413_v61  ;;  %v2887_v10 = vpop.f32.mrf.mxu0 }
 0x163   : > { %v535_v11 = vpop.f32.mrf.mxu1 }
 0x164   : > { %v2889_v12 = vadd.f32 %v535_v11, %v417_v0  ;;  %v2456_v13 = vpop.f32.mrf.mxu0 }
 0x165   : > { %v2891_v14 = vadd.f32 %v2456_v13, %v2448_v54  ;;  %v2893_v15 = vpop.f32.mrf.mxu1 }
 0x166   : > { %v578_v16 = vpop.f32.mrf.mxu0 }
 0x167   : > { %v2895_v17 = vadd.f32 %v578_v16, %v460_v56  ;;  %v539_v18 = vpop.f32.mrf.mxu1 }
 0x168   : > { %v2897_v19 = vadd.f32 %v539_v18, %v421_v6  ;;  %v2457_v20 = vpop.f32.mrf.mxu0 }
 0x169   : > { %v2899_v21 = vadd.f32 %v2457_v20, %v2449_v58  ;;  %v2901_v22 = vpop.f32.mrf.mxu1 }
 0x16a   : > { %v581_v23 = vpop.f32.mrf.mxu0 }
 0x16b   : > { %v2903_v24 = vadd.f32 %v581_v23, %v463_v60  ;;  %v2905_v25 = vpop.f32.mrf.mxu1 }
 0x16c   : > { %v671_v26 = vpop.f32.mrf.mxu0 }
 0x16d   : > { %v2907_v27 = vadd.f32 %v671_v26, %v526_v63  ;;  %v2909_v28 = vpop.f32.mrf.mxu1 }
 0x16e   : > { %v673_v29 = vpop.f32.mrf.mxu0 }
 0x16f   : > { %v2911_v30 = vadd.f32 %v673_v29, %v528_v2  ;;  %v2913_v31 = vpop.f32.mrf.mxu1 }
 0x170   : > { %v675_v32 = vpop.f32.mrf.mxu0 }
 0x171   : > { %v2915_v33 = vadd.f32 %v675_v32, %v530_v5  ;;  %v2917_v34 = vpop.f32.mrf.mxu1 }
 0x172   : > { %v677_v35 = vpop.f32.mrf.mxu0 }
 0x173   : > { %v2919_v36 = vadd.f32 %v677_v35, %v532_v9  ;;  %v2921_v37 = vpop.f32.mrf.mxu1 }
 0x174   : > { %v2923_v38 = vpop.f32.mrf.mxu0 }
 0x175   : > { %v2925_v39 = vpop.f32.mrf.mxu1 }
 0x176   : > { %v2927_v40 = vpop.f32.mrf.mxu0 }
 0x177   : > { %v2929_v41 = vpop.f32.mrf.mxu1 }
 0x178   : > { %v2931_v42 = vpop.f32.mrf.mxu0 }
 0x179   : > { %v2933_v43 = vpop.f32.mrf.mxu1 }
 0x17a   : > { %v2935_v44 = vpop.f32.mrf.mxu0 }
 0x17b   : > { %v2937_v45 = vpop.f32.mrf.mxu1 }
 0x17c   : > { %v2939_v46 = vpop.f32.mrf.mxu0 }
 0x17d   : > { %v2941_v47 = vpop.f32.mrf.mxu1 }
 0x17e   : > { %v2943_v48 = vpop.f32.mrf.mxu0 }
 0x17f   : > { %v2945_v49 = vpop.f32.mrf.mxu1 }
 0x180   : > { %v2947_v50 = vpop.f32.mrf.mxu0 }
 0x181   : > { %v2949_v51 = vpop.f32.mrf.mxu1 }
 0x182   : > { %v2951_v52 = vpop.f32.mrf.mxu0 }
 0x183   : > { %v2953_v53 = vpop.f32.mrf.mxu1 }
 0x184   : > { %v2955_v54 = vpop.f32.mrf.mxu0 }
 0x185   : > { %v2957_v55 = vpop.f32.mrf.mxu1 }
 0x186   : > { %v2959_v56 = vpop.f32.mrf.mxu0 }
 0x187   : > { %v2961_v57 = vpop.f32.mrf.mxu1 }
 0x188   : > { %v2963_v58 = vpop.f32.mrf.mxu0 }
 0x189   : > { %v2965_v59 = vpop.f32.mrf.mxu1 }
 0x18a   : > { %v2967_v60 = vpop.f32.mrf.mxu0 }
 0x18b   : > { %v2969_v61 = vpop.f32.mrf.mxu1 }
 0x18c   : > { %v2971_v62 = vpop.f32.mrf.mxu0 }
 0x18d   : > { %v2973_v63 = vpop.f32.mrf.mxu1 }
 0x18e   : > { %v2975_v0 = vpop.f32.mrf.mxu0 }
 0x18f   : > { %v2977_v1 = vpop.f32.mrf.mxu1 }
 0x190   : > { %v2979_v2 = vpop.f32.mrf.mxu0 }
 0x191   : > { %v2981_v4 = vpop.f32.mrf.mxu1 }
 0x192   : > { %v2983_v5 = vpop.f32.mrf.mxu0 }
 0x193   : > { %3328 = vst [vmem:[#allocation2_spill] sm:$0xff] %v2983_v5  ;;  %v2985_v6 = vpop.f32.mrf.mxu1 }
 0x194   : > { %3329 = vst [vmem:[#allocation3_spill] sm:$0xff] %v2985_v6  ;;  %v2987_v8 = vpop.f32.mrf.mxu0 }
 0x195   : > { %v2989_v9 = vpop.f32.mrf.mxu1 }
 0x196   : > { %3330 = vst [vmem:[#allocation4_spill] sm:$0xff] %v2989_v9  ;;  %v2991_v11 = vpop.f32.mrf.mxu0 }
 0x197   : > { %3331 = vst [vmem:[#allocation5_spill] sm:$0xff] %v2991_v11  ;;  %v2993_v13 = vpop.f32.mrf.mxu1  ;;  %v1701_v11 = vlaneseq }
 0x198   : > { %3332 = vst [vmem:[#allocation6_spill] sm:$0xff] %v2993_v13  ;;  %v2995_v16 = vpop.f32.mrf.mxu0 }
 0x199   : > { %3333 = vst [vmem:[#allocation7_spill] sm:$0xff] %v2995_v16  ;;  %v2997_v18 = vpop.f32.mrf.mxu1 }
 0x19a   : > { %3334 = vst [vmem:[#allocation8_spill] sm:$0xff] %v2997_v18  ;;  %v2999_v20 = vpop.f32.mrf.mxu0 }
 0x19b   : > { %3335 = vst [vmem:[#allocation9_spill] sm:$0xff] %v2999_v20  ;;  %v3001_v23 = vpop.f32.mrf.mxu1 }
 0x19c   : > { %3336 = vst [vmem:[#allocation10_spill] sm:$0xff] %v3001_v23  ;;  %v3003_v26 = vpop.f32.mrf.mxu0  ;;  %v1702_v23 = vshrl.u32 %v1701_v11, 7 }
 0x19d   : > { %3337 = vst [vmem:[#allocation11_spill] sm:$0xff] %v3003_v26  ;;  %v3005_v29 = vpop.f32.mrf.mxu1 }
 0x19e   : > { %3338 = vst [vmem:[#allocation12_spill] sm:$0xff] %v3005_v29  ;;  %v3007_v32 = vpop.f32.mrf.mxu0 }
 0x19f   : > { %3339 = vst [vmem:[#allocation13_spill] sm:$0xff] %v3007_v32  ;;  %v3009_v35 = vpop.f32.mrf.mxu1 }
 0x1a0   : > { %3340 = vst [vmem:[#allocation14_spill] sm:$0xff] %v3009_v35  ;;  %v3011_v7 = vpop.f32.mrf.mxu0  ;;  %v1711_v35 = vsub.s32 2, %v1702_v23 }
 0x1a1   : > { %3341 = vst [vmem:[#allocation15_spill] sm:$0xff] %v3011_v7  ;;  %v3013_v13 = vpop.f32.mrf.mxu1 }
 0x1a2   : > { %3342 = vst [vmem:[#allocation16_spill] sm:$0xff] %v3013_v13  ;;  %v3015_v16 = vpop.f32.mrf.mxu0  ;;  %v1703_v13 = vsub.s32 0, %v1702_v23 }
 0x1a3   : > { %3343 = vst [vmem:[#allocation17_spill] sm:$0xff] %v3015_v16  ;;  %v3017_v18 = vpop.f32.mrf.mxu1  ;;  %v1699_v16 = vld [vmem:[%s3324_s6] sm:$0x7] }
 0x1a4   : > { %3344 = vst [vmem:[#allocation18_spill] sm:$0xff] %v3017_v18  ;;  %v3019_v20 = vpop.f32.mrf.mxu0  ;;  %v1707_v18 = vsub.s32 1, %v1702_v23  ;;  %v747_v23 = vadd.f32 %v2905_v25, %v2891_v14  ;;  %v898_v14 = vadd.f32 %v2925_v39, %v2911_v30 }
 0x1a5   : > { %3345 = vst [vmem:[#allocation19_spill] sm:$0xff] %v3019_v20  ;;  %v3021_v9 = vpop.f32.mrf.mxu1  ;;  %v3048_v20 = vrot.slane %v1699_v16, %v1703_v13  ;;  %v3354_v13 = vld [vmem:[#allocation4_spill] sm:$0xff] }
 0x1a6   : > { %3346 = vst [vmem:[#allocation20_spill] sm:$0xff] %v3021_v9  ;;  %v3023_v26 = vpop.f32.mrf.mxu0  ;;  %v3050_v5 = vrot.slane %v1699_v16, %v1707_v18  ;;  %v905_v30 = vadd.f32 %v2939_v46, %v747_v23  ;;  %v3356_v18 = vld [vmem:[#allocation6_spill] sm:$0xff] }
 0x1a7   : > { %3347 = vst [vmem:[#allocation21_spill] sm:$0xff] %v3023_v26  ;;  %v3025_v29 = vpop.f32.mrf.mxu1  ;;  %v3040_v26 = vrot.slane %v1699_v16, %v1711_v35  ;;  %v750_v35 = vadd.f32 %v2913_v31, %v2899_v21  ;;  %v900_v21 = vadd.f32 %v2929_v41, %v2915_v33  ;;  %v3355_v16 = vld [vmem:[#allocation5_spill] sm:$0xff] }
 0x1a8   : > { %3348 = vst [vmem:[#allocation22_spill] sm:$0xff] %v3025_v29  ;;  %v3027_v32 = vpop.f32.mrf.mxu0  ;;  %v538_v29 = vadd.f32 %v2893_v15, %v2885_v3  ;;  %v744_v3 = vadd.f32 %v2917_v34, %v2903_v24  ;;  %v748_v24 = vadd.f32 %v2931_v42, %v2897_v19 }
 0x1a9   : > { %3349 = vst [vmem:[#allocation23_spill] sm:$0xff] %v3027_v32  ;;  %v3029_v7 = vpop.f32.mrf.mxu1  ;;  %v908_v19 = vadd.f32 %v2947_v50, %v750_v35 }
 0x1aa   : > { %3350 = vst [vmem:[#allocation24_spill] sm:$0xff] %v3029_v7  ;;  %v3034_v6 = vpop.f32.mrf.mxu0  ;;  %v542_v7 = vadd.f32 %v2901_v22, %v2887_v10  ;;  %v897_v10 = vadd.f32 %v2921_v37, %v2907_v27  ;;  %v745_v22 = vadd.f32 %v2923_v38, %v2889_v12  ;;  %v746_v25 = vadd.f32 %v2927_v40, %v538_v29  ;;  %v3357_v29 = vld [vmem:[#allocation7_spill] sm:$0xff] }
 0x1ab   : > { %3351 = vst [vmem:[#allocation25_spill] sm:$0xff] %v3034_v6  ;;  %v3036_v11 = vpop.f32.mrf.mxu1  ;;  %v741_v6 = vadd.f32 %v2909_v28, %v2895_v17  ;;  %v901_v28 = vadd.f32 %v2933_v43, %v2919_v36  ;;  %v906_v33 = vadd.f32 %v2945_v49, %v748_v24  ;;  %v1063_v40 = vadd.f32 %v2953_v53, %v905_v30 }
 0x1ac   : > { %v3038_v9 = vpop.f32.mrf.mxu0  ;;  %v749_v27 = vadd.f32 %v2935_v44, %v542_v7  ;;  %v903_v12 = vadd.f32 %v2937_v45, %v745_v22  ;;  %v904_v34 = vadd.f32 %v2941_v47, %v746_v25  ;;  %v902_v7 = vadd.f32 %v2951_v52, %v744_v3  ;;  %v3361_v22 = vld [vmem:[#allocation9_spill] sm:$0xff]  ;;  %v3362_v25 = vld [vmem:[#allocation11_spill] sm:$0xff] }
 0x1ad   : > { %v3046_v32 = vpop.f32.mrf.mxu1  ;;  %v899_v37 = vadd.f32 %v2943_v48, %v741_v6  ;;  %v1055_v41 = vadd.f32 %v2955_v54, %v897_v10  ;;  %v1056_v43 = vadd.f32 %v2959_v56, %v898_v14  ;;  %v1066_v44 = vadd.f32 %v2961_v57, %v908_v19  ;;  %v3353_v6 = vld [vmem:[#allocation3_spill] sm:$0xff]  ;;  %v3360_v10 = vld [vmem:[#allocation8_spill] sm:$0xff] }
 0x1ae   : > { %v3060_v15 = vpop.f32.mrf.mxu0  ;;  %v907_v36 = vadd.f32 %v2949_v51, %v749_v27  ;;  %v1058_v45 = vadd.f32 %v2963_v58, %v900_v21  ;;  %v1060_v46 = vadd.f32 %v2965_v59, %v902_v7  ;;  %v1059_v47 = vadd.f32 %v2967_v60, %v901_v28  ;;  %v3352_v59 = vld [vmem:[#allocation2_spill] sm:$0xff]  ;;  %v3363_v24 = vld [vmem:[#allocation19_spill] sm:$0xff] }
 0x1af   : > { %v3069_v17 = vpop.f32.mrf.mxu1  ;;  %v1057_v42 = vadd.f32 %v2957_v55, %v899_v37  ;;  %v1213_v49 = vadd.f32 %v2969_v61, %v1055_v41  ;;  %v1061_v50 = vadd.f32 %v2971_v62, %v903_v12  ;;  %v1214_v51 = vadd.f32 %v2973_v63, %v1056_v43  ;;  %v3364_v12 = vld [vmem:[#allocation12_spill] sm:$0xff] }
 0x1b0   : > { %v3078_v31 = vpop.f32.mrf.mxu0  ;;  %v1062_v52 = vadd.f32 %v2975_v0, %v904_v34  ;;  %v1216_v54 = vadd.f32 %v2977_v1, %v1058_v45  ;;  %v1064_v55 = vadd.f32 %v2979_v2, %v906_v33  ;;  %v1217_v56 = vadd.f32 %v2981_v4, %v1059_v47  ;;  %v3358_v1 = vld [vmem:[#allocation10_spill] sm:$0xff]  ;;  %v3359_v2 = vld [vmem:[#allocation13_spill] sm:$0xff]  ;;  %v3366_v33 = vld [vmem:[#allocation20_spill] sm:$0xff] }
 0x1b1   : > { %v3084_v38 = vpop.f32.mrf.mxu1  ;;  %v1221_v57 = vadd.f32 %v2987_v8, %v1063_v40  ;;  %v1065_v60 = vadd.f32 %v3352_v59, %v907_v36  ;;  %v1219_v61 = vadd.f32 %v3353_v6, %v1061_v50  ;;  %v1215_v63 = vadd.f32 %v3355_v16, %v1057_v42  ;;  %v3365_v34 = vld [vmem:[#allocation14_spill] sm:$0xff]  ;;  %v3367_v40 = vld [vmem:[#allocation15_spill] sm:$0xff]  ;;  %v3368_v42 = vld [vmem:[#allocation16_spill] sm:$0xff] }
 0x1b2   : > { %v3090_v39 = vpop.f32.mrf.mxu0  ;;  %v1220_v62 = vadd.f32 %v3354_v13, %v1062_v52  ;;  %v1222_v0 = vadd.f32 %v3356_v18, %v1064_v55  ;;  %v1224_v23 = vadd.f32 %v3357_v29, %v1066_v44  ;;  %v1372_v3 = vadd.f32 %v3359_v2, %v1214_v51  ;;  %v3369_v44 = vld [vmem:[#allocation21_spill] sm:$0xff]  ;;  %v3371_v50 = vld [vmem:[#allocation18_spill] sm:$0xff]  ;;  %v3372_v59 = vld [vmem:[#allocation23_spill] sm:$0xff] }
 0x1b3   : > { %v2512_v53 = vpop.f32.mrf.mxu1  ;;  %v1379_v35 = vadd.f32 %v3358_v1, %v1221_v57  ;;  %v1223_v8 = vadd.f32 %v3360_v10, %v1065_v60  ;;  %v1218_v14 = vadd.f32 %v3361_v22, %v1060_v46  ;;  %v1371_v21 = vadd.f32 %v3362_v25, %v1213_v49  ;;  %v3370_v47 = vld [vmem:[#allocation17_spill] sm:$0xff]  ;;  %v3373_v13 = vld [vmem:[#allocation22_spill] sm:$0xff] }
 0x1b4   : > { %v1619_v48 = vpop.f32.mrf.mxu0  ;;  %v1377_v28 = vadd.f32 %v3363_v24, %v1219_v61  ;;  %v1373_v30 = vadd.f32 %v3364_v12, %v1215_v63  ;;  %v1382_v37 = vadd.f32 %v3365_v34, %v1224_v23  ;;  %v1530_v19 = vadd.f32 %v3366_v33, %v1372_v3  ;;  %v3374_v16 = vld [vmem:[#allocation25_spill] sm:$0xff] }
 0x1b5   : > { %v1672_v27 = vpop.f32.mrf.mxu1  ;;  %v1537_v36 = vadd.f32 %v3038_v9, %v1379_v35  ;;  %v1374_v41 = vadd.f32 %v3367_v40, %v1216_v54  ;;  %v1376_v43 = vadd.f32 %v3368_v42, %v1218_v14  ;;  %v1378_v45 = vadd.f32 %v3369_v44, %v1220_v62 }
 0x1b6   : > { %v1621_v58 = vpop.f32.mrf.mxu0  ;;  %v1535_v46 = vadd.f32 %v3036_v11, %v1377_v28  ;;  %v1375_v49 = vadd.f32 %v3370_v47, %v1217_v56  ;;  %v1529_v51 = vadd.f32 %v3371_v50, %v1371_v21  ;;  %v1380_v60 = vadd.f32 %v3372_v59, %v1222_v0 }
 0x1b7   : > { %v1695_v52 = vadd.f32 %v2512_v53, %v1537_v36  ;;  %v3130_v55 = vadd.f32 %v1621_v58, %v1530_v19  ;;  %v1536_v9 = vadd.f32 %v3046_v32, %v1378_v45  ;;  %v1531_v54 = vadd.f32 %v3060_v15, %v1373_v30  ;;  %v2513_v6 = vpop.f32.mrf.mxu1  ;;  %v3375_v53 = vld [vmem:[#allocation24_spill] sm:$0xff] }
 0x1b8   : > { %v1623_v4 = vpop.f32.mrf.mxu0  ;;  %v1532_v62 = vadd.f32 %v3373_v13, %v1374_v41  ;;  %v1381_v11 = vadd.f32 %v3374_v16, %v1223_v8  ;;  %v1540_v56 = vadd.f32 %v3078_v31, %v1382_v37  ;;  %v1687_v63 = vadd.f32 %v1619_v48, %v1529_v51 }
 0x1b9   : > { %v1533_v58 = vadd.f32 %v3375_v53, %v1375_v49  ;;  %v1538_v29 = vadd.f32 %v3069_v17, %v1380_v60  ;;  %v1689_v23 = vadd.f32 %v1672_v27, %v1531_v54  ;;  %v1724_v15 = vmul.f32 %v3040_v26, %v1695_v52  ;;  %v1675_v3 = vpop.f32.mrf.mxu1 }
 0x1ba   : > { %v1625_v7 = vpop.f32.mrf.mxu0  ;;  %v1539_v32 = vadd.f32 %v3084_v38, %v1381_v11  ;;  %v1717_v1 = vmul.f32 %v3050_v5, %v3130_v55  ;;  %v1698_v35 = vadd.f32 %v2513_v6, %v1540_v56  ;;  %v1534_v17 = vadd.f32 %v3090_v39, %v1376_v43 }
 0x1bb   : > { %v3144_v10 = vadd.f32 %v1625_v7, %v1533_v58  ;;  %v1716_v22 = vmul.f32 %v3048_v20, %v1687_v63  ;;  %v1718_v14 = vmul.f32 %v3040_v26, %v1689_v23  ;;  %v1690_v25 = vadd.f32 %v1623_v4, %v1532_v62 }
 0x1bc   : > { %v1629_v57 = vpop.f32.mrf.mxu0  ;;  %v1727_v28 = vmul.f32 %v3040_v26, %v1698_v35  ;;  %v1692_v27 = vadd.f32 %v1675_v3, %v1534_v17  ;;  %v1739_v12 = vsel %vm366_vm0, %v1724_v15, 0.0 }
 0x1bd   : > { %v1693_v61 = vadd.f32 %v1629_v57, %v1535_v46  ;;  %v1728_v30 = vadd.f32 %v1717_v1, %v1716_v22  ;;  %v1720_v34 = vmul.f32 %v3050_v5, %v3144_v10  ;;  %v1719_v19 = vmul.f32 %v3048_v20, %v1690_v25 }
 0x1be   : > { %v1631_v18 = vpop.f32.mrf.mxu0  ;;  %v1721_v36 = vmul.f32 %v3040_v26, %v1692_v27  ;;  %v1744_v7 = vsel %vm366_vm0, %v1727_v28, 0.0  ;;  %v1729_v40 = vsel %vm366_vm0, %v1718_v14, 0.0 }
 0x1bf   : > { %v1694_v0 = vadd.f32 %v1631_v18, %v1536_v9  ;;  %v1722_v31 = vmul.f32 %v3048_v20, %v1693_v61  ;;  %v1730_v42 = vadd.f32 %v1729_v40, %v1728_v30  ;;  %v1733_v43 = vadd.f32 %v1720_v34, %v1719_v19  ;;  %v1845_v40 = vld [vmem:[%s293_s16 + $0x10] sm:$0xff] }
 0x1c0   : > { %v1633_v2 = vpop.f32.mrf.mxu0  ;;  %v1734_v44 = vsel %vm366_vm0, %v1721_v36, 0.0 }
 0x1c1   : > { %v1723_v48 = vmul.f32 %v3050_v5, %v1694_v0  ;;  %v1696_v8 = vadd.f32 %v1633_v2, %v1538_v29  ;;  %v1735_v45 = vadd.f32 %v1734_v44, %v1733_v43  ;;  %v1844_v43 = vld [vmem:[%s293_s16 + $0x8] sm:$0xff]  ;;  %v2040_v44 = vld [vmem:[%s3323_s5] sm:$0xff] }
 0x1c2   : > { %v1635_v38 = vpop.f32.mrf.mxu0 }
 0x1c3   : > { %v1697_v21 = vadd.f32 %v1635_v38, %v1539_v32  ;;  %v1738_v24 = vadd.f32 %v1723_v48, %v1722_v31  ;;  %v1725_v37 = vmul.f32 %v3048_v20, %v1696_v8 }
 0x1c5   : > { %v1726_v39 = vmul.f32 %v3050_v5, %v1697_v21  ;;  %v1740_v33 = vadd.f32 %v1739_v12, %v1738_v24 }
 0x1c7   : > { %1741 = vadd.xlane.f32.xlu0 %v1740_v33  ;;  %v1743_v4 = vadd.f32 %v1726_v39, %v1725_v37 }
 0x1c9   : > { %v1745_v41 = vadd.f32 %v1744_v7, %v1743_v4 }
 0x1cb   : > { %1746 = vadd.xlane.f32.xlu1 %v1745_v41  ;;  %1731 = vadd.xlane.f32.xlu0 %v1730_v42  ;;  %v1846_v41 = vld [vmem:[%s293_s16 + $0x18] sm:$0xff]  ;;  %v1843_v42 = vld [vmem:[%s293_s16] sm:$0xff] }
 0x1cf   : > { %1736 = vadd.xlane.f32.xlu0 %v1735_v45  ;;  %v2041_v45 = vld [vmem:[%s3323_s5 + $0x8] sm:$0xff] }
 0x250   : > { %v1742_v46 = vpop.xlane.xlu0 %1741 }
 0x251   : > { %v1750_v47 = vmul.f32 0.00390625, %v1742_v46  ;;  %v2042_v46 = vld [vmem:[%s3323_s5 + $0x10] sm:$0xff] }
 0x253   : > { %v3162_v49 = vsub.f32 %v1693_v61, %v1750_v47  ;;  %v3164_v50 = vsub.f32 %v1694_v0, %v1750_v47  ;;  %v3166_v51 = vsub.f32 %v1695_v52, %v1750_v47  ;;  %v2043_v47 = vld [vmem:[%s3323_s5 + $0x18] sm:$0xff] }
 0x254   : > { %v1747_v57 = vpop.xlane.xlu1 %1746  ;;  %v1732_v59 = vpop.xlane.xlu0 %1731 }
 0x255   : > { %v1751_v60 = vmul.f32 0.00390625, %v1747_v57  ;;  %v1748_v9 = vmul.f32 0.00390625, %v1732_v59  ;;  %v1770_v54 = vmul.f32 %v3162_v49, %v3048_v20  ;;  %v1771_v6 = vmul.f32 %v3164_v50, %v3050_v5 }
 0x256   : > { %v1772_v13 = vmul.f32 %v3166_v51, %v3040_v26 }
 0x257   : > { %v3174_v62 = vsub.f32 %v1696_v8, %v1751_v60  ;;  %v3176_v61 = vsub.f32 %v1697_v21, %v1751_v60  ;;  %v3178_v16 = vsub.f32 %v1698_v35, %v1751_v60  ;;  %v3180_v52 = vsub.f32 %v1687_v63, %v1748_v9 }
 0x258   : > { %v3183_v11 = vsub.f32 %v3130_v55, %v1748_v9  ;;  %v3185_v56 = vsub.f32 %v1689_v23, %v1748_v9  ;;  %v1737_v18 = vpop.xlane.xlu0 %1736  ;;  %v1782_v53 = vmul.f32 %v1770_v54, %v1770_v54  ;;  %v1783_v58 = vmul.f32 %v1771_v6, %v1771_v6 }
 0x259   : > { %v1749_v29 = vmul.f32 0.00390625, %v1737_v18  ;;  %v1784_v0 = vmul.f32 %v1772_v13, %v1772_v13  ;;  %v1773_v32 = vmul.f32 %v3174_v62, %v3048_v20  ;;  %v1774_v15 = vmul.f32 %v3176_v61, %v3050_v5 }
 0x25a   : > { %v1798_v1 = vadd.f32 %v1783_v58, %v1782_v53  ;;  %v1775_v63 = vmul.f32 %v3178_v16, %v3040_v26  ;;  %v1764_v55 = vmul.f32 %v3180_v52, %v3048_v20  ;;  %v1765_v23 = vmul.f32 %v3183_v11, %v3050_v5 }
 0x25b   : > { %v3197_v35 = vsub.f32 %v1690_v25, %v1749_v29  ;;  %v3200_v2 = vsub.f32 %v3144_v10, %v1749_v29  ;;  %v3202_v3 = vsub.f32 %v1692_v27, %v1749_v29  ;;  %v1799_v31 = vsel %vm366_vm0, %v1784_v0, 0.0 }
 0x25c   : > { %v1800_v48 = vadd.f32 %v1799_v31, %v1798_v1  ;;  %v1785_v8 = vmul.f32 %v1773_v32, %v1773_v32  ;;  %v1786_v17 = vmul.f32 %v1774_v15, %v1774_v15  ;;  %v1787_v22 = vmul.f32 %v1775_v63, %v1775_v63 }
 0x25d   : > { %v1766_v38 = vmul.f32 %v3185_v56, %v3040_v26  ;;  %v1776_v14 = vmul.f32 %v1764_v55, %v1764_v55  ;;  %v1777_v21 = vmul.f32 %v1765_v23, %v1765_v23  ;;  %v1767_v25 = vmul.f32 %v3197_v35, %v3048_v20 }
 0x25e   : > { %1801 = vadd.xlane.f32.xlu1 %v1800_v48  ;;  %v1803_v24 = vadd.f32 %v1786_v17, %v1785_v8  ;;  %v1804_v10 = vsel %vm366_vm0, %v1787_v22, 0.0  ;;  %v1768_v28 = vmul.f32 %v3200_v2, %v3050_v5  ;;  %v1769_v27 = vmul.f32 %v3202_v3, %v3040_v26  ;;  %v1847_v26 = vld [vmem:[%s293_s16 + $0x20] sm:$0xff] }
 0x25f   : > { %v1778_v12 = vmul.f32 %v1766_v38, %v1766_v38  ;;  %v1788_v30 = vadd.f32 %v1777_v21, %v1776_v14  ;;  %v1779_v34 = vmul.f32 %v1767_v25, %v1767_v25  ;;  %v2612_v5 = vmov 0.0  }
 0x260   : > { %v1805_v37 = vadd.f32 %v1804_v10, %v1803_v24  ;;  %v1780_v39 = vmul.f32 %v1768_v28, %v1768_v28  ;;  %v1781_v33 = vmul.f32 %v1769_v27, %v1769_v27  ;;  %2514 = vmatprep.subr.bf16.mxu0 %v2612_v5  ;;  %2518 = vmatprep.mubr.msk.bf16.mxu0 %vm2613_vm9, %v2612_v5 }
 0x261   : > { %v1789_v19 = vsel %vm366_vm0, %v1778_v12, 0.0 }
 0x262   : > { %1806 = vadd.xlane.f32.xlu0 %v1805_v37  ;;  %v1790_v20 = vadd.f32 %v1789_v19, %v1788_v30  ;;  %v1793_v4 = vadd.f32 %v1780_v39, %v1779_v34  ;;  %v1794_v36 = vsel %vm366_vm0, %v1781_v33, 0.0 }
 0x264   : > { %1791 = vadd.xlane.f32.xlu1 %v1790_v20  ;;  %v1795_v7 = vadd.f32 %v1794_v36, %v1793_v4 }
 0x266   : > { %1796 = vadd.xlane.f32.xlu0 %v1795_v7 }
 0x275   : > { %1870 = vperm.xlu1 %2562, %v1847_v26  }
 0x279   : > { %1865 = vperm.xlu1 %2562, %v1846_v41  }
 0x27c   : > { %1860 = vperm.xlu0 %2563, %v1845_v40  }
 0x27d   : > { %1850 = vperm.xlu1 %2562, %v1843_v42  }
 0x281   : > { %1855 = vperm.xlu1 %2562, %v1844_v43  }
 0x285   : > { %2046 = vperm.xlu1 %2562, %v2040_v44  }
 0x289   : > { %2051 = vperm.xlu1 %2562, %v2041_v45  }
 0x28d   : > { %2056 = vperm.xlu1 %2562, %v2042_v46  }
 0x291   : > { %2061 = vperm.xlu1 %2562, %v2043_v47  }
 0x2e7   : > { %v1802_v57 = vpop.xlane.xlu1 %1801 }
 0x2e8   : > { %v1810_v59 = vmul.f32 0.00390625, %v1802_v57 }
 0x2ea   : > { %v1814_v60 = vadd.f32 1e-05, %v1810_v59 }
 0x2eb   : > { %v1807_v9 = vpop.xlane.xlu0 %1806 }
 0x2ec   : > { %v1811_v54 = vmul.f32 0.00390625, %v1807_v9  ;;  %2587 = vrsqrt.f32 %v1814_v60 }
 0x2ed   : > { %v1792_v6 = vpop.xlane.xlu1 %1791 }
 0x2ee   : > { %v1808_v13 = vmul.f32 0.00390625, %v1792_v6  ;;  %v1815_v18 = vadd.f32 1e-05, %v1811_v54 }
 0x2ef   : > { %v1797_v53 = vpop.xlane.xlu0 %1796 }
 0x2f0   : > { %v1812_v58 = vadd.f32 1e-05, %v1808_v13  ;;  %2589 = vrsqrt.f32 %v1815_v18  ;;  %v1809_v29 = vmul.f32 0.00390625, %v1797_v53 }
 0x2f2   : > { %2591 = vrsqrt.f32 %v1812_v58  ;;  %v1813_v0 = vadd.f32 1e-05, %v1809_v29 }
 0x2f4   : > { %2593 = vrsqrt.f32 %v1813_v0 }
 0x2f7   : > { %v1861_v40 = vpop.permute.xlu0 %1860 }
 0x2f9   : > { %v2588_v32 = vpop.eup %2587 }
 0x2fa   : > { %v1827_v1 = vmul.f32 %v2588_v32, %v3164_v50  ;;  %v1828_v63 = vmul.f32 %v2588_v32, %v3166_v51  ;;  %v1826_v31 = vmul.f32 %v2588_v32, %v3162_v49 }
 0x2fd   : > { %v2590_v15 = vpop.eup %2589 }
 0x2fe   : > { %v1830_v55 = vmul.f32 %v2590_v15, %v3176_v61  ;;  %v1831_v23 = vmul.f32 %v2590_v15, %v3178_v16  ;;  %v1829_v48 = vmul.f32 %v2590_v15, %v3174_v62 }
 0x2ff   : > { %v2592_v8 = vpop.eup %2591 }
 0x300   : > { %v1841_v17 = vpack.c.bf16 %v1830_v55, %v1827_v1  ;;  %v1842_v22 = vpack.c.bf16 %v1831_v23, %v1828_v63  ;;  %v1840_v38 = vpack.c.bf16 %v1829_v48, %v1826_v31  ;;  %v1821_v21 = vmul.f32 %v2592_v8, %v3183_v11  ;;  %v2582_v11 = vld [vmem:[%s3320_s2] sm:$0xff]  }
 0x301   : > { %v2594_v14 = vpop.eup %2593  ;;  %v1822_v25 = vmul.f32 %v2592_v8, %v3185_v56  ;;  %v1820_v50 = vmul.f32 %v2592_v8, %v3180_v52  ;;  %v3376_v52 = vmov 0   ;;  %v2583_v56 = vld [vmem:[%s3320_s2 + $0x8] sm:$0xff]  }
 0x302   : > { %1907 = vmatprep.subr.bf16.mxu1 %v1841_v17  ;;  %2515 = vmatpush3.bf16.msra.mxu0 %v1842_v22  ;;  %v1824_v51 = vmul.f32 %v2594_v14, %v3200_v2  ;;  %v1825_v61 = vmul.f32 %v2594_v14, %v3202_v3  ;;  %v1823_v49 = vmul.f32 %v2594_v14, %v3197_v35  ;;  %v2584_v35 = vld [vmem:[%s3320_s2 + $0x10] ss:$0 sps:$4 sm:$0xff]   ;;  %v3273_v2 = vld [vmem:[%s3322_s4] sm:$0xff]   ;;  %v1871_v3 = vpop.permute.xlu1 %1870 }
 0x303   : > { %1908 = vmatpush1.bf16.msra.mxu1 %v1840_v38  ;;  %2516 = vmatprep.subr.bf16.mxu0 %v2612_v5 }
 0x304   : > { %v1838_v62 = vpack.c.bf16 %v1824_v51, %v1821_v21  ;;  %v1839_v16 = vpack.c.bf16 %v1825_v61, %v1822_v25  ;;  %v1837_v24 = vpack.c.bf16 %v1823_v49, %v1820_v50 }
 0x306   : > { %1909 = vmatprep.subr.bf16.mxu1 %v1838_v62  ;;  %2517 = vmatpush3.bf16.msra.mxu0 %v1839_v16  ;;  %v1866_v37 = vpop.permute.xlu1 %1865 }
 0x307   : > { %1910 = vmatpush1.bf16.msra.mxu1 %v1837_v24 }
 0x309   : > { %2519 = vmatmul.mubr.msk.bf16.vlgmr.msra.gmra.mxu0 %vm366_vm0, %v2582_v11 }
 0x30a   : > { %2381 = vmatmul.mubr.msk.bf16.vlgmr.msra.gmra.mxu1 %vm366_vm0, %v2582_v11  ;;  %2522 = vmatprep.mubr.msk.bf16.mxu0 %vm2613_vm9, %v2612_v5  ;;  %v1851_v7 = vpop.permute.xlu1 %1850 }
 0x30b   : > { %1937 = vmatprep.mubr.bf16.mxu1 %v3376_v52 }
 0x30e   : > { %v1856_v59 = vpop.permute.xlu1 %1855 }
 0x311   : > { %2523 = vmatmul.mubr.msk.bf16.gmra.mxu0 %vm366_vm0, %v2583_v56 }
 0x312   : > { %2382 = vmatmul.mubr.msk.bf16.gmra.mxu1 %vm366_vm0, %v2583_v56  ;;  %2526 = vmatprep.mubr.msk.bf16.mxu0 %vm2613_vm9, %v2612_v5 }
 0x313   : > { %1947 = vmatprep.mubr.bf16.mxu1 %v3376_v52 }
 0x319   : > { %2527 = vmatmul.mubr.msk.bf16.gmra.mxu0 %vm366_vm0, %v2584_v35 }
 0x31a   : > { %2383 = vmatmul.mubr.msk.bf16.gmra.mxu1 %vm366_vm0, %v2584_v35  ;;  %2536 = vmatprep.mubr.msk.bf16.mxu0 %vm2074_vm10, %v3273_v2 }
 0x31b   : > { %2123 = vmatprep.mubr.bf16.mxu1 %v3376_v52 }
 0x3c9   : > { %v1990_v10 = vpop.f32.mrf.mxu0 }
 0x3ca   : > { %v3277_v28 = vpop.f32.mrf.mxu1  ;;  %v1991_v46 = vadd.f32 %v1990_v10, %v1851_v7 }
 0x3cb   : > { %v2520_v27 = vpop.f32.mrf.mxu0  ;;  %v1930_v35 = vadd.f32 %v3277_v28, %v1851_v7 }
 0x3cc   : > { %v1931_v12 = vpop.f32.mrf.mxu1  ;;  %v2014_v1 = vmax.f32 %v1991_v46, 0.0 }
 0x3cd   : > { %v1993_v30 = vpop.f32.mrf.mxu0  ;;  %v1932_v51 = vadd.f32 %v1931_v12, %v1851_v7 }
 0x3ce   : > { %v1933_v34 = vpop.f32.mrf.mxu1  ;;  %v1994_v6 = vadd.f32 %v1993_v30, %v1856_v59 }
 0x3cf   : > { %v2521_v39 = vpop.f32.mrf.mxu0  ;;  %v1934_v62 = vadd.f32 %v1933_v34, %v1856_v59  ;;  %v2013_v27 = vmax.f32 %v1932_v51, 0.0 }
 0x3d0   : > { %v1935_v33 = vpop.f32.mrf.mxu1  ;;  %v2017_v38 = vmax.f32 %v1994_v6, 0.0  ;;  %v2586_v39 = vld [vmem:[%s3322_s4 + $0x8] sm:$0xff]  }
 0x3d1   : > { %v1998_v19 = vpop.f32.mrf.mxu0  ;;  %v1936_v31 = vadd.f32 %v1935_v33, %v1856_v59  ;;  %v2015_v12 = vmax.f32 %v1934_v62, 0.0  ;;  %v2047_v33 = vpop.permute.xlu1 %2046 }
 0x3d2   : > { %v1939_v20 = vpop.f32.mrf.mxu1  ;;  %v1999_v42 = vadd.f32 %v1998_v19, %v1861_v40 }
 0x3d3   : > { %v2524_v4 = vpop.f32.mrf.mxu0  ;;  %v1940_v14 = vadd.f32 %v1939_v20, %v1861_v40  ;;  %v2016_v24 = vmax.f32 %v1936_v31, 0.0 }
 0x3d4   : > { %v1941_v36 = vpop.f32.mrf.mxu1  ;;  %v2020_v13 = vmax.f32 %v1999_v42, 0.0 }
 0x3d5   : > { %v2001_v5 = vpop.f32.mrf.mxu0  ;;  %v1942_v29 = vadd.f32 %v1941_v36, %v1861_v40  ;;  %v2018_v10 = vmax.f32 %v1940_v14, 0.0  ;;  %v2032_v34 = vpack.c.bf16 %v2016_v24, %v2013_v27  ;;  %v2052_v19 = vpop.permute.xlu1 %2051 }
 0x3d6   : > { %v1943_v26 = vpop.f32.mrf.mxu1  ;;  %v2002_v43 = vadd.f32 %v2001_v5, %v1866_v37 }
 0x3d7   : > { %v2525_v41 = vpop.f32.mrf.mxu0  ;;  %v1944_v63 = vadd.f32 %v1943_v26, %v1866_v37  ;;  %v2019_v61 = vmax.f32 %v1942_v29, 0.0 }
 0x3d8   : > { %v1945_v44 = vpop.f32.mrf.mxu1  ;;  %v2023_v18 = vmax.f32 %v2002_v43, 0.0 }
 0x3d9   : > { %v2006_v45 = vpop.f32.mrf.mxu0  ;;  %v1946_v60 = vadd.f32 %v1945_v44, %v1866_v37  ;;  %v2021_v16 = vmax.f32 %v1944_v63, 0.0  ;;  %v2012_v37 = vmax.f32 %v1930_v35, 0.0  ;;  %v2057_v20 = vpop.permute.xlu1 %2056 }
 0x3da   : > { %v2007_v47 = vadd.f32 %v2006_v45, %v1871_v3  ;;  %v1949_v57 = vpop.f32.mrf.mxu1  ;;  %v2036_v21 = vpack.c.bf16 %v2023_v18, %v2020_v13 }
 0x3db   : > { %v1950_v9 = vadd.f32 %v1949_v57, %v1871_v3  ;;  %v2528_v54 = vpop.f32.mrf.mxu0  ;;  %v2022_v48 = vmax.f32 %v1946_v60, 0.0  ;;  %v2034_v30 = vpack.c.bf16 %v2021_v16, %v2018_v10  ;;  %v2031_v28 = vpack.c.bf16 %v2015_v12, %v2012_v37 }
 0x3dc   : > { %v2026_v53 = vmax.f32 %v2007_v47, 0.0  ;;  %v1951_v58 = vpop.f32.mrf.mxu1 }
 0x3dd   : > { %v2024_v0 = vmax.f32 %v1950_v9, 0.0  ;;  %v1952_v32 = vadd.f32 %v1951_v58, %v1871_v3  ;;  %v2009_v15 = vpop.f32.mrf.mxu0  ;;  %v2035_v11 = vpack.c.bf16 %v2022_v48, %v2019_v61  ;;  %v2033_v3 = vpack.c.bf16 %v2017_v38, %v2014_v1  ;;  %v2062_v26 = vpop.permute.xlu1 %2061 }
 0x3de   : > { %v2039_v55 = vpack.c.bf16 %v2026_v53, %v2026_v53  ;;  %v1953_v23 = vpop.f32.mrf.mxu1 }
 0x3df   : > { %v2037_v8 = vpack.c.bf16 %v2024_v0, %v2024_v0  ;;  %v2025_v17 = vmax.f32 %v1952_v32, 0.0  ;;  %v2529_v22 = vpop.f32.mrf.mxu0 }
 0x3e0   : > { %v1954_v25 = vpop.f32.mrf.mxu1  ;;  %2540 = vmatprep.subr.msk.bf16.mxu0 %vm2081_vm11, %v2039_v55  ;;  %v2089_v50 = vsel %vm2081_vm11, %v2039_v55, 0 }
 0x3e1   : > { %v2038_v49 = vpack.c.bf16 %v2025_v17, %v2025_v17  ;;  %2531 = vmatpush3.bf16.msra.mxu0 %v2089_v50  ;;  %v2083_v56 = vsel %vm2081_vm11, %v2037_v8, 0 }
 0x3e2   : > { %2532 = vmatprep.subr.bf16.mxu0 %v2036_v21 }
 0x3e3   : > { %2389 = vmatprep.subr.msk.bf16.mxu1 %vm2081_vm11, %v2038_v49 }
 0x3e4   : > { %2102 = vmatpush1.bf16.msra.mxu1 %v2083_v56 }
 0x3e5   : > { %2103 = vmatprep.subr.bf16.mxu1 %v2035_v11  ;;  %2533 = vmatpush3.bf16.msra.mxu0 %v2036_v21 }
 0x3e6   : > { %2534 = vmatprep.subr.bf16.mxu0 %v2033_v3 }
 0x3e8   : > { %2104 = vmatpush1.bf16.msra.mxu1 %v2034_v30 }
 0x3e9   : > { %2105 = vmatprep.subr.bf16.mxu1 %v2032_v34  ;;  %2535 = vmatpush3.bf16.msra.mxu0 %v2033_v3 }
 0x3ec   : > { %2106 = vmatpush1.bf16.msra.mxu1 %v2031_v28  ;;  %2537 = vmatmul.mubr.msk.bf16.vlgmr.msra.gmra.mxu0 %vm2074_vm10, %v2586_v39 }
 0x3ef   : > { %2390 = vmatmul.mubr.msk.bf16.vlgmr.msra.gmra.mxu1 %vm2074_vm10, %v3273_v2 }
 0x3f0   : > { %2133 = vmatprep.mubr.bf16.mxu1 %v3376_v52 }
 0x3f7   : > { %2391 = vmatmul.mubr.msk.bf16.gmra.mxu1 %vm2074_vm10, %v2586_v39 }
 0x4ac   : > { %v2538_v4 = vpop.f32.mrf.mxu0 }
 0x4ad   : > { %v2187_v36 = vadd.f32 %v2538_v4, %v2057_v20 }
 0x4ae   : > { %v2178_v7 = vpop.f32.mrf.mxu0 }
 0x4af   : > { %v2201_v5 = vmax.f32 %v2187_v36, 0.0  ;;  %v2179_v2 = vadd.f32 %v2178_v7, %v2047_v33  ;;  %v2125_v52 = vpop.f32.mrf.mxu1 }
 0x4b0   : > { %v2126_v40 = vadd.f32 %v2125_v52, %v2047_v33  ;;  %v2539_v41 = vpop.f32.mrf.mxu0 }
 0x4b1   : > { %2213 = vst.msk [vmem:[%s3297_s17 + $0x40] sm:$0xff] %vm366_vm0, %v2201_v5  ;;  %v2195_v42 = vmax.f32 %v2179_v2, 0.0  ;;  %v2190_v43 = vadd.f32 %v2539_v41, %v2062_v26  ;;  %v2127_v44 = vpop.f32.mrf.mxu1 }
 0x4b2   : > { %v2193_v45 = vmax.f32 %v2126_v40, 0.0  ;;  %v2128_v46 = vadd.f32 %v2127_v44, %v2047_v33  ;;  %v2181_v47 = vpop.f32.mrf.mxu0 }
 0x4b3   : > { %2207 = vst.msk [vmem:[%s3297_s17 + $0x10] sm:$0xff] %vm366_vm0, %v2195_v42  ;;  %v2204_v57 = vmax.f32 %v2190_v43, 0.0  ;;  %v2182_v59 = vadd.f32 %v2181_v47, %v2052_v19  ;;  %v2129_v60 = vpop.f32.mrf.mxu1 }
 0x4b4   : > { %2205 = vst [vmem:[%s3297_s17] sm:$0xff] %v2193_v45  ;;  %v2194_v9 = vmax.f32 %v2128_v46, 0.0  ;;  %v2130_v54 = vadd.f32 %v2129_v60, %v2052_v19 }
 0x4b5   : > { %2216 = vst.msk [vmem:[%s3297_s17 + $0x58] sm:$0xff] %vm366_vm0, %v2204_v57  ;;  %v2198_v6 = vmax.f32 %v2182_v59, 0.0  ;;  %v2131_v13 = vpop.f32.mrf.mxu1 }
 0x4b6   : > { %2206 = vst [vmem:[%s3297_s17 + $0x8] sm:$0xff] %v2194_v9  ;;  %v2196_v18 = vmax.f32 %v2130_v54, 0.0  ;;  %v2132_v53 = vadd.f32 %v2131_v13, %v2052_v19 }
 0x4b7   : > { %2210 = vst.msk [vmem:[%s3297_s17 + $0x28] sm:$0xff] %vm366_vm0, %v2198_v6  ;;  %v2135_v58 = vpop.f32.mrf.mxu1 }
 0x4b8   : > { %2208 = vst [vmem:[%s3297_s17 + $0x18] sm:$0xff] %v2196_v18  ;;  %v2197_v29 = vmax.f32 %v2132_v53, 0.0  ;;  %v2136_v0 = vadd.f32 %v2135_v58, %v2057_v20 }
 0x4b9   : > { %v2137_v32 = vpop.f32.mrf.mxu1 }
 0x4ba   : > { %2209 = vst [vmem:[%s3297_s17 + $0x20] sm:$0xff] %v2197_v29  ;;  %v2199_v15 = vmax.f32 %v2136_v0, 0.0  ;;  %v2138_v1 = vadd.f32 %v2137_v32, %v2057_v20 }
 0x4bb   : > { %v2139_v63 = vpop.f32.mrf.mxu1 }
 0x4bc   : > { %2211 = vst [vmem:[%s3297_s17 + $0x30] sm:$0xff] %v2199_v15  ;;  %v2200_v55 = vmax.f32 %v2138_v1, 0.0  ;;  %v2140_v23 = vadd.f32 %v2139_v63, %v2062_v26 }
 0x4bd   : > { %v2141_v31 = vpop.f32.mrf.mxu1 }
 0x4be   : > { %2212 = vst [vmem:[%s3297_s17 + $0x38] sm:$0xff] %v2200_v55  ;;  %v2202_v48 = vmax.f32 %v2140_v23, 0.0  ;;  %v2142_v8 = vadd.f32 %v2141_v31, %v2062_v26 }
 0x4c0   : > { %2214 = vst [vmem:[%s3297_s17 + $0x48] sm:$0xff] %v2202_v48  ;;  %v2203_v17 = vmax.f32 %v2142_v8, 0.0 }
 0x4c2   : > { %2215 = vst [vmem:[%s3297_s17 + $0x50] sm:$0xff] %v2203_v17 }
 0x4c3 PF: > { %s17_s24 = sadd.s32 1, %s2601_s24  }
 0x4c4   : > { %p14_p4 = scmp.ge.s32.totalorder %s17_s24, 4  }
 0x4c6   :  { %16 = sbr.rel (!%p14_p4) target bundleno = 1 (0x1), region = 89 }

</bundles_post_ra>
